<compile_context>
chip_gen: v6e
topology: v6e:2x2x1
jax: 0.10.0
libtpu: 0.0.40
codegen_flags: <defaults>
</compile_context>

<pallas_src>
import numpy as np
import jax
import jax.numpy as jnp
from jax import lax
from jax.experimental import pallas as pl
from jax.experimental.pallas import tpu as pltpu


_VMEM_LIMIT = 32 * 1024 * 1024  # explicit and conservative (v5e default is 16 MiB)

# Pooled conv1 rows are produced phase-ordered (even y first, then odd y), each
# phase padded to 8 rows, so conv2 only needs contiguous row slices of a1.
# a1 row k <-> pooled row y = _PERM16[k]; rows 6,7,14,15 are unused padding.
_PERM16 = np.array([0, 2, 4, 6, 8, 10, 0, 0, 1, 3, 5, 7, 9, 11, 0, 0], np.int32)
# xrows[b, 16*t + k, :] = image[b, 2*_PERM16[k] + t, :]   (t = dy + i in 0..3)
_ROW_IDX = (2 * _PERM16[None, :] + np.arange(4, dtype=np.int32)[:, None]).reshape(-1)


# ----------------------------- Pallas kernel ---------------------------------

def _make_cnn_kernel(tb):
    """Whole-network kernel processing `tb` images per grid step."""

    def kernel(x_ref, m1_ref, b1_ref, m2_ref, b2_ref,
               wf1_ref, bf1_ref, wf2_ref, bf2_ref, o_ref):
        m1 = m1_ref[...]      # (2, 3, 28, 384)  bf16  banded conv1 weights
        m2 = m2_ref[...]      # (2, 3, 384, 320) bf16  banded conv2 weights
        wf1 = wf1_ref[...]    # (5, 320, 128)    bf16  fc1 (flatten order folded in)
        wf2 = wf2_ref[...]    # (128, 128)       bf16  fc2, lane padded 10 -> 128
        b1 = b1_ref[...]      # (1, 384) f32
        b2 = b2_ref[...]      # (1, 320) f32
        bf1 = bf1_ref[...]    # (1, 128) f32
        bf2 = bf2_ref[...]    # (1, 128) f32

        for b in range(tb):
            xr = x_ref[b]     # (64, 28) bf16: 4 row-taps x 16 (12 used) rows

            # ---- conv1 + bias + ReLU + 2x2 maxpool (quadrant max) ----------
            a1 = None
            for dy in range(2):
                for dx in range(2):
                    pre = jnp.dot(xr[16 * dy:16 * dy + 16, :], m1[dx, 0],
                                  preferred_element_type=jnp.float32)
                    for i in (1, 2):
                        t = dy + i
                        pre = pre + jnp.dot(xr[16 * t:16 * t + 16, :], m1[dx, i],
                                            preferred_element_type=jnp.float32)
                    a1 = pre if a1 is None else jnp.maximum(a1, pre)
            # rows 0..5 = pooled rows 0,2,..,10; rows 8..13 = pooled rows 1,3,..,11
            a1 = jnp.maximum(a1 + b1, 0.0).astype(jnp.bfloat16)     # (16, 384)

            # ---- conv2 + bias + ReLU + 2x2 maxpool (quadrant max) ----------
            a2 = None
            for dy in range(2):
                for dx in range(2):
                    pre = None
                    for i in range(3):
                        t = dy + i
                        r0 = 8 * (t % 2) + t // 2       # contiguous phase slice
                        part = jnp.dot(a1[r0:r0 + 5, :], m2[dx, i],
                                       preferred_element_type=jnp.float32)
                        pre = part if pre is None else pre + part
                    a2 = pre if a2 is None else jnp.maximum(a2, pre)
            a2 = jnp.maximum(a2 + b2, 0.0).astype(jnp.bfloat16)     # (5, 320)

            # ---- fc1 + bias + ReLU (torch flatten folded into wf1 layout) --
            h = bf1
            for yy in range(5):
                h = h + jnp.dot(a2[yy:yy + 1, :], wf1[yy],
                                preferred_element_type=jnp.float32)
            h = jnp.maximum(h, 0.0).astype(jnp.bfloat16)             # (1, 128)

            # TODO(synk): Dropout(p=0.5) -> identity (eval mode).

            # ---- fc2 (lane-dense 128-wide output store) --------------------
            o_ref[b] = jnp.dot(h, wf2, preferred_element_type=jnp.float32) + bf2

    return kernel


# ------------------------- one-time parameter prep ---------------------------

def init_params(key):
    """Random weights in native PyTorch layouts."""
    ks = jax.random.split(key, 8)
    s = 0.05
    return dict(
        conv1_w=jax.random.normal(ks[0], (32, 1, 3, 3), jnp.float32) * s,
        conv1_b=jax.random.normal(ks[1], (32,), jnp.float32) * s,
        conv2_w=jax.random.normal(ks[2], (64, 32, 3, 3), jnp.float32) * s,
        conv2_b=jax.random.normal(ks[3], (64,), jnp.float32) * s,
        fc1_w=jax.random.normal(ks[4], (128, 1600), jnp.float32) * s,
        fc1_b=jax.random.normal(ks[5], (128,), jnp.float32) * s,
        fc2_w=jax.random.normal(ks[6], (10, 128), jnp.float32) * s,
        fc2_b=jax.random.normal(ks[7], (10,), jnp.float32) * s,
    )


def prepare_params(params):
    """Pack torch-layout weights into kernel layouts.  Runs ONCE on the host."""
    w1 = np.asarray(params["conv1_w"], np.float32)    # (32, 1, 3, 3)
    b1 = np.asarray(params["conv1_b"], np.float32)    # (32,)
    w2 = np.asarray(params["conv2_w"], np.float32)    # (64, 32, 3, 3)
    b2 = np.asarray(params["conv2_b"], np.float32)    # (64,)
    wf1 = np.asarray(params["fc1_w"], np.float32)     # (128, 1600)
    bf1 = np.asarray(params["fc1_b"], np.float32)     # (128,)
    wf2 = np.asarray(params["fc2_w"], np.float32)     # (10, 128)
    bf2 = np.asarray(params["fc2_b"], np.float32)     # (10,)

    # conv1 as a banded row matmul: (image row of 28) @ M1[dx, i] -> (x, c1) lanes.
    # M1[dx, i, v, 32*x + c1] = w1[c1, 0, i, v - (2x + dx)] inside the band.
    m1 = np.zeros((2, 3, 28, 12 * 32), np.float32)
    for dx in range(2):
        for i in range(3):
            for x in range(12):
                for j in range(3):
                    m1[dx, i, 2 * x + dx + j, 32 * x:32 * (x + 1)] = w1[:, 0, i, j]

    # conv2 as a banded row matmul: (a1 row of (x, c1)) @ M2[dx, i] -> (X, c2) lanes.
    # M2[dx, i, 32*x + c1, 64*X + c2] = w2[c2, c1, i, x - (2X + dx)] inside the band.
    m2 = np.zeros((2, 3, 12 * 32, 5 * 64), np.float32)
    for dx in range(2):
        for i in range(3):
            for X in range(5):
                for j in range(3):
                    x = 2 * X + dx + j
                    m2[dx, i, 32 * x:32 * (x + 1), 64 * X:64 * (X + 1)] = w2[:, :, i, j].T

    # fc1 with the torch flatten order (c2*25 + Y*5 + X) folded in:
    # wf1p[Y, 64*X + c2, n] = wf1[n, c2*25 + Y*5 + X]
    wf1p = wf1.T.reshape(64, 5, 5, 128).transpose(1, 2, 0, 3).reshape(5, 320, 128)

    # fc2 padded to 128 output lanes (lane-dense final store).
    wf2p = np.zeros((128, 128), np.float32)
    wf2p[:, :10] = wf2.T
    bf2p = np.zeros((128,), np.float32)
    bf2p[:10] = bf2

    f32, b16 = jnp.float32, jnp.bfloat16
    return dict(
        m1=jnp.asarray(m1, b16),
        b1=jnp.asarray(np.tile(b1, 12)[None, :], f32),     # (1, 384)
        m2=jnp.asarray(m2, b16),
        b2=jnp.asarray(np.tile(b2, 5)[None, :], f32),      # (1, 320)
        wf1=jnp.asarray(wf1p, b16),
        bf1=jnp.asarray(bf1[None, :], f32),                 # (1, 128)
        wf2=jnp.asarray(wf2p, b16),
        bf2=jnp.asarray(bf2p[None, :], f32),                # (1, 128)
    )


# ------------------------------ forward pass ---------------------------------

def _full_spec(shape):
    n = len(shape)
    return pl.BlockSpec(shape, lambda i, _n=n: (0,) * _n)


def cnn_forward(x, prep):
    """x: (B, 1, 28, 28) -> logits (B, 10)."""
    B = x.shape[0]
    tb = 1 if B <= 4 else (2 if B <= 32 else 4)   # keep grid >= 2 when B >= 2
    bp = ((B + tb - 1) // tb) * tb

    img = x.reshape(B, 28, 28).astype(jnp.float32)
    # Gather the phase-ordered row taps (1.7x the raw image bytes, bf16) --
    # the only per-image HBM traffic besides the 512 B of logits.
    xrows = img[:, _ROW_IDX, :].astype(jnp.bfloat16)        # (B, 64, 28)
    if bp != B:
        xrows = jnp.pad(xrows, ((0, bp - B), (0, 0), (0, 0)))

    flops = 2 * bp * (12 * 16 * 28 * 384 + 12 * 5 * 384 * 320
                      + 5 * 320 * 128 + 128 * 128)
    bytes_accessed = (xrows.size * 2 + bp * 128 * 4
                      + 2 * (prep["m1"].size + prep["m2"].size
                             + prep["wf1"].size + prep["wf2"].size)
                      + 4 * (prep["b1"].size + prep["b2"].size
                             + prep["bf1"].size + prep["bf2"].size))

    out = pl.pallas_call(
        _make_cnn_kernel(tb),
        out_shape=jax.ShapeDtypeStruct((bp, 1, 128), jnp.float32),
        grid=(bp // tb,),
        in_specs=[
            pl.BlockSpec((tb, 64, 28), lambda i: (i, 0, 0)),
            _full_spec(prep["m1"].shape), _full_spec(prep["b1"].shape),
            _full_spec(prep["m2"].shape), _full_spec(prep["b2"].shape),
            _full_spec(prep["wf1"].shape), _full_spec(prep["bf1"].shape),
            _full_spec(prep["wf2"].shape), _full_spec(prep["bf2"].shape),
        ],
        out_specs=pl.BlockSpec((tb, 1, 128), lambda i: (i, 0, 0)),
        compiler_params=pltpu.CompilerParams(
            dimension_semantics=("parallel",),
            vmem_limit_bytes=_VMEM_LIMIT),
        cost_estimate=pl.CostEstimate(
            flops=flops, transcendentals=0, bytes_accessed=bytes_accessed),
    )(xrows, prep["m1"], prep["b1"], prep["m2"], prep["b2"],
      prep["wf1"], prep["bf1"], prep["wf2"], prep["bf2"])

    return out.reshape(bp, 128)[:B, :10]


# --------------------------- pure-JAX reference ------------------------------

def reference_forward(x, params):
    dn = ("NCHW", "OIHW", "NCHW")
    hp = lax.Precision.HIGHEST
    y = lax.conv_general_dilated(x, params["conv1_w"], (1, 1), "VALID",
                                 dimension_numbers=dn, precision=hp)
    y = jnp.maximum(y + params["conv1_b"][None, :, None, None], 0.0)
    y = lax.reduce_window(y, -jnp.inf, lax.max, (1, 1, 2, 2), (1, 1, 2, 2), "VALID")
    y = lax.conv_general_dilated(y, params["conv2_w"], (1, 1), "VALID",
                                 dimension_numbers=dn, precision=hp)
    y = jnp.maximum(y + params["conv2_b"][None, :, None, None], 0.0)
    y = lax.reduce_window(y, -jnp.inf, lax.max, (1, 1, 2, 2), (1, 1, 2, 2), "VALID")
    y = y.reshape(y.shape[0], -1)                         # torch.flatten(x, 1) order
    h = jnp.maximum(y @ params["fc1_w"].T + params["fc1_b"], 0.0)
    # dropout = identity (eval mode)
    return h @ params["fc2_w"].T + params["fc2_b"]


# ---------------------------------- main --------------------------------------

if __name__ == "__main__":
    key = jax.random.PRNGKey(0)
    k_in, k_p = jax.random.split(key)

    params = init_params(k_p)
    prep = prepare_params(params)          # one-time, hoisted out of the forward

    # MNIST-shaped input implied by the module: (batch, 1, 28, 28)
    x = jax.random.normal(k_in, (2, 1, 28, 28), jnp.float32)

    forward = jax.jit(cnn_forward)
    logits = forward(x, prep)
    jax.block_until_ready(logits)
    assert logits.shape == (2, 10), logits.shape

    ref = reference_forward(x, params)
    np.testing.assert_allclose(np.asarray(logits), np.asarray(ref),
                               atol=3e-2, rtol=0.0)

    print("KERNEL_OK")
</pallas_src>

<mosaic_0001>
module attributes {stable_mosaic.version = 11 : i64} {
  func.func @kernel(%arg0: i32, %arg1: memref<1x64x28xbf16, #tpu.memory_space<vmem>>, %arg2: memref<2x3x28x384xbf16, #tpu.memory_space<vmem>>, %arg3: memref<1x384xf32, #tpu.memory_space<vmem>>, %arg4: memref<2x3x384x320xbf16, #tpu.memory_space<vmem>>, %arg5: memref<1x320xf32, #tpu.memory_space<vmem>>, %arg6: memref<5x320x128xbf16, #tpu.memory_space<vmem>>, %arg7: memref<1x128xf32, #tpu.memory_space<vmem>>, %arg8: memref<128x128xbf16, #tpu.memory_space<vmem>>, %arg9: memref<1x128xf32, #tpu.memory_space<vmem>>, %arg10: memref<1x1x128xf32, #tpu.memory_space<vmem>>) attributes {dimension_semantics = [#tpu.dimension_semantics<parallel>], iteration_bounds = array<i64: 2>, scalar_prefetch = 0 : i64, scratch_operands = 0 : i64, tpu.core_type = #tpu.core_type<tc>, window_params = [{transform_indices = @transform_0, window_bounds = array<i64: 1, 64, 28>}, {pipeline_mode = #tpu.pipeline_mode<synchronous>, transform_indices = @transform_1, window_bounds = array<i64: 2, 3, 28, 384>}, {pipeline_mode = #tpu.pipeline_mode<synchronous>, transform_indices = @transform_2, window_bounds = array<i64: 1, 384>}, {pipeline_mode = #tpu.pipeline_mode<synchronous>, transform_indices = @transform_3, window_bounds = array<i64: 2, 3, 384, 320>}, {pipeline_mode = #tpu.pipeline_mode<synchronous>, transform_indices = @transform_4, window_bounds = array<i64: 1, 320>}, {pipeline_mode = #tpu.pipeline_mode<synchronous>, transform_indices = @transform_5, window_bounds = array<i64: 5, 320, 128>}, {pipeline_mode = #tpu.pipeline_mode<synchronous>, transform_indices = @transform_6, window_bounds = array<i64: 1, 128>}, {pipeline_mode = #tpu.pipeline_mode<synchronous>, transform_indices = @transform_7, window_bounds = array<i64: 128, 128>}, {pipeline_mode = #tpu.pipeline_mode<synchronous>, transform_indices = @transform_8, window_bounds = array<i64: 1, 128>}, {transform_indices = @transform_9, window_bounds = array<i64: 1, 1, 128>}]} {
    %c0 = arith.constant 0 : index
    %c0_0 = arith.constant 0 : index
    %c0_1 = arith.constant 0 : index
    %c0_2 = arith.constant 0 : index
    %0 = vector.load %arg2[%c0, %c0_0, %c0_1, %c0_2] : memref<2x3x28x384xbf16, #tpu.memory_space<vmem>>, vector<2x3x28x384xbf16>
    %c0_3 = arith.constant 0 : index
    %c0_4 = arith.constant 0 : index
    %c0_5 = arith.constant 0 : index
    %c0_6 = arith.constant 0 : index
    %1 = vector.load %arg4[%c0_3, %c0_4, %c0_5, %c0_6] : memref<2x3x384x320xbf16, #tpu.memory_space<vmem>>, vector<2x3x384x320xbf16>
    %c0_7 = arith.constant 0 : index
    %c0_8 = arith.constant 0 : index
    %c0_9 = arith.constant 0 : index
    %2 = vector.load %arg6[%c0_7, %c0_8, %c0_9] : memref<5x320x128xbf16, #tpu.memory_space<vmem>>, vector<5x320x128xbf16>
    %c0_10 = arith.constant 0 : index
    %c0_11 = arith.constant 0 : index
    %3 = vector.load %arg8[%c0_10, %c0_11] : memref<128x128xbf16, #tpu.memory_space<vmem>>, vector<128x128xbf16>
    %c0_12 = arith.constant 0 : index
    %c0_13 = arith.constant 0 : index
    %4 = vector.load %arg3[%c0_12, %c0_13] : memref<1x384xf32, #tpu.memory_space<vmem>>, vector<1x384xf32>
    %c0_14 = arith.constant 0 : index
    %c0_15 = arith.constant 0 : index
    %5 = vector.load %arg5[%c0_14, %c0_15] : memref<1x320xf32, #tpu.memory_space<vmem>>, vector<1x320xf32>
    %c0_16 = arith.constant 0 : index
    %c0_17 = arith.constant 0 : index
    %6 = vector.load %arg7[%c0_16, %c0_17] : memref<1x128xf32, #tpu.memory_space<vmem>>, vector<1x128xf32>
    %c0_18 = arith.constant 0 : index
    %c0_19 = arith.constant 0 : index
    %7 = vector.load %arg9[%c0_18, %c0_19] : memref<1x128xf32, #tpu.memory_space<vmem>>, vector<1x128xf32>
    %c0_20 = arith.constant 0 : index
    %c0_21 = arith.constant 0 : index
    %c0_22 = arith.constant 0 : index
    %8 = vector.load %arg1[%c0_20, %c0_21, %c0_22] : memref<1x64x28xbf16, #tpu.memory_space<vmem>>, vector<1x64x28xbf16>
    %9 = vector.shape_cast %8 : vector<1x64x28xbf16> to vector<64x28xbf16>
    %10 = vector.extract_strided_slice %9 {offsets = [0, 0], sizes = [16, 28], strides = [1, 1]} : vector<64x28xbf16> to vector<16x28xbf16>
    %11 = vector.extract_strided_slice %0 {offsets = [0, 0, 0, 0], sizes = [1, 1, 28, 384], strides = [1, 1, 1, 1]} : vector<2x3x28x384xbf16> to vector<1x1x28x384xbf16>
    %12 = vector.shape_cast %11 : vector<1x1x28x384xbf16> to vector<28x384xbf16>
    %cst = arith.constant dense<0.000000e+00> : vector<16x384xf32>
    %13 = tpu.matmul %10, %12, %cst {dimension_numbers = #tpu.dot_dimension_numbers<[1], [0], [0], [1], [0, 0, 1, 1], [], []>} : vector<16x28xbf16>, vector<28x384xbf16>, vector<16x384xf32> -> vector<16x384xf32>
    %14 = vector.extract_strided_slice %9 {offsets = [16, 0], sizes = [16, 28], strides = [1, 1]} : vector<64x28xbf16> to vector<16x28xbf16>
    %15 = vector.extract_strided_slice %0 {offsets = [0, 1, 0, 0], sizes = [1, 1, 28, 384], strides = [1, 1, 1, 1]} : vector<2x3x28x384xbf16> to vector<1x1x28x384xbf16>
    %16 = vector.shape_cast %15 : vector<1x1x28x384xbf16> to vector<28x384xbf16>
    %cst_23 = arith.constant dense<0.000000e+00> : vector<16x384xf32>
    %17 = tpu.matmul %14, %16, %cst_23 {dimension_numbers = #tpu.dot_dimension_numbers<[1], [0], [0], [1], [0, 0, 1, 1], [], []>} : vector<16x28xbf16>, vector<28x384xbf16>, vector<16x384xf32> -> vector<16x384xf32>
    %18 = arith.addf %13, %17 : vector<16x384xf32>
    %19 = vector.extract_strided_slice %9 {offsets = [32, 0], sizes = [16, 28], strides = [1, 1]} : vector<64x28xbf16> to vector<16x28xbf16>
    %20 = vector.extract_strided_slice %0 {offsets = [0, 2, 0, 0], sizes = [1, 1, 28, 384], strides = [1, 1, 1, 1]} : vector<2x3x28x384xbf16> to vector<1x1x28x384xbf16>
    %21 = vector.shape_cast %20 : vector<1x1x28x384xbf16> to vector<28x384xbf16>
    %cst_24 = arith.constant dense<0.000000e+00> : vector<16x384xf32>
    %22 = tpu.matmul %19, %21, %cst_24 {dimension_numbers = #tpu.dot_dimension_numbers<[1], [0], [0], [1], [0, 0, 1, 1], [], []>} : vector<16x28xbf16>, vector<28x384xbf16>, vector<16x384xf32> -> vector<16x384xf32>
    %23 = arith.addf %18, %22 : vector<16x384xf32>
    %24 = vector.extract_strided_slice %9 {offsets = [0, 0], sizes = [16, 28], strides = [1, 1]} : vector<64x28xbf16> to vector<16x28xbf16>
    %25 = vector.extract_strided_slice %0 {offsets = [1, 0, 0, 0], sizes = [1, 1, 28, 384], strides = [1, 1, 1, 1]} : vector<2x3x28x384xbf16> to vector<1x1x28x384xbf16>
    %26 = vector.shape_cast %25 : vector<1x1x28x384xbf16> to vector<28x384xbf16>
    %cst_25 = arith.constant dense<0.000000e+00> : vector<16x384xf32>
    %27 = tpu.matmul %24, %26, %cst_25 {dimension_numbers = #tpu.dot_dimension_numbers<[1], [0], [0], [1], [0, 0, 1, 1], [], []>} : vector<16x28xbf16>, vector<28x384xbf16>, vector<16x384xf32> -> vector<16x384xf32>
    %28 = vector.extract_strided_slice %9 {offsets = [16, 0], sizes = [16, 28], strides = [1, 1]} : vector<64x28xbf16> to vector<16x28xbf16>
    %29 = vector.extract_strided_slice %0 {offsets = [1, 1, 0, 0], sizes = [1, 1, 28, 384], strides = [1, 1, 1, 1]} : vector<2x3x28x384xbf16> to vector<1x1x28x384xbf16>
    %30 = vector.shape_cast %29 : vector<1x1x28x384xbf16> to vector<28x384xbf16>
    %cst_26 = arith.constant dense<0.000000e+00> : vector<16x384xf32>
    %31 = tpu.matmul %28, %30, %cst_26 {dimension_numbers = #tpu.dot_dimension_numbers<[1], [0], [0], [1], [0, 0, 1, 1], [], []>} : vector<16x28xbf16>, vector<28x384xbf16>, vector<16x384xf32> -> vector<16x384xf32>
    %32 = arith.addf %27, %31 : vector<16x384xf32>
    %33 = vector.extract_strided_slice %9 {offsets = [32, 0], sizes = [16, 28], strides = [1, 1]} : vector<64x28xbf16> to vector<16x28xbf16>
    %34 = vector.extract_strided_slice %0 {offsets = [1, 2, 0, 0], sizes = [1, 1, 28, 384], strides = [1, 1, 1, 1]} : vector<2x3x28x384xbf16> to vector<1x1x28x384xbf16>
    %35 = vector.shape_cast %34 : vector<1x1x28x384xbf16> to vector<28x384xbf16>
    %cst_27 = arith.constant dense<0.000000e+00> : vector<16x384xf32>
    %36 = tpu.matmul %33, %35, %cst_27 {dimension_numbers = #tpu.dot_dimension_numbers<[1], [0], [0], [1], [0, 0, 1, 1], [], []>} : vector<16x28xbf16>, vector<28x384xbf16>, vector<16x384xf32> -> vector<16x384xf32>
    %37 = arith.addf %32, %36 : vector<16x384xf32>
    %38 = arith.maximumf %23, %37 : vector<16x384xf32>
    %39 = vector.extract_strided_slice %9 {offsets = [16, 0], sizes = [16, 28], strides = [1, 1]} : vector<64x28xbf16> to vector<16x28xbf16>
    %40 = vector.extract_strided_slice %0 {offsets = [0, 0, 0, 0], sizes = [1, 1, 28, 384], strides = [1, 1, 1, 1]} : vector<2x3x28x384xbf16> to vector<1x1x28x384xbf16>
    %41 = vector.shape_cast %40 : vector<1x1x28x384xbf16> to vector<28x384xbf16>
    %cst_28 = arith.constant dense<0.000000e+00> : vector<16x384xf32>
    %42 = tpu.matmul %39, %41, %cst_28 {dimension_numbers = #tpu.dot_dimension_numbers<[1], [0], [0], [1], [0, 0, 1, 1], [], []>} : vector<16x28xbf16>, vector<28x384xbf16>, vector<16x384xf32> -> vector<16x384xf32>
    %43 = vector.extract_strided_slice %9 {offsets = [32, 0], sizes = [16, 28], strides = [1, 1]} : vector<64x28xbf16> to vector<16x28xbf16>
    %44 = vector.extract_strided_slice %0 {offsets = [0, 1, 0, 0], sizes = [1, 1, 28, 384], strides = [1, 1, 1, 1]} : vector<2x3x28x384xbf16> to vector<1x1x28x384xbf16>
    %45 = vector.shape_cast %44 : vector<1x1x28x384xbf16> to vector<28x384xbf16>
    %cst_29 = arith.constant dense<0.000000e+00> : vector<16x384xf32>
    %46 = tpu.matmul %43, %45, %cst_29 {dimension_numbers = #tpu.dot_dimension_numbers<[1], [0], [0], [1], [0, 0, 1, 1], [], []>} : vector<16x28xbf16>, vector<28x384xbf16>, vector<16x384xf32> -> vector<16x384xf32>
    %47 = arith.addf %42, %46 : vector<16x384xf32>
    %48 = vector.extract_strided_slice %9 {offsets = [48, 0], sizes = [16, 28], strides = [1, 1]} : vector<64x28xbf16> to vector<16x28xbf16>
    %49 = vector.extract_strided_slice %0 {offsets = [0, 2, 0, 0], sizes = [1, 1, 28, 384], strides = [1, 1, 1, 1]} : vector<2x3x28x384xbf16> to vector<1x1x28x384xbf16>
    %50 = vector.shape_cast %49 : vector<1x1x28x384xbf16> to vector<28x384xbf16>
    %cst_30 = arith.constant dense<0.000000e+00> : vector<16x384xf32>
    %51 = tpu.matmul %48, %50, %cst_30 {dimension_numbers = #tpu.dot_dimension_numbers<[1], [0], [0], [1], [0, 0, 1, 1], [], []>} : vector<16x28xbf16>, vector<28x384xbf16>, vector<16x384xf32> -> vector<16x384xf32>
    %52 = arith.addf %47, %51 : vector<16x384xf32>
    %53 = arith.maximumf %38, %52 : vector<16x384xf32>
    %54 = vector.extract_strided_slice %9 {offsets = [16, 0], sizes = [16, 28], strides = [1, 1]} : vector<64x28xbf16> to vector<16x28xbf16>
    %55 = vector.extract_strided_slice %0 {offsets = [1, 0, 0, 0], sizes = [1, 1, 28, 384], strides = [1, 1, 1, 1]} : vector<2x3x28x384xbf16> to vector<1x1x28x384xbf16>
    %56 = vector.shape_cast %55 : vector<1x1x28x384xbf16> to vector<28x384xbf16>
    %cst_31 = arith.constant dense<0.000000e+00> : vector<16x384xf32>
    %57 = tpu.matmul %54, %56, %cst_31 {dimension_numbers = #tpu.dot_dimension_numbers<[1], [0], [0], [1], [0, 0, 1, 1], [], []>} : vector<16x28xbf16>, vector<28x384xbf16>, vector<16x384xf32> -> vector<16x384xf32>
    %58 = vector.extract_strided_slice %9 {offsets = [32, 0], sizes = [16, 28], strides = [1, 1]} : vector<64x28xbf16> to vector<16x28xbf16>
    %59 = vector.extract_strided_slice %0 {offsets = [1, 1, 0, 0], sizes = [1, 1, 28, 384], strides = [1, 1, 1, 1]} : vector<2x3x28x384xbf16> to vector<1x1x28x384xbf16>
    %60 = vector.shape_cast %59 : vector<1x1x28x384xbf16> to vector<28x384xbf16>
    %cst_32 = arith.constant dense<0.000000e+00> : vector<16x384xf32>
    %61 = tpu.matmul %58, %60, %cst_32 {dimension_numbers = #tpu.dot_dimension_numbers<[1], [0], [0], [1], [0, 0, 1, 1], [], []>} : vector<16x28xbf16>, vector<28x384xbf16>, vector<16x384xf32> -> vector<16x384xf32>
    %62 = arith.addf %57, %61 : vector<16x384xf32>
    %63 = vector.extract_strided_slice %9 {offsets = [48, 0], sizes = [16, 28], strides = [1, 1]} : vector<64x28xbf16> to vector<16x28xbf16>
    %64 = vector.extract_strided_slice %0 {offsets = [1, 2, 0, 0], sizes = [1, 1, 28, 384], strides = [1, 1, 1, 1]} : vector<2x3x28x384xbf16> to vector<1x1x28x384xbf16>
    %65 = vector.shape_cast %64 : vector<1x1x28x384xbf16> to vector<28x384xbf16>
    %cst_33 = arith.constant dense<0.000000e+00> : vector<16x384xf32>
    %66 = tpu.matmul %63, %65, %cst_33 {dimension_numbers = #tpu.dot_dimension_numbers<[1], [0], [0], [1], [0, 0, 1, 1], [], []>} : vector<16x28xbf16>, vector<28x384xbf16>, vector<16x384xf32> -> vector<16x384xf32>
    %67 = arith.addf %62, %66 : vector<16x384xf32>
    %68 = arith.maximumf %53, %67 : vector<16x384xf32>
    %69 = vector.broadcast %4 : vector<1x384xf32> to vector<16x384xf32>
    %70 = arith.addf %68, %69 : vector<16x384xf32>
    %cst_34 = arith.constant 0.000000e+00 : f32
    %71 = vector.broadcast %cst_34 : f32 to vector<16x384xf32>
    %72 = arith.maximumf %70, %71 : vector<16x384xf32>
    %73 = arith.truncf %72 : vector<16x384xf32> to vector<16x384xbf16>
    %74 = vector.extract_strided_slice %73 {offsets = [0, 0], sizes = [5, 384], strides = [1, 1]} : vector<16x384xbf16> to vector<5x384xbf16>
    %75 = vector.extract_strided_slice %1 {offsets = [0, 0, 0, 0], sizes = [1, 1, 384, 320], strides = [1, 1, 1, 1]} : vector<2x3x384x320xbf16> to vector<1x1x384x320xbf16>
    %76 = vector.shape_cast %75 : vector<1x1x384x320xbf16> to vector<384x320xbf16>
    %cst_35 = arith.constant dense<0.000000e+00> : vector<5x320xf32>
    %77 = tpu.matmul %74, %76, %cst_35 {dimension_numbers = #tpu.dot_dimension_numbers<[1], [0], [0], [1], [0, 0, 1, 1], [], []>} : vector<5x384xbf16>, vector<384x320xbf16>, vector<5x320xf32> -> vector<5x320xf32>
    %78 = vector.extract_strided_slice %73 {offsets = [8, 0], sizes = [5, 384], strides = [1, 1]} : vector<16x384xbf16> to vector<5x384xbf16>
    %79 = vector.extract_strided_slice %1 {offsets = [0, 1, 0, 0], sizes = [1, 1, 384, 320], strides = [1, 1, 1, 1]} : vector<2x3x384x320xbf16> to vector<1x1x384x320xbf16>
    %80 = vector.shape_cast %79 : vector<1x1x384x320xbf16> to vector<384x320xbf16>
    %cst_36 = arith.constant dense<0.000000e+00> : vector<5x320xf32>
    %81 = tpu.matmul %78, %80, %cst_36 {dimension_numbers = #tpu.dot_dimension_numbers<[1], [0], [0], [1], [0, 0, 1, 1], [], []>} : vector<5x384xbf16>, vector<384x320xbf16>, vector<5x320xf32> -> vector<5x320xf32>
    %82 = arith.addf %77, %81 : vector<5x320xf32>
    %83 = vector.extract_strided_slice %73 {offsets = [1, 0], sizes = [5, 384], strides = [1, 1]} : vector<16x384xbf16> to vector<5x384xbf16>
    %84 = vector.extract_strided_slice %1 {offsets = [0, 2, 0, 0], sizes = [1, 1, 384, 320], strides = [1, 1, 1, 1]} : vector<2x3x384x320xbf16> to vector<1x1x384x320xbf16>
    %85 = vector.shape_cast %84 : vector<1x1x384x320xbf16> to vector<384x320xbf16>
    %cst_37 = arith.constant dense<0.000000e+00> : vector<5x320xf32>
    %86 = tpu.matmul %83, %85, %cst_37 {dimension_numbers = #tpu.dot_dimension_numbers<[1], [0], [0], [1], [0, 0, 1, 1], [], []>} : vector<5x384xbf16>, vector<384x320xbf16>, vector<5x320xf32> -> vector<5x320xf32>
    %87 = arith.addf %82, %86 : vector<5x320xf32>
    %88 = vector.extract_strided_slice %73 {offsets = [0, 0], sizes = [5, 384], strides = [1, 1]} : vector<16x384xbf16> to vector<5x384xbf16>
    %89 = vector.extract_strided_slice %1 {offsets = [1, 0, 0, 0], sizes = [1, 1, 384, 320], strides = [1, 1, 1, 1]} : vector<2x3x384x320xbf16> to vector<1x1x384x320xbf16>
    %90 = vector.shape_cast %89 : vector<1x1x384x320xbf16> to vector<384x320xbf16>
    %cst_38 = arith.constant dense<0.000000e+00> : vector<5x320xf32>
    %91 = tpu.matmul %88, %90, %cst_38 {dimension_numbers = #tpu.dot_dimension_numbers<[1], [0], [0], [1], [0, 0, 1, 1], [], []>} : vector<5x384xbf16>, vector<384x320xbf16>, vector<5x320xf32> -> vector<5x320xf32>
    %92 = vector.extract_strided_slice %73 {offsets = [8, 0], sizes = [5, 384], strides = [1, 1]} : vector<16x384xbf16> to vector<5x384xbf16>
    %93 = vector.extract_strided_slice %1 {offsets = [1, 1, 0, 0], sizes = [1, 1, 384, 320], strides = [1, 1, 1, 1]} : vector<2x3x384x320xbf16> to vector<1x1x384x320xbf16>
    %94 = vector.shape_cast %93 : vector<1x1x384x320xbf16> to vector<384x320xbf16>
    %cst_39 = arith.constant dense<0.000000e+00> : vector<5x320xf32>
    %95 = tpu.matmul %92, %94, %cst_39 {dimension_numbers = #tpu.dot_dimension_numbers<[1], [0], [0], [1], [0, 0, 1, 1], [], []>} : vector<5x384xbf16>, vector<384x320xbf16>, vector<5x320xf32> -> vector<5x320xf32>
    %96 = arith.addf %91, %95 : vector<5x320xf32>
    %97 = vector.extract_strided_slice %73 {offsets = [1, 0], sizes = [5, 384], strides = [1, 1]} : vector<16x384xbf16> to vector<5x384xbf16>
    %98 = vector.extract_strided_slice %1 {offsets = [1, 2, 0, 0], sizes = [1, 1, 384, 320], strides = [1, 1, 1, 1]} : vector<2x3x384x320xbf16> to vector<1x1x384x320xbf16>
    %99 = vector.shape_cast %98 : vector<1x1x384x320xbf16> to vector<384x320xbf16>
    %cst_40 = arith.constant dense<0.000000e+00> : vector<5x320xf32>
    %100 = tpu.matmul %97, %99, %cst_40 {dimension_numbers = #tpu.dot_dimension_numbers<[1], [0], [0], [1], [0, 0, 1, 1], [], []>} : vector<5x384xbf16>, vector<384x320xbf16>, vector<5x320xf32> -> vector<5x320xf32>
    %101 = arith.addf %96, %100 : vector<5x320xf32>
    %102 = arith.maximumf %87, %101 : vector<5x320xf32>
    %103 = vector.extract_strided_slice %73 {offsets = [8, 0], sizes = [5, 384], strides = [1, 1]} : vector<16x384xbf16> to vector<5x384xbf16>
    %104 = vector.extract_strided_slice %1 {offsets = [0, 0, 0, 0], sizes = [1, 1, 384, 320], strides = [1, 1, 1, 1]} : vector<2x3x384x320xbf16> to vector<1x1x384x320xbf16>
    %105 = vector.shape_cast %104 : vector<1x1x384x320xbf16> to vector<384x320xbf16>
    %cst_41 = arith.constant dense<0.000000e+00> : vector<5x320xf32>
    %106 = tpu.matmul %103, %105, %cst_41 {dimension_numbers = #tpu.dot_dimension_numbers<[1], [0], [0], [1], [0, 0, 1, 1], [], []>} : vector<5x384xbf16>, vector<384x320xbf16>, vector<5x320xf32> -> vector<5x320xf32>
    %107 = vector.extract_strided_slice %73 {offsets = [1, 0], sizes = [5, 384], strides = [1, 1]} : vector<16x384xbf16> to vector<5x384xbf16>
    %108 = vector.extract_strided_slice %1 {offsets = [0, 1, 0, 0], sizes = [1, 1, 384, 320], strides = [1, 1, 1, 1]} : vector<2x3x384x320xbf16> to vector<1x1x384x320xbf16>
    %109 = vector.shape_cast %108 : vector<1x1x384x320xbf16> to vector<384x320xbf16>
    %cst_42 = arith.constant dense<0.000000e+00> : vector<5x320xf32>
    %110 = tpu.matmul %107, %109, %cst_42 {dimension_numbers = #tpu.dot_dimension_numbers<[1], [0], [0], [1], [0, 0, 1, 1], [], []>} : vector<5x384xbf16>, vector<384x320xbf16>, vector<5x320xf32> -> vector<5x320xf32>
    %111 = arith.addf %106, %110 : vector<5x320xf32>
    %112 = vector.extract_strided_slice %73 {offsets = [9, 0], sizes = [5, 384], strides = [1, 1]} : vector<16x384xbf16> to vector<5x384xbf16>
    %113 = vector.extract_strided_slice %1 {offsets = [0, 2, 0, 0], sizes = [1, 1, 384, 320], strides = [1, 1, 1, 1]} : vector<2x3x384x320xbf16> to vector<1x1x384x320xbf16>
    %114 = vector.shape_cast %113 : vector<1x1x384x320xbf16> to vector<384x320xbf16>
    %cst_43 = arith.constant dense<0.000000e+00> : vector<5x320xf32>
    %115 = tpu.matmul %112, %114, %cst_43 {dimension_numbers = #tpu.dot_dimension_numbers<[1], [0], [0], [1], [0, 0, 1, 1], [], []>} : vector<5x384xbf16>, vector<384x320xbf16>, vector<5x320xf32> -> vector<5x320xf32>
    %116 = arith.addf %111, %115 : vector<5x320xf32>
    %117 = arith.maximumf %102, %116 : vector<5x320xf32>
    %118 = vector.extract_strided_slice %73 {offsets = [8, 0], sizes = [5, 384], strides = [1, 1]} : vector<16x384xbf16> to vector<5x384xbf16>
    %119 = vector.extract_strided_slice %1 {offsets = [1, 0, 0, 0], sizes = [1, 1, 384, 320], strides = [1, 1, 1, 1]} : vector<2x3x384x320xbf16> to vector<1x1x384x320xbf16>
    %120 = vector.shape_cast %119 : vector<1x1x384x320xbf16> to vector<384x320xbf16>
    %cst_44 = arith.constant dense<0.000000e+00> : vector<5x320xf32>
    %121 = tpu.matmul %118, %120, %cst_44 {dimension_numbers = #tpu.dot_dimension_numbers<[1], [0], [0], [1], [0, 0, 1, 1], [], []>} : vector<5x384xbf16>, vector<384x320xbf16>, vector<5x320xf32> -> vector<5x320xf32>
    %122 = vector.extract_strided_slice %73 {offsets = [1, 0], sizes = [5, 384], strides = [1, 1]} : vector<16x384xbf16> to vector<5x384xbf16>
    %123 = vector.extract_strided_slice %1 {offsets = [1, 1, 0, 0], sizes = [1, 1, 384, 320], strides = [1, 1, 1, 1]} : vector<2x3x384x320xbf16> to vector<1x1x384x320xbf16>
    %124 = vector.shape_cast %123 : vector<1x1x384x320xbf16> to vector<384x320xbf16>
    %cst_45 = arith.constant dense<0.000000e+00> : vector<5x320xf32>
    %125 = tpu.matmul %122, %124, %cst_45 {dimension_numbers = #tpu.dot_dimension_numbers<[1], [0], [0], [1], [0, 0, 1, 1], [], []>} : vector<5x384xbf16>, vector<384x320xbf16>, vector<5x320xf32> -> vector<5x320xf32>
    %126 = arith.addf %121, %125 : vector<5x320xf32>
    %127 = vector.extract_strided_slice %73 {offsets = [9, 0], sizes = [5, 384], strides = [1, 1]} : vector<16x384xbf16> to vector<5x384xbf16>
    %128 = vector.extract_strided_slice %1 {offsets = [1, 2, 0, 0], sizes = [1, 1, 384, 320], strides = [1, 1, 1, 1]} : vector<2x3x384x320xbf16> to vector<1x1x384x320xbf16>
    %129 = vector.shape_cast %128 : vector<1x1x384x320xbf16> to vector<384x320xbf16>
    %cst_46 = arith.constant dense<0.000000e+00> : vector<5x320xf32>
    %130 = tpu.matmul %127, %129, %cst_46 {dimension_numbers = #tpu.dot_dimension_numbers<[1], [0], [0], [1], [0, 0, 1, 1], [], []>} : vector<5x384xbf16>, vector<384x320xbf16>, vector<5x320xf32> -> vector<5x320xf32>
    %131 = arith.addf %126, %130 : vector<5x320xf32>
    %132 = arith.maximumf %117, %131 : vector<5x320xf32>
    %133 = vector.broadcast %5 : vector<1x320xf32> to vector<5x320xf32>
    %134 = arith.addf %132, %133 : vector<5x320xf32>
    %cst_47 = arith.constant 0.000000e+00 : f32
    %135 = vector.broadcast %cst_47 : f32 to vector<5x320xf32>
    %136 = arith.maximumf %134, %135 : vector<5x320xf32>
    %137 = arith.truncf %136 : vector<5x320xf32> to vector<5x320xbf16>
    %138 = vector.extract_strided_slice %137 {offsets = [0, 0], sizes = [1, 320], strides = [1, 1]} : vector<5x320xbf16> to vector<1x320xbf16>
    %139 = vector.extract_strided_slice %2 {offsets = [0, 0, 0], sizes = [1, 320, 128], strides = [1, 1, 1]} : vector<5x320x128xbf16> to vector<1x320x128xbf16>
    %140 = vector.shape_cast %139 : vector<1x320x128xbf16> to vector<320x128xbf16>
    %cst_48 = arith.constant dense<0.000000e+00> : vector<1x128xf32>
    %141 = tpu.matmul %138, %140, %cst_48 {dimension_numbers = #tpu.dot_dimension_numbers<[1], [0], [0], [1], [0, 0, 1, 1], [], []>} : vector<1x320xbf16>, vector<320x128xbf16>, vector<1x128xf32> -> vector<1x128xf32>
    %142 = arith.addf %6, %141 : vector<1x128xf32>
    %143 = vector.extract_strided_slice %137 {offsets = [1, 0], sizes = [1, 320], strides = [1, 1]} : vector<5x320xbf16> to vector<1x320xbf16>
    %144 = vector.extract_strided_slice %2 {offsets = [1, 0, 0], sizes = [1, 320, 128], strides = [1, 1, 1]} : vector<5x320x128xbf16> to vector<1x320x128xbf16>
    %145 = vector.shape_cast %144 : vector<1x320x128xbf16> to vector<320x128xbf16>
    %cst_49 = arith.constant dense<0.000000e+00> : vector<1x128xf32>
    %146 = tpu.matmul %143, %145, %cst_49 {dimension_numbers = #tpu.dot_dimension_numbers<[1], [0], [0], [1], [0, 0, 1, 1], [], []>} : vector<1x320xbf16>, vector<320x128xbf16>, vector<1x128xf32> -> vector<1x128xf32>
    %147 = arith.addf %142, %146 : vector<1x128xf32>
    %148 = vector.extract_strided_slice %137 {offsets = [2, 0], sizes = [1, 320], strides = [1, 1]} : vector<5x320xbf16> to vector<1x320xbf16>
    %149 = vector.extract_strided_slice %2 {offsets = [2, 0, 0], sizes = [1, 320, 128], strides = [1, 1, 1]} : vector<5x320x128xbf16> to vector<1x320x128xbf16>
    %150 = vector.shape_cast %149 : vector<1x320x128xbf16> to vector<320x128xbf16>
    %cst_50 = arith.constant dense<0.000000e+00> : vector<1x128xf32>
    %151 = tpu.matmul %148, %150, %cst_50 {dimension_numbers = #tpu.dot_dimension_numbers<[1], [0], [0], [1], [0, 0, 1, 1], [], []>} : vector<1x320xbf16>, vector<320x128xbf16>, vector<1x128xf32> -> vector<1x128xf32>
    %152 = arith.addf %147, %151 : vector<1x128xf32>
    %153 = vector.extract_strided_slice %137 {offsets = [3, 0], sizes = [1, 320], strides = [1, 1]} : vector<5x320xbf16> to vector<1x320xbf16>
    %154 = vector.extract_strided_slice %2 {offsets = [3, 0, 0], sizes = [1, 320, 128], strides = [1, 1, 1]} : vector<5x320x128xbf16> to vector<1x320x128xbf16>
    %155 = vector.shape_cast %154 : vector<1x320x128xbf16> to vector<320x128xbf16>
    %cst_51 = arith.constant dense<0.000000e+00> : vector<1x128xf32>
    %156 = tpu.matmul %153, %155, %cst_51 {dimension_numbers = #tpu.dot_dimension_numbers<[1], [0], [0], [1], [0, 0, 1, 1], [], []>} : vector<1x320xbf16>, vector<320x128xbf16>, vector<1x128xf32> -> vector<1x128xf32>
    %157 = arith.addf %152, %156 : vector<1x128xf32>
    %158 = vector.extract_strided_slice %137 {offsets = [4, 0], sizes = [1, 320], strides = [1, 1]} : vector<5x320xbf16> to vector<1x320xbf16>
    %159 = vector.extract_strided_slice %2 {offsets = [4, 0, 0], sizes = [1, 320, 128], strides = [1, 1, 1]} : vector<5x320x128xbf16> to vector<1x320x128xbf16>
    %160 = vector.shape_cast %159 : vector<1x320x128xbf16> to vector<320x128xbf16>
    %cst_52 = arith.constant dense<0.000000e+00> : vector<1x128xf32>
    %161 = tpu.matmul %158, %160, %cst_52 {dimension_numbers = #tpu.dot_dimension_numbers<[1], [0], [0], [1], [0, 0, 1, 1], [], []>} : vector<1x320xbf16>, vector<320x128xbf16>, vector<1x128xf32> -> vector<1x128xf32>
    %162 = arith.addf %157, %161 : vector<1x128xf32>
    %cst_53 = arith.constant 0.000000e+00 : f32
    %163 = vector.broadcast %cst_53 : f32 to vector<1x128xf32>
    %164 = arith.maximumf %162, %163 : vector<1x128xf32>
    %165 = arith.truncf %164 : vector<1x128xf32> to vector<1x128xbf16>
    %cst_54 = arith.constant dense<0.000000e+00> : vector<1x128xf32>
    %166 = tpu.matmul %165, %3, %cst_54 {dimension_numbers = #tpu.dot_dimension_numbers<[1], [0], [0], [1], [0, 0, 1, 1], [], []>} : vector<1x128xbf16>, vector<128x128xbf16>, vector<1x128xf32> -> vector<1x128xf32>
    %167 = arith.addf %166, %7 : vector<1x128xf32>
    %c0_55 = arith.constant 0 : index
    %c0_56 = arith.constant 0 : index
    %c0_57 = arith.constant 0 : index
    %168 = vector.load %arg10[%c0_55, %c0_56, %c0_57] : memref<1x1x128xf32, #tpu.memory_space<vmem>>, vector<1x1x128xf32>
    %169 = vector.shape_cast %168 : vector<1x1x128xf32> to vector<1x128xf32>
    %170 = vector.shape_cast %167 : vector<1x128xf32> to vector<1x1x128xf32>
    tpu.vector_store %arg10[%c0_55, %c0_56, %c0_57], %170 {strides = array<i32>} : memref<1x1x128xf32, #tpu.memory_space<vmem>>, vector<1x1x128xf32>,
    return
  }
  func.func @transform_0(%arg0: i32) -> (i32, i32, i32) {
    %c0_i32 = arith.constant 0 : i32
    %c0_i32_0 = arith.constant 0 : i32
    %c0_i32_1 = arith.constant 0 : i32
    return %arg0, %c0_i32, %c0_i32_0 : i32, i32, i32
  }
  func.func @transform_1(%arg0: i32) -> (i32, i32, i32, i32) {
    %c0_i32 = arith.constant 0 : i32
    %c0_i32_0 = arith.constant 0 : i32
    %c0_i32_1 = arith.constant 0 : i32
    %c0_i32_2 = arith.constant 0 : i32
    %c0_i32_3 = arith.constant 0 : i32
    return %c0_i32, %c0_i32_0, %c0_i32_1, %c0_i32_2 : i32, i32, i32, i32
  }
  func.func @transform_2(%arg0: i32) -> (i32, i32) {
    %c0_i32 = arith.constant 0 : i32
    %c0_i32_0 = arith.constant 0 : i32
    %c0_i32_1 = arith.constant 0 : i32
    return %c0_i32, %c0_i32_0 : i32, i32
  }
  func.func @transform_3(%arg0: i32) -> (i32, i32, i32, i32) {
    %c0_i32 = arith.constant 0 : i32
    %c0_i32_0 = arith.constant 0 : i32
    %c0_i32_1 = arith.constant 0 : i32
    %c0_i32_2 = arith.constant 0 : i32
    %c0_i32_3 = arith.constant 0 : i32
    return %c0_i32, %c0_i32_0, %c0_i32_1, %c0_i32_2 : i32, i32, i32, i32
  }
  func.func @transform_4(%arg0: i32) -> (i32, i32) {
    %c0_i32 = arith.constant 0 : i32
    %c0_i32_0 = arith.constant 0 : i32
    %c0_i32_1 = arith.constant 0 : i32
    return %c0_i32, %c0_i32_0 : i32, i32
  }
  func.func @transform_5(%arg0: i32) -> (i32, i32, i32) {
    %c0_i32 = arith.constant 0 : i32
    %c0_i32_0 = arith.constant 0 : i32
    %c0_i32_1 = arith.constant 0 : i32
    %c0_i32_2 = arith.constant 0 : i32
    return %c0_i32, %c0_i32_0, %c0_i32_1 : i32, i32, i32
  }
  func.func @transform_6(%arg0: i32) -> (i32, i32) {
    %c0_i32 = arith.constant 0 : i32
    %c0_i32_0 = arith.constant 0 : i32
    %c0_i32_1 = arith.constant 0 : i32
    return %c0_i32, %c0_i32_0 : i32, i32
  }
  func.func @transform_7(%arg0: i32) -> (i32, i32) {
    %c0_i32 = arith.constant 0 : i32
    %c0_i32_0 = arith.constant 0 : i32
    %c0_i32_1 = arith.constant 0 : i32
    return %c0_i32, %c0_i32_0 : i32, i32
  }
  func.func @transform_8(%arg0: i32) -> (i32, i32) {
    %c0_i32 = arith.constant 0 : i32
    %c0_i32_0 = arith.constant 0 : i32
    %c0_i32_1 = arith.constant 0 : i32
    return %c0_i32, %c0_i32_0 : i32, i32
  }
  func.func @transform_9(%arg0: i32) -> (i32, i32, i32) {
    %c0_i32 = arith.constant 0 : i32
    %c0_i32_0 = arith.constant 0 : i32
    %c0_i32_1 = arith.constant 0 : i32
    return %arg0, %c0_i32, %c0_i32_0 : i32, i32, i32
  }
}

</mosaic_0001>

<bundles_post_ra>
// kernel: cnn_forward.1
= control target key start
LH: loop header
LB: loop body
LE: loop exit
PB: predicated region body
PF: predicated region fallthrough
CT: control target
= control target key end

     0   :  { %14 = vsyncpa [#allocation3], 0  ;;  %s14958_s0 = inlined_call_operand.vmem [shape: bf16[2,64,28], index: 0, kind: input, shape index: {}]   ;;  %s14959_s1 = inlined_call_operand.vmem [shape: bf16[2,3,28,384], index: 1, kind: input, shape index: {}]   ;;  %s14960_s2 = inlined_call_operand.vmem [shape: f32[1,384], index: 2, kind: input, shape index: {}]   ;;  %s14961_s3 = inlined_call_operand.vmem [shape: bf16[2,3,384,320], index: 3, kind: input, shape index: {}]   ;;  %s14962_s4 = inlined_call_operand.vmem [shape: f32[1,320], index: 4, kind: input, shape index: {}]   ;;  %s14963_s5 = inlined_call_operand.vmem [shape: bf16[5,320,128], index: 5, kind: input, shape index: {}]   ;;  %s14964_s6 = inlined_call_operand.vmem [shape: f32[1,128], index: 6, kind: input, shape index: {}]   ;;  %s14965_s7 = inlined_call_operand.vmem [shape: bf16[128,128], index: 7, kind: input, shape index: {}]   ;;  %s14966_s8 = inlined_call_operand.vmem [shape: f32[1,128], index: 8, kind: input, shape index: {}]   ;;  %s14967_s9 = inlined_call_operand.hbm [shape: f32[2,1,128], index: 9, kind: output, shape index: {}]  }
   0x1   :  { %16 = vsyncpa [#allocation3 + $0x1], 0  ;;  %s10998_s30 = smov 0   ;;  %s11000_s10 = smov 0  }
   0x2   :  { %s11002_s11 = smov 0   ;;  %s11004_s12 = smov 0  }
   0x3 LB: > { %s11019_s13 = sadd.s32 4294967295, %s10942_s12   ;;  %s8073_s14 = sadd.s32 4294967294, %s10942_s12   ;;  %s10942_s12 = sphi %s11004_s12, %s14973_s12   ;;  %s10938_s11 = sphi %s11002_s11, %s14972_s11   ;;  %s10934_s10 = sphi %s11000_s10, %s14971_s10   ;;  %s10930_s30 = sphi %s10998_s30, %s14970_s30  }
   0x4   : > { %s11023_s15 = sadd.s32 1, %s10942_s12   ;;  %s223_s16 = sadd.s32 1, %s10938_s11 }
   0x5   : > { %s220_s17 = ssub.s32 %s10942_s12, %s11023_s15  ;;  %p233_p0 = scmp.ne.s32.totalorder %s10938_s11, %s10934_s10 }
   0x6   : > { %p221_p1 = scmp.eq.s32.totalorder %s220_s17, 0  ;;  %p234_p2 = scmp.eq.s32.totalorder %s11019_s13, 1 }
   0x7   : > { %p239_p3 = scmp.ne.s32.totalorder %s10934_s10, %s10930_s30  ;;  %p240_p4 = scmp.eq.s32.totalorder %s8073_s14, 1 }
   0x8   : > { %s11034_s18 = scalar_select %p221_p1, %s10938_s11, %s223_s16  }
   0x9   : > { %p11036_p5 = por %p234_p2, %p233_p0  ;;  %p11040_p6 = por %p240_p4, %p239_p3 }
   0xa   : > { %p8076_p7 = scmp.ge.s32.totalorder %s10942_s12, 1  ;;  %p290_p8 = scmp.lt.s32.totalorder %s10942_s12, 3 }
   0xc   : > { %p291_p9 = pnand %p8076_p7, %p290_p8 }
   0xd   : > { %p325_p10 = scmp.lt.s32.totalorder (!%p291_p9), %s11019_s13, 1  ;;  %s323_s24 = sand.u32 (!%p291_p9), 1, %s10934_s10  }
   0xe   : > { %294 = sbr.rel (%p291_p9) target bundleno = 1957 (0x7a5), region = 56  ;;  %s8700_s27 = sshll.u32 (!%p291_p9), %s11019_s13, 4 }
   0xf   : > { %s324_s28 = scalar_lea.vmem (!%p291_p9), [#allocation2], %s323_s24  ;;  %s14917_s17 = scalar_lea.hbm (!%p291_p9), %s14967_s9, %s8700_s27 }
  0x10   : > { %s8018_s14 = sshll.u32 (!%p291_p9), %s324_s28, 4  ;;  %s14919_s14 = int_to_ptr.vmem [resolvable:$true] %s8018_s14 }
  0x11   : > { %s10882_s22 = scalar_lea.vmem (!%p291_p9), %s14919_s14, 16 }
  0x12   : > { %p10883_p11 = scmp.ne.s32.totalorder (!%p291_p9), %s14919_s14, %s10882_s22 }
  0x13   : > { %v11049_v0 = vld [vmem:[%s14959_s1 + $0x4c] ss:$12 sps:$4 sm:$0x3f]   ;;  %vm1221_vm0 = vcmask 1045504   ;;  %v10944_v2 = vmov 0.0   ;;  %v10945_v6 = vmov 0  }
  0x14   : > { %v9716_v1 = vld [vmem:[%s14959_s1 + $0x48] ss:$12 sps:$4 sm:$0x3f]   ;;  %8086 = vmatprep.subr.msk.bf16.mxu0 %vm1221_vm0, %v11049_v0  ;;  %9264 = vmatprep.subr.bf16.mxu1 %v10944_v2  ;;  %v9717_v4 = vld [vmem:[%s14959_s1 + $0x20] ss:$12 sps:$4 sm:$0x3f]   ;;  %p10884_p12 = pnand %p10883_p11, %p11036_p5 }
  0x15   : > { %v11058_v3 = vsel %vm1221_vm0, %v9716_v1, 0  ;;  %v11066_v5 = vld [vmem:[%s14959_s1 + $0x34] ss:$12 sps:$4 sm:$0xff]   ;;  %1263 = vmatprep.mubr.bf16.mxu0 %v10945_v6  ;;  %v11073_v7 = vld [vmem:[%s14959_s1 + $0x30] ss:$12 sps:$4 sm:$0xff]   ;;  %v11076_v8 = vsel %vm1221_vm0, %v9717_v4, 0 }
  0x16   : > { %1244 = vmatpush1.bf16.msra.mxu0 %v11058_v3  ;;  %v11082_v9 = vld [vmem:[%s14959_s1 + $0x8] ss:$12 sps:$4 sm:$0xff]   ;;  %9265 = vmatpush3.bf16.msra.mxu1 %v11076_v8  ;;  %vm10946_vm1 = vmmov 0   ;;  %s326_s21 = scalar_select %p325_p10, %s11019_s13, 1  ;;  %vm1217_vm2 = vcmask 228352   ;;  %vm6985_vm3 = vcmask 523264  }
  0x17   : > { %1245 = vmatprep.subr.bf16.mxu0 %v11066_v5  ;;  %9268 = vmatprep.mubr.msk.bf16.mxu1 %vm10946_vm1, %v10944_v2  ;;  %v9724_v10 = vld [vmem:[%s14959_s1 + $0x50] ss:$12 sps:$4 sm:$0x3f]   ;;  %v9725_v11 = vld [vmem:[%s14959_s1 + $0x80] ss:$12 sps:$4 sm:$0x3f]   ;;  %p10885_p13 = pneg %p10884_p12 }
  0x18   : > { %9266 = vmatprep.subr.bf16.mxu1 %v10944_v2  ;;  %s8703_s26 = sshll.u32 %s326_s21, 5  ;;  %v11109_v13 = vsel %vm1221_vm0, %v9724_v10, 0  ;;  %v11115_v15 = vsel %vm1221_vm0, %v9725_v11, 0  ;;  %v11120_v16 = vld [vmem:[%s14959_s1 + $0x38] ss:$12 sps:$4 sm:$0xff]   ;;  %s8006_s21 = scalar_lea.sflag [#allocation3], %s323_s24 }
  0x19   : > { %s11102_s29 = scalar_lea.vmem %s14958_s0, %s8703_s26  ;;  %v11127_v17 = vld [vmem:[%s14959_s1 + $0x68] ss:$12 sps:$4 sm:$0xff]   ;;  %v9731_v19 = vld [vmem:[%s14959_s1 + $0x18] ss:$12 sps:$4 sm:$0x3f]   ;;  %s10947_s13 = smov [#allocation2]  }
  0x1a   : > { %1246 = vmatpush1.bf16.msra.mxu0 %v11073_v7  ;;  %9267 = vmatpush3.bf16.msra.mxu1 %v11082_v9  ;;  %v11105_v12 = vld [vmem:[%s11102_s29 + $0x8] sm:$0xff]   ;;  %v11112_v14 = vld [vmem:[%s11102_s29] sm:$0xff]   ;;  %v11151_v21 = vld [vmem:[%s11102_s29 + $0x10] sm:$0xff]   ;;  %v11155_v22 = vsel %vm1221_vm0, %v9731_v19, 0  ;;  %s10886_s23 = sshll.u32 %s10947_s13, 4  ;;  %s10887_s23 = int_to_ptr.vmem [resolvable:$false] %s10886_s23 }
  0x1b   : > { %9256 = vmatprep.subr.bf16.mxu0 %v10944_v2  ;;  %9272 = vmatprep.subr.bf16.mxu1 %v10944_v2  ;;  %v11135_v18 = vld [vmem:[%s14959_s1 + $0x1c] ss:$12 sps:$4 sm:$0x3f]   ;;  %v9732_v20 = vld [vmem:[%s14959_s1 + $0xe0] ss:$12 sps:$4 sm:$0x3f]   ;;  %p10889_p0 = scmp.lt.s32.totalorder %s14919_s14, %s10887_s23 }
  0x1c   : > { %v11163_v23 = vld [vmem:[%s14959_s1 + $0x4] ss:$12 sps:$4 sm:$0xff]   ;;  %v11167_v24 = vsel %vm1221_vm0, %v9732_v20, 0  ;;  %v11172_v25 = vld [vmem:[%s14959_s1] ss:$12 sps:$4 sm:$0xff]   ;;  %v9765_v53 = vld [vmem:[%s11102_s29 + $0x18] sm:$0xff]  }
  0x1d   : > { %8087 = vmatmul.mubr.msk.bf16.vlgmr.msra.gmra.mxu0 %vm1217_vm2, %v11105_v12  ;;  %9269 = vmatmul.mubr.msk.bf16.vlgmr.msra.gmra.mxu1 %vm1217_vm2, %v11112_v14  ;;  %v11179_v26 = vld [vmem:[%s14959_s1 + $0x7c] ss:$12 sps:$4 sm:$0x3f]   ;;  %v9739_v27 = vld [vmem:[%s14959_s1 + $0x78] ss:$12 sps:$4 sm:$0x3f]  }
  0x1e   : > { %9257 = vmatpush3.bf16.msra.mxu0 %v11109_v13  ;;  %9273 = vmatpush3.bf16.msra.mxu1 %v11115_v15  ;;  %v11190_v28 = vld [vmem:[%s14959_s1 + $0xc8] ss:$12 sps:$4 sm:$0xff]   ;;  %v9740_v29 = vld [vmem:[%s14959_s1 + $0xb0] ss:$12 sps:$4 sm:$0x3f]   ;;  %v11206_v30 = vsel %vm1221_vm0, %v9739_v27, 0 }
  0x1f   : > { %9258 = vmatprep.subr.bf16.mxu0 %v10944_v2  ;;  %9274 = vmatprep.subr.bf16.mxu1 %v10944_v2  ;;  %v11211_v31 = vld [vmem:[%s14959_s1 + $0x64] ss:$12 sps:$4 sm:$0xff]   ;;  %v11215_v32 = vsel %vm1221_vm0, %v9740_v29, 0  ;;  %v11222_v33 = vld [vmem:[%s14959_s1 + $0x60] ss:$12 sps:$4 sm:$0xff]   ;;  %s10888_s25 = scalar_lea.vmem %s10887_s23, 32 }
  0x20   : > { %9260 = vmatprep.mubr.msk.bf16.mxu0 %vm10946_vm1, %v10944_v2  ;;  %9276 = vmatprep.mubr.msk.bf16.mxu1 %vm10946_vm1, %v10944_v2  ;;  %v11230_v34 = vld [vmem:[%s14959_s1 + $0x98] ss:$12 sps:$4 sm:$0xff]   ;;  %v11235_v35 = vld [vmem:[%s14959_s1 + $0xdc] ss:$12 sps:$4 sm:$0x3f]   ;;  %p10890_p1 = scmp.lt.s32.totalorder %s10888_s25, %s10882_s22 }
  0x21   : > { %v9747_v36 = vld [vmem:[%s14959_s1 + $0xd8] ss:$12 sps:$4 sm:$0x3f]   ;;  %v9748_v37 = vld [vmem:[%s14959_s1 + $0x110] ss:$12 sps:$4 sm:$0x3f]  }
  0x22   : > { %9259 = vmatpush3.bf16.msra.mxu0 %v11120_v16  ;;  %9275 = vmatpush3.bf16.msra.mxu1 %v11127_v17  ;;  %v11253_v38 = vld [vmem:[%s14959_s1 + $0xc4] ss:$12 sps:$4 sm:$0xff]   ;;  %v11259_v39 = vsel %vm1221_vm0, %v9747_v36, 0  ;;  %v11263_v40 = vsel %vm1221_vm0, %v9748_v37, 0  ;;  %v11268_v41 = vld [vmem:[%s14959_s1 + $0xc0] ss:$12 sps:$4 sm:$0xff]   ;;  %p10891_p2 = por %p10890_p1, %p10889_p0 }
  0x23   : > { %8096 = vmatprep.subr.msk.bf16.mxu0 %vm1221_vm0, %v11135_v18  ;;  %9280 = vmatprep.subr.bf16.mxu1 %v10944_v2  ;;  %v11275_v42 = vld [vmem:[%s14959_s1 + $0xf8] ss:$12 sps:$4 sm:$0xff]   ;;  %v9755_v44 = vld [vmem:[%s14959_s1 + $0xa8] ss:$12 sps:$4 sm:$0x3f]  }
  0x24   : > { %v11280_v43 = vld [vmem:[%s14959_s1 + $0xac] ss:$12 sps:$4 sm:$0x3f]   ;;  %v11297_v45 = vld [vmem:[%s14959_s1 + $0x94] ss:$12 sps:$4 sm:$0xff]   ;;  %v11304_v46 = vsel %vm1221_vm0, %v9755_v44, 0  ;;  %p10892_p3 = pnand %p10891_p2, %p10885_p13 }
  0x25   : > { %9261 = vmatmul.mubr.msk.bf16.vlgmr.msra.gmra.mxu0 %vm1217_vm2, %v11105_v12  ;;  %9277 = vmatmul.mubr.msk.bf16.vlgmr.msra.gmra.mxu1 %vm1217_vm2, %v11151_v21  ;;  %v11310_v47 = vld [vmem:[%s14959_s1 + $0x90] ss:$12 sps:$4 sm:$0xff]   ;;  %v11317_v48 = vld [vmem:[%s14959_s1 + $0x10c] ss:$12 sps:$4 sm:$0x3f]  }
  0x26   : > { %1374 = vmatpush1.bf16.msra.mxu0 %v11155_v22  ;;  %9281 = vmatpush3.bf16.msra.mxu1 %v11167_v24  ;;  %v9761_v49 = vld [vmem:[%s14959_s1 + $0x108] ss:$12 sps:$4 sm:$0x3f]   ;;  %v11347_v52 = vld [vmem:[%s14959_s1 + $0xf0] ss:$12 sps:$4 sm:$0xff]  }
  0x27   : > { %1375 = vmatprep.subr.bf16.mxu0 %v11163_v23  ;;  %9282 = vmatprep.subr.bf16.mxu1 %v10944_v2  ;;  %v11334_v50 = vld [vmem:[%s14959_s1 + $0xf4] ss:$12 sps:$4 sm:$0xff]   ;;  %v11341_v51 = vsel %vm1221_vm0, %v9761_v49, 0  ;;  %v9768_v54 = vld [vmem:[%s14961_s3 + $0x2ec] ss:$12 sps:$4 sm:$0xff]  }
  0x28   : > { %1393 = vmatprep.mubr.bf16.mxu0 %v10945_v6  ;;  %9284 = vmatprep.mubr.msk.bf16.mxu1 %vm10946_vm1, %v10944_v2  ;;  %v9766_v55 = vld [vmem:[%s14961_s3 + $0x2e8] ss:$12 sps:$4 sm:$0xff]   ;;  %v9769_v57 = vld [vmem:[%s14961_s3 + $0x2d0] ss:$12 sps:$4 sm:$0xff]   ;;  %v9772_v59 = vld [vmem:[%s14961_s3 + $0x2b8] ss:$12 sps:$4 sm:$0xff]  }
  0x29   : > { %v9771_v56 = vld [vmem:[%s14961_s3 + $0x2d4] ss:$12 sps:$4 sm:$0xff]   ;;  %v9774_v58 = vld [vmem:[%s14961_s3 + $0x2bc] ss:$12 sps:$4 sm:$0xff]   ;;  %v9777_v60 = vld [vmem:[%s14961_s3 + $0x2a4] ss:$12 sps:$4 sm:$0xff]  }
  0x2a   : > { %1376 = vmatpush1.bf16.msra.mxu0 %v11172_v25  ;;  %9283 = vmatpush3.bf16.msra.mxu1 %v11190_v28  ;;  %v9775_v61 = vld [vmem:[%s14961_s3 + $0x2a0] ss:$12 sps:$4 sm:$0xff]   ;;  %v9778_v63 = vld [vmem:[%s14961_s3 + $0x468] ss:$12 sps:$4 sm:$0xff]   ;;  %v9784_v4 = vld [vmem:[%s14961_s3 + $0x450] ss:$12 sps:$4 sm:$0xff]  }
  0x2b   : > { %8106 = vmatprep.subr.msk.bf16.mxu0 %vm1221_vm0, %v11179_v26  ;;  %9288 = vmatprep.subr.bf16.mxu1 %v10944_v2  ;;  %v9780_v62 = vld [vmem:[%s14961_s3 + $0x46c] ss:$12 sps:$4 sm:$0xff]   ;;  %v9781_v1 = vld [vmem:[%s14961_s3 + $0x288] ss:$12 sps:$4 sm:$0xff]   ;;  %v9833_v36 = vld [vmem:[%s14961_s3 + $0x330] ss:$12 sps:$4 sm:$0xff]  }
  0x2c   : > { %v9795_v10 = vld [vmem:[%s14961_s3 + $0x25c] ss:$12 sps:$4 sm:$0xff]   ;;  %v9793_v11 = vld [vmem:[%s14961_s3 + $0x258] ss:$12 sps:$4 sm:$0xff]   ;;  %v9810_v20 = vld [vmem:[%s14961_s3 + $0x3f4] ss:$12 sps:$4 sm:$0xff]  }
  0x2d   : > { %8097 = vmatmul.mubr.msk.bf16.vlgmr.msra.gmra.mxu0 %vm1217_vm2, %v11112_v14  ;;  %9285 = vmatmul.mubr.msk.bf16.vlgmr.msra.gmra.mxu1 %vm1217_vm2, %v11105_v12  ;;  %v9805_v19 = vld [vmem:[%s14961_s3 + $0x3a8] ss:$12 sps:$4 sm:$0xff]   ;;  %v9817_v27 = vld [vmem:[%s14961_s3 + $0x378] ss:$12 sps:$4 sm:$0xff]   ;;  %v9820_v29 = vld [vmem:[%s14961_s3 + $0x3c0] ss:$12 sps:$4 sm:$0xff]  }
  0x2e   : > { %1504 = vmatpush1.bf16.msra.mxu0 %v11206_v30  ;;  %9289 = vmatpush3.bf16.msra.mxu1 %v11215_v32  ;;  %v9840_v37 = vld [vmem:[%s14961_s3 + $0x31c] ss:$12 sps:$4 sm:$0xff]  }
  0x2f   : > { %1505 = vmatprep.subr.bf16.mxu0 %v11211_v31  ;;  %9290 = vmatprep.subr.bf16.mxu1 %v10944_v2 }
  0x30   : > { %1523 = vmatprep.mubr.bf16.mxu0 %v10945_v6  ;;  %9292 = vmatprep.mubr.msk.bf16.mxu1 %vm10946_vm1, %v10944_v2 }
  0x32   : > { %1506 = vmatpush1.bf16.msra.mxu0 %v11222_v33  ;;  %9291 = vmatpush3.bf16.msra.mxu1 %v11230_v34 }
  0x33   : > { %8115 = vmatprep.subr.msk.bf16.mxu0 %vm1221_vm0, %v11235_v35  ;;  %9296 = vmatprep.subr.bf16.mxu1 %v10944_v2 }
  0x35   : > { %8107 = vmatmul.mubr.msk.bf16.vlgmr.msra.gmra.mxu0 %vm1217_vm2, %v11151_v21  ;;  %9293 = vmatmul.mubr.msk.bf16.vlgmr.msra.gmra.mxu1 %vm1217_vm2, %v11112_v14 }
  0x36   : > { %1632 = vmatpush1.bf16.msra.mxu0 %v11259_v39  ;;  %9297 = vmatpush3.bf16.msra.mxu1 %v11263_v40 }
  0x37   : > { %1633 = vmatprep.subr.bf16.mxu0 %v11253_v38  ;;  %9298 = vmatprep.subr.bf16.mxu1 %v10944_v2 }
  0x38   : > { %1651 = vmatprep.mubr.bf16.mxu0 %v10945_v6  ;;  %9300 = vmatprep.mubr.msk.bf16.mxu1 %vm10946_vm1, %v10944_v2 }
  0x3a   : > { %1634 = vmatpush1.bf16.msra.mxu0 %v11268_v41  ;;  %9299 = vmatpush3.bf16.msra.mxu1 %v11275_v42 }
  0x3b   : > { %8124 = vmatprep.subr.msk.bf16.mxu0 %vm1221_vm0, %v11280_v43  ;;  %9304 = vmatprep.subr.bf16.mxu1 %v10944_v2 }
  0x3d   : > { %8116 = vmatmul.mubr.msk.bf16.vlgmr.msra.gmra.mxu0 %vm1217_vm2, %v11105_v12  ;;  %9301 = vmatmul.mubr.msk.bf16.vlgmr.msra.gmra.mxu1 %vm1217_vm2, %v11151_v21 }
  0x3e   : > { %1754 = vmatpush1.bf16.msra.mxu0 %v11304_v46  ;;  %9305 = vmatpush3.bf16.msra.mxu1 %v11109_v13  ;;  %v9796_v13 = vld [vmem:[%s14961_s3 + $0x420] ss:$12 sps:$4 sm:$0xff]  }
  0x3f   : > { %1755 = vmatprep.subr.bf16.mxu0 %v11297_v45  ;;  %9306 = vmatprep.subr.bf16.mxu1 %v10944_v2 }
  0x40   : > { %1773 = vmatprep.mubr.bf16.mxu0 %v10945_v6  ;;  %9308 = vmatprep.mubr.msk.bf16.mxu1 %vm10946_vm1, %v10944_v2 }
  0x42   : > { %1756 = vmatpush1.bf16.msra.mxu0 %v11310_v47  ;;  %9307 = vmatpush3.bf16.msra.mxu1 %v11120_v16  ;;  %v9804_v16 = vld [vmem:[%s14961_s3 + $0x40c] ss:$12 sps:$4 sm:$0xff]  }
  0x43   : > { %8133 = vmatprep.subr.msk.bf16.mxu0 %vm1221_vm0, %v11317_v48  ;;  %9312 = vmatprep.subr.bf16.mxu1 %v10944_v2 }
  0x45   : > { %8125 = vmatmul.mubr.msk.bf16.vlgmr.msra.gmra.mxu0 %vm1217_vm2, %v11112_v14  ;;  %9309 = vmatmul.mubr.msk.bf16.vlgmr.msra.gmra.mxu1 %vm1217_vm2, %v11151_v21  ;;  %v9801_v14 = vld [vmem:[%s14961_s3 + $0x244] ss:$12 sps:$4 sm:$0xff]  }
  0x46   : > { %1876 = vmatpush1.bf16.msra.mxu0 %v11341_v51  ;;  %9313 = vmatpush3.bf16.msra.mxu1 %v11076_v8  ;;  %v9792_v8 = vld [vmem:[%s14961_s3 + $0x43c] ss:$12 sps:$4 sm:$0xff]  }
  0x47   : > { %1877 = vmatprep.subr.bf16.mxu0 %v11334_v50  ;;  %9314 = vmatprep.subr.bf16.mxu1 %v10944_v2 }
  0x48   : > { %1895 = vmatprep.mubr.bf16.mxu0 %v10945_v6  ;;  %9316 = vmatprep.mubr.msk.bf16.mxu1 %vm10946_vm1, %v10944_v2 }
  0x4a   : > { %1878 = vmatpush1.bf16.msra.mxu0 %v11347_v52  ;;  %9315 = vmatpush3.bf16.msra.mxu1 %v11082_v9  ;;  %v9790_v9 = vld [vmem:[%s14961_s3 + $0x438] ss:$12 sps:$4 sm:$0xff]  }
  0x4b   : > { %8136 = vmatprep.subr.msk.bf16.mxu0 %vm1221_vm0, %v11049_v0  ;;  %9320 = vmatprep.subr.bf16.mxu1 %v10944_v2  ;;  %v9783_v0 = vld [vmem:[%s14961_s3 + $0x28c] ss:$12 sps:$4 sm:$0xff]  }
  0x4d   : > { %8134 = vmatmul.mubr.msk.bf16.vlgmr.msra.gmra.mxu0 %vm1217_vm2, %v11151_v21  ;;  %9317 = vmatmul.mubr.msk.bf16.vlgmr.msra.gmra.mxu1 %vm1217_vm2, %v11105_v12 }
  0x4e   : > { %1972 = vmatpush1.bf16.msra.mxu0 %v11058_v3  ;;  %9321 = vmatpush3.bf16.msra.mxu1 %v11115_v15  ;;  %v9786_v3 = vld [vmem:[%s14961_s3 + $0x454] ss:$12 sps:$4 sm:$0xff]  }
  0x4f   : > { %1973 = vmatprep.subr.bf16.mxu0 %v11066_v5  ;;  %9322 = vmatprep.subr.bf16.mxu1 %v10944_v2  ;;  %v9789_v5 = vld [vmem:[%s14961_s3 + $0x274] ss:$12 sps:$4 sm:$0xff]  }
  0x50   : > { %1991 = vmatprep.mubr.bf16.mxu0 %v10945_v6  ;;  %9324 = vmatprep.mubr.msk.bf16.mxu1 %vm10946_vm1, %v10944_v2  ;;  %v9799_v15 = vld [vmem:[%s14961_s3 + $0x240] ss:$12 sps:$4 sm:$0xff]  }
  0x52   : > { %1974 = vmatpush1.bf16.msra.mxu0 %v11073_v7  ;;  %9323 = vmatpush3.bf16.msra.mxu1 %v11127_v17  ;;  %v9787_v7 = vld [vmem:[%s14961_s3 + $0x270] ss:$12 sps:$4 sm:$0xff]   ;;  %v9802_v17 = vld [vmem:[%s14961_s3 + $0x408] ss:$12 sps:$4 sm:$0xff]  }
  0x53   : > { %8139 = vmatprep.subr.msk.bf16.mxu0 %vm1221_vm0, %v11135_v18  ;;  %9328 = vmatprep.subr.bf16.mxu1 %v10944_v2  ;;  %v9807_v18 = vld [vmem:[%s14961_s3 + $0x3ac] ss:$12 sps:$4 sm:$0xff]  }
  0x55   : > { %8137 = vmatmul.mubr.msk.bf16.vlgmr.msra.gmra.mxu0 %vm1217_vm2, %v11151_v21  ;;  %9325 = vmatmul.mubr.msk.bf16.vlgmr.msra.gmra.mxu1 %vm1217_vm2, %v9765_v53 }
  0x56   : > { %2056 = vmatpush1.bf16.msra.mxu0 %v11155_v22  ;;  %9329 = vmatpush3.bf16.msra.mxu1 %v11167_v24  ;;  %v9813_v22 = vld [vmem:[%s14961_s3 + $0x394] ss:$12 sps:$4 sm:$0xff]   ;;  %v9816_v24 = vld [vmem:[%s14961_s3 + $0x3dc] ss:$12 sps:$4 sm:$0xff]  }
  0x57   : > { %2057 = vmatprep.subr.bf16.mxu0 %v11163_v23  ;;  %9330 = vmatprep.subr.bf16.mxu1 %v10944_v2  ;;  %v9811_v23 = vld [vmem:[%s14961_s3 + $0x390] ss:$12 sps:$4 sm:$0xff]  }
  0x58   : > { %2075 = vmatprep.mubr.bf16.mxu0 %v10945_v6  ;;  %9332 = vmatprep.mubr.msk.bf16.mxu1 %vm10946_vm1, %v10944_v2 }
  0x5a   : > { %2058 = vmatpush1.bf16.msra.mxu0 %v11172_v25  ;;  %9331 = vmatpush3.bf16.msra.mxu1 %v11190_v28  ;;  %v9814_v25 = vld [vmem:[%s14961_s3 + $0x3d8] ss:$12 sps:$4 sm:$0xff]  }
  0x5b   : > { %8143 = vmatprep.subr.msk.bf16.mxu0 %vm1221_vm0, %v11179_v26  ;;  %9336 = vmatprep.subr.bf16.mxu1 %v10944_v2  ;;  %v9819_v26 = vld [vmem:[%s14961_s3 + $0x37c] ss:$12 sps:$4 sm:$0xff]   ;;  %v9822_v28 = vld [vmem:[%s14961_s3 + $0x3c4] ss:$12 sps:$4 sm:$0xff]  }
  0x5d   : > { %8140 = vmatmul.mubr.msk.bf16.vlgmr.msra.gmra.mxu0 %vm1217_vm2, %v11105_v12  ;;  %9333 = vmatmul.mubr.msk.bf16.vlgmr.msra.gmra.mxu1 %vm1217_vm2, %v11151_v21 }
  0x5e   : > { %2148 = vmatpush1.bf16.msra.mxu0 %v11206_v30  ;;  %9337 = vmatpush3.bf16.msra.mxu1 %v11215_v32  ;;  %v9825_v30 = vld [vmem:[%s14961_s3 + $0x364] ss:$12 sps:$4 sm:$0xff]  }
  0x5f   : > { %2149 = vmatprep.subr.bf16.mxu0 %v11211_v31  ;;  %9338 = vmatprep.subr.bf16.mxu1 %v10944_v2  ;;  %v9823_v31 = vld [vmem:[%s14961_s3 + $0x360] ss:$12 sps:$4 sm:$0xff]   ;;  %v9826_v32 = vld [vmem:[%s14961_s3 + $0x3b0] ss:$12 sps:$4 sm:$0xff]  }
  0x60   : > { %2167 = vmatprep.mubr.bf16.mxu0 %v10945_v6  ;;  %9340 = vmatprep.mubr.msk.bf16.mxu1 %vm10946_vm1, %v10944_v2 }
  0x62   : > { %2150 = vmatpush1.bf16.msra.mxu0 %v11222_v33  ;;  %9339 = vmatpush3.bf16.msra.mxu1 %v11230_v34  ;;  %v9830_v33 = vld [vmem:[%s14961_s3 + $0x34c] ss:$12 sps:$4 sm:$0xff]   ;;  %v9828_v34 = vld [vmem:[%s14961_s3 + $0x348] ss:$12 sps:$4 sm:$0xff]  }
  0x63   : > { %8146 = vmatprep.subr.msk.bf16.mxu0 %vm1221_vm0, %v11235_v35  ;;  %9344 = vmatprep.subr.bf16.mxu1 %v10944_v2  ;;  %v9835_v35 = vld [vmem:[%s14961_s3 + $0x334] ss:$12 sps:$4 sm:$0xff]  }
  0x65   : > { %8144 = vmatmul.mubr.msk.bf16.vlgmr.msra.gmra.mxu0 %vm1217_vm2, %v9765_v53  ;;  %9341 = vmatmul.mubr.msk.bf16.vlgmr.msra.gmra.mxu1 %vm1217_vm2, %v11105_v12 }
  0x66   : > { %2244 = vmatpush1.bf16.msra.mxu0 %v11259_v39  ;;  %9345 = vmatpush3.bf16.msra.mxu1 %v11263_v40  ;;  %v9845_v39 = vld [vmem:[%s14961_s3 + $0x304] ss:$12 sps:$4 sm:$0xff]   ;;  %v9843_v40 = vld [vmem:[%s14961_s3 + $0x300] ss:$12 sps:$4 sm:$0xff]  }
  0x67   : > { %2245 = vmatprep.subr.bf16.mxu0 %v11253_v38  ;;  %9346 = vmatprep.subr.bf16.mxu1 %v10944_v2  ;;  %v9838_v38 = vld [vmem:[%s14961_s3 + $0x318] ss:$12 sps:$4 sm:$0xff]  }
  0x68   : > { %2263 = vmatprep.mubr.bf16.mxu0 %v10945_v6  ;;  %9348 = vmatprep.mubr.msk.bf16.mxu1 %vm10946_vm1, %v10944_v2 }
  0x6a   : > { %2246 = vmatpush1.bf16.msra.mxu0 %v11268_v41  ;;  %9347 = vmatpush3.bf16.msra.mxu1 %v11275_v42 }
  0x6b   : > { %8149 = vmatprep.subr.msk.bf16.mxu0 %vm1221_vm0, %v11280_v43  ;;  %2960 = vmatprep.subr.bf16.mxu1 %v9780_v62 }
  0x6d   : > { %8147 = vmatmul.mubr.msk.bf16.vlgmr.msra.gmra.mxu0 %vm1217_vm2, %v11151_v21  ;;  %9349 = vmatmul.mubr.msk.bf16.vlgmr.msra.gmra.mxu1 %vm1217_vm2, %v9765_v53  ;;  %v9808_v21 = vld [vmem:[%s14961_s3 + $0x3f0] ss:$12 sps:$4 sm:$0xff]  }
  0x6e   : > { %2328 = vmatpush1.bf16.msra.mxu0 %v11304_v46  ;;  %2347 = vmatprep.mubr.bf16.mxu0 %v10945_v6 }
  0x6f   : > { %2329 = vmatprep.subr.bf16.mxu0 %v11297_v45  ;;  %2992 = vmatprep.mubr.bf16.mxu1 %v10945_v6 }
  0x70   : > { %2961 = vmatpush1.bf16.msra.mxu1 %v9778_v63 }
  0x71   : > { %2962 = vmatprep.subr.bf16.mxu1 %v9786_v3 }
  0x72   : > { %2330 = vmatpush1.bf16.msra.mxu0 %v11310_v47 }
  0x73   : > { %8152 = vmatprep.subr.msk.bf16.mxu0 %vm1221_vm0, %v11317_v48 }
  0x74   : > { %2963 = vmatpush1.bf16.msra.mxu1 %v9784_v4 }
  0x75   : > { %8150 = vmatmul.mubr.msk.bf16.vlgmr.msra.gmra.mxu0 %vm1217_vm2, %v11105_v12  ;;  %2964 = vmatprep.subr.bf16.mxu1 %v9792_v8  ;;  %v9798_v12 = vld [vmem:[%s14961_s3 + $0x424] ss:$12 sps:$4 sm:$0xff]  }
  0x76   : > { %2412 = vmatpush1.bf16.msra.mxu0 %v11341_v51  ;;  %2431 = vmatprep.mubr.bf16.mxu0 %v10945_v6 }
  0x77   : > { %2413 = vmatprep.subr.bf16.mxu0 %v11334_v50 }
  0x78   : > { %2965 = vmatpush1.bf16.msra.mxu1 %v9790_v9 }
  0x79   : > { %2966 = vmatprep.subr.bf16.mxu1 %v9798_v12 }
  0x7a   : > { %2414 = vmatpush1.bf16.msra.mxu0 %v11347_v52 }
  0x7b   : > { %2919 = vmatprep.subr.bf16.mxu0 %v9768_v54 }
  0x7c   : > { %2967 = vmatpush1.bf16.msra.mxu1 %v9796_v13 }
  0x7d   : > { %8153 = vmatmul.mubr.msk.bf16.vlgmr.msra.gmra.mxu0 %vm1217_vm2, %v9765_v53  ;;  %2968 = vmatprep.subr.bf16.mxu1 %v9804_v16 }
  0x7e   : > { %2920 = vmatpush1.bf16.msra.mxu0 %v9766_v55 }
  0x7f   : > { %2921 = vmatprep.subr.bf16.mxu0 %v9771_v56 }
  0x80   : > { %2969 = vmatpush1.bf16.msra.mxu1 %v9802_v17 }
  0x81   : > { %2970 = vmatprep.subr.bf16.mxu1 %v9810_v20 }
  0x82   : > { %2922 = vmatpush1.bf16.msra.mxu0 %v9769_v57 }
  0x83   : > { %2923 = vmatprep.subr.bf16.mxu0 %v9774_v58 }
  0x84   : > { %2971 = vmatpush1.bf16.msra.mxu1 %v9808_v21 }
  0x85   : > { %2972 = vmatprep.subr.bf16.mxu1 %v9816_v24 }
  0x86   : > { %2924 = vmatpush1.bf16.msra.mxu0 %v9772_v59 }
  0x87   : > { %2925 = vmatprep.subr.bf16.mxu0 %v9777_v60 }
  0x88   : > { %2973 = vmatpush1.bf16.msra.mxu1 %v9814_v25 }
  0x89   : > { %2974 = vmatprep.subr.bf16.mxu1 %v9822_v28 }
  0x8a   : > { %2926 = vmatpush1.bf16.msra.mxu0 %v9775_v61 }
  0x8b   : > { %2927 = vmatprep.subr.bf16.mxu0 %v9783_v0 }
  0x8c   : > { %2975 = vmatpush1.bf16.msra.mxu1 %v9820_v29 }
  0x8d   : > { %8740 = vmatprep.subr.bf16.mxu1 %v9826_v32 }
  0x8e   : > { %2928 = vmatpush1.bf16.msra.mxu0 %v9781_v1 }
  0x8f   : > { %2929 = vmatprep.subr.bf16.mxu0 %v9789_v5 }
  0x92   : > { %2930 = vmatpush1.bf16.msra.mxu0 %v9787_v7 }
  0x93   : > { %2931 = vmatprep.subr.bf16.mxu0 %v9795_v10 }
  0x96   : > { %2932 = vmatpush1.bf16.msra.mxu0 %v9793_v11 }
  0x97   : > { %2933 = vmatprep.subr.bf16.mxu0 %v9801_v14 }
  0x9a   : > { %2934 = vmatpush1.bf16.msra.mxu0 %v9799_v15 }
  0x9b   : > { %2935 = vmatprep.subr.bf16.mxu0 %v9807_v18 }
  0x9e   : > { %2936 = vmatpush2.bf16.msra.mxu0 %v9805_v19 }
  0x9f   : > { %2937 = vmatprep.subr.bf16.mxu0 %v9813_v22 }
  0xa2   : > { %2938 = vmatpush2.bf16.msra.mxu0 %v9811_v23 }
  0xa3   : > { %2939 = vmatprep.subr.bf16.mxu0 %v9819_v26 }
  0xa6   : > { %2940 = vmatpush2.bf16.msra.mxu0 %v9817_v27 }
  0xa7   : > { %2941 = vmatprep.subr.bf16.mxu0 %v9825_v30 }
  0xaa   : > { %2942 = vmatpush2.bf16.msra.mxu0 %v9823_v31 }
  0xab   : > { %2943 = vmatprep.subr.bf16.mxu0 %v9830_v33 }
  0xae   : > { %2944 = vmatpush2.bf16.msra.mxu0 %v9828_v34 }
  0xaf   : > { %2945 = vmatprep.subr.bf16.mxu0 %v9835_v35 }
  0xb2   : > { %2946 = vmatpush2.bf16.msra.mxu0 %v9833_v36 }
  0xb3   : > { %2947 = vmatprep.subr.bf16.mxu0 %v9840_v37 }
  0xb6   : > { %2948 = vmatpush2.bf16.msra.mxu0 %v9838_v38 }
  0xb7   : > { %2949 = vmatprep.subr.bf16.mxu0 %v9845_v39 }
  0xba   : > { %2950 = vmatpush2.bf16.msra.mxu0 %v9843_v40 }
  0xbb   : > { %9352 = vmatprep.subr.bf16.mxu0 %v10944_v2 }
  0xdd   : > { %v1265_v41 = vpop.f32.mrf.mxu0  ;;  %v1438_v42 = vpop.f32.mrf.mxu1 }
  0xdf   : > { %v1267_v43 = vpop.f32.mrf.mxu0  ;;  %v9270_v44 = vpop.f32.mrf.mxu1 }
  0xe1   : > { %v1269_v45 = vpop.f32.mrf.mxu0  ;;  %v1441_v46 = vpop.f32.mrf.mxu1 }
  0xe3   : > { %v11592_v47 = vpop.f32.mrf.mxu0  ;;  %v9271_v48 = vpop.f32.mrf.mxu1 }
  0xe5   : > { %v1308_v49 = vpop.f32.mrf.mxu0  ;;  %v1568_v51 = vpop.f32.mrf.mxu1 }
  0xe6   : > { %v1439_v50 = vadd.f32 %v1438_v42, %v1308_v49 }
  0xe7   : > { %v9262_v52 = vpop.f32.mrf.mxu0  ;;  %v9278_v54 = vpop.f32.mrf.mxu1 }
  0xe8   : > { %v11594_v53 = vadd.f32 %v1568_v51, %v1439_v50 }
  0xe9   : > { %v1311_v55 = vpop.f32.mrf.mxu0  ;;  %v1571_v57 = vpop.f32.mrf.mxu1 }
  0xea   : > { %v1442_v56 = vadd.f32 %v1441_v46, %v1311_v55 }
  0xeb   : > { %v9263_v58 = vpop.f32.mrf.mxu0  ;;  %v9279_v60 = vpop.f32.mrf.mxu1 }
  0xec   : > { %v11596_v59 = vadd.f32 %v1571_v57, %v1442_v56 }
  0xed   : > { %v1395_v61 = vpop.f32.mrf.mxu0  ;;  %v11598_v63 = vpop.f32.mrf.mxu1 }
  0xee   : > { %v1396_v62 = vadd.f32 %v1395_v61, %v1265_v41 }
  0xef   : > { %v1397_v0 = vpop.f32.mrf.mxu0  ;;  %v9286_v3 = vpop.f32.mrf.mxu1 }
  0xf0   : > { %v1398_v1 = vadd.f32 %v1397_v0, %v1267_v43 }
  0xf1   : > { %v1399_v4 = vpop.f32.mrf.mxu0  ;;  %v11600_v7 = vpop.f32.mrf.mxu1 }
  0xf2   : > { %v1400_v5 = vadd.f32 %v1399_v4, %v1269_v45 }
  0xf3   : > { %v11602_v8 = vpop.f32.mrf.mxu0  ;;  %v9287_v9 = vpop.f32.mrf.mxu1 }
  0xf5   : > { %v1525_v10 = vpop.f32.mrf.mxu0  ;;  %v1818_v12 = vpop.f32.mrf.mxu1 }
  0xf6   : > { %v11604_v11 = vadd.f32 %v1525_v10, %v1396_v62 }
  0xf7   : > { %v1527_v13 = vpop.f32.mrf.mxu0  ;;  %v9294_v15 = vpop.f32.mrf.mxu1 }
  0xf8   : > { %v11606_v14 = vadd.f32 %v1527_v13, %v1398_v1  ;;  %v1819_v13 = vadd.f32 %v1818_v12, %v11598_v63 }
  0xf9   : > { %v1529_v16 = vpop.f32.mrf.mxu0  ;;  %v1821_v18 = vpop.f32.mrf.mxu1 }
  0xfa   : > { %v11608_v17 = vadd.f32 %v1529_v16, %v1400_v5  ;;  %v2496_v5 = vlaneseq }
  0xfb   : > { %v11610_v19 = vpop.f32.mrf.mxu0  ;;  %v9295_v20 = vpop.f32.mrf.mxu1 }
  0xfc   : > { %v11647_v20 = vshrl.u32 %v2496_v5, 7 }
  0xfd   : > { %v1653_v21 = vpop.f32.mrf.mxu0  ;;  %v1940_v22 = vpop.f32.mrf.mxu1 }
  0xff   : > { %v11612_v23 = vpop.f32.mrf.mxu0  ;;  %v9302_v24 = vpop.f32.mrf.mxu1 }
 0x101   : > { %v11614_v25 = vpop.f32.mrf.mxu0  ;;  %v1943_v26 = vpop.f32.mrf.mxu1 }
 0x103   : > { %v11616_v27 = vpop.f32.mrf.mxu0  ;;  %v9303_v28 = vpop.f32.mrf.mxu1 }
 0x105   : > { %v1775_v29 = vpop.f32.mrf.mxu0  ;;  %v2036_v30 = vpop.f32.mrf.mxu1 }
 0x106   : > { %v1776_v36 = vadd.f32 %v1775_v29, %v1653_v21  ;;  %v1949_v21 = vadd.f32 %v1940_v22, %v1819_v13  ;;  %v11659_v22 = vld [vmem:[%s14960_s2] sm:$0x7] }
 0x107   : > { %v11618_v31 = vpop.f32.mrf.mxu0  ;;  %v9310_v32 = vpop.f32.mrf.mxu1 }
 0x108   : > { %v1822_v32 = vadd.f32 %v1821_v18, %v11600_v7 }
 0x109   : > { %v11620_v33 = vpop.f32.mrf.mxu0  ;;  %v2039_v34 = vpop.f32.mrf.mxu1 }
 0x10a   : > { %v1952_v63 = vadd.f32 %v1943_v26, %v1822_v32  ;;  %v1778_v32 = vadd.f32 %v11618_v31, %v11612_v23 }
 0x10b   : > { %v11622_v35 = vpop.f32.mrf.mxu0  ;;  %v9311_v37 = vpop.f32.mrf.mxu1 }
 0x10c   : > { %v1782_v23 = vadd.f32 %v11622_v35, %v11616_v27 }
 0x10d   : > { %v1897_v38 = vpop.f32.mrf.mxu0  ;;  %v2120_v40 = vpop.f32.mrf.mxu1 }
 0x10e   : > { %v11624_v39 = vadd.f32 %v1897_v38, %v1776_v36  ;;  %v2121_v24 = vadd.f32 %v2120_v40, %v2036_v30 }
 0x10f   : > { %v11626_v41 = vpop.f32.mrf.mxu0  ;;  %v9318_v43 = vpop.f32.mrf.mxu1 }
 0x110   : > { %v1953_v42 = vmax.f32 %v11604_v11, %v11624_v39  ;;  %v2506_v43 = vsub.s32 2, %v11647_v20 }
 0x111   : > { %v11630_v44 = vpop.f32.mrf.mxu0  ;;  %v2123_v45 = vpop.f32.mrf.mxu1 }
 0x112   : > { %v2124_v12 = vadd.f32 %v2123_v45, %v2039_v34 }
 0x113   : > { %v11632_v46 = vpop.f32.mrf.mxu0  ;;  %v9319_v48 = vpop.f32.mrf.mxu1 }
 0x114   : > { %v1955_v48 = vmax.f32 %v11594_v53, %v1949_v21  ;;  %v2507_v53 = vrot.slane %v11659_v22, %v2506_v43 }
 0x115   : > { %v11634_v49 = vpop.f32.mrf.mxu0  ;;  %v2212_v50 = vpop.f32.mrf.mxu1 }
 0x116   : > { %v2221_v36 = vadd.f32 %v2212_v50, %v2121_v24 }
 0x117   : > { %v11636_v51 = vpop.f32.mrf.mxu0  ;;  %v9326_v52 = vpop.f32.mrf.mxu1 }
 0x118   : > { %v2227_v40 = vmax.f32 %v1955_v48, %v2221_v36  ;;  %v1402_v36 = vadd.f32 %v11602_v8, %v11592_v47  ;;  %v2502_v8 = vsub.s32 1, %v11647_v20 }
 0x119   : > { %v11638_v54 = vpop.f32.mrf.mxu0  ;;  %v2215_v55 = vpop.f32.mrf.mxu1 }
 0x11a   : > { %v2224_v7 = vadd.f32 %v2215_v55, %v2124_v12 }
 0x11b   : > { %v11640_v56 = vpop.f32.mrf.mxu0  ;;  %v9327_v57 = vpop.f32.mrf.mxu1 }
 0x11d   : > { %v2077_v58 = vpop.f32.mrf.mxu0  ;;  %v2308_v60 = vpop.f32.mrf.mxu1 }
 0x11e   : > { %v2078_v48 = vadd.f32 %v2077_v58, %v11634_v49 }
 0x11f   : > { %v2079_v61 = vpop.f32.mrf.mxu0  ;;  %v9334_v62 = vpop.f32.mrf.mxu1 }
 0x120   : > { %v2080_v12 = vadd.f32 %v2079_v61, %v11636_v51  ;;  %v1951_v61 = vadd.f32 %v11632_v46, %v1782_v23  ;;  %v9831_v46 = vld [vmem:[%s14961_s3 + $0x398] ss:$12 sps:$4 sm:$0xff]  }
 0x121   : > { %v11642_v0 = vpop.f32.mrf.mxu0  ;;  %v2311_v1 = vpop.f32.mrf.mxu1 }
 0x122   : > { %v2082_v27 = vadd.f32 %v11642_v0, %v11638_v54 }
 0x123   : > { %v11644_v3 = vpop.f32.mrf.mxu0  ;;  %v9335_v4 = vpop.f32.mrf.mxu1 }
 0x124   : > { %v1958_v4 = vmax.f32 %v11596_v59, %v1952_v63  ;;  %v2498_v59 = vsub.s32 0, %v11647_v20  ;;  %v1780_v63 = vadd.f32 %v11620_v33, %v11614_v25 }
 0x125   : > { %v2169_v9 = vpop.f32.mrf.mxu0  ;;  %v2392_v10 = vpop.f32.mrf.mxu1 }
 0x126   : > { %v2393_v52 = vadd.f32 %v2392_v10, %v2308_v60  ;;  %v2230_v45 = vmax.f32 %v1958_v4, %v2224_v7  ;;  %v2219_v31 = vadd.f32 %v2169_v9, %v2078_v48  ;;  %v2499_v47 = vrot.slane %v11659_v22, %v2498_v59  ;;  %v9827_v9 = vld [vmem:[%s14961_s3 + $0x2f0] ss:$12 sps:$4 sm:$0xff]  }
 0x127   : > { %v2171_v15 = vpop.f32.mrf.mxu0  ;;  %v9342_v16 = vpop.f32.mrf.mxu1  ;;  %v1950_v49 = vadd.f32 %v11630_v44, %v1780_v63 }
 0x128   : > { %v2220_v25 = vadd.f32 %v2171_v15, %v2080_v12  ;;  %v2225_v54 = vmax.f32 %v1953_v42, %v2219_v31 }
 0x129   : > { %v11649_v28 = vpop.f32.mrf.mxu0  ;;  %v2395_v29 = vpop.f32.mrf.mxu1 }
 0x12a   : > { %v2396_v5 = vadd.f32 %v2395_v29, %v2311_v1  ;;  %v2222_v0 = vadd.f32 %v11649_v28, %v2082_v27 }
 0x12b   : > { %v11652_v37 = vpop.f32.mrf.mxu0  ;;  %v9343_v38 = vpop.f32.mrf.mxu1 }
 0x12c   : > { %v1948_v38 = vadd.f32 %v11626_v41, %v1778_v32  ;;  %v1579_v41 = vadd.f32 %v11610_v19, %v1402_v36  ;;  %v2084_v19 = vadd.f32 %v11644_v3, %v11640_v56  ;;  %v1956_v3 = vmax.f32 %v11608_v17, %v1950_v49  ;;  %v9832_v17 = vld [vmem:[%s14961_s3 + $0x2d8] ss:$12 sps:$4 sm:$0xff]  }
 0x12d   : > { %v2265_v57 = vpop.f32.mrf.mxu0  ;;  %v2476_v30 = vpop.f32.mrf.mxu1 }
 0x12e   : > { %v2485_v18 = vadd.f32 %v2476_v30, %v2393_v52  ;;  %v1954_v58 = vmax.f32 %v11606_v14, %v1948_v38  ;;  %v1957_v28 = vmax.f32 %v1579_v41, %v1951_v61 }
 0x12f   : > { %v2267_v50 = vpop.f32.mrf.mxu0  ;;  %v9350_v62 = vpop.f32.mrf.mxu1 }
 0x130   : > { %v2491_v13 = vmax.f32 %v2227_v40, %v2485_v18  ;;  %v2226_v18 = vmax.f32 %v1954_v58, %v2220_v25  ;;  %v9847_v25 = vld [vmem:[%s14961_s3 + $0x290] ss:$12 sps:$4 sm:$0xff]  }
 0x131   : > { %v2269_v26 = vpop.f32.mrf.mxu0  ;;  %v2479_v34 = vpop.f32.mrf.mxu1 }
 0x132   : > { %v2488_v60 = vadd.f32 %v2479_v34, %v2396_v5  ;;  %v2513_v21 = vadd.f32 %v2507_v53, %v2491_v13  ;;  %v2223_v13 = vadd.f32 %v11652_v37, %v2084_v19  ;;  %v9836_v34 = vld [vmem:[%s14961_s3 + $0x380] ss:$12 sps:$4 sm:$0xff]  }
 0x133   : > { %v2271_v10 = vpop.f32.mrf.mxu0  ;;  %v9351_v16 = vpop.f32.mrf.mxu1 }
 0x134   : > { %v2494_v24 = vmax.f32 %v2230_v45, %v2488_v60  ;;  %v2519_v52 = vmax.f32 %v2513_v21, 0.0 }
 0x135   : > { %v2349_v55 = vpop.f32.mrf.mxu0 }
 0x136   : > { %v2516_v1 = vadd.f32 %v2507_v53, %v2494_v24  ;;  %v2350_v35 = vadd.f32 %v2349_v55, %v2265_v57  ;;  %v2229_v24 = vmax.f32 %v1957_v28, %v2223_v13  ;;  %v9856_v13 = vld [vmem:[%s14961_s3 + $0x248] ss:$12 sps:$4 sm:$0xff]   ;;  %v9861_v28 = vld [vmem:[%s14961_s3 + $0x410] ss:$12 sps:$4 sm:$0xff]  }
 0x137   : > { %v2351_v29 = vpop.f32.mrf.mxu0 }
 0x138   : > { %v2522_v30 = vmax.f32 %v2516_v1, 0.0  ;;  %v2352_v57 = vadd.f32 %v2351_v29, %v2267_v50  ;;  %v2503_v50 = vrot.slane %v11659_v22, %v2502_v8  ;;  %v9837_v22 = vld [vmem:[%s14961_s3 + $0x2c0] ss:$12 sps:$4 sm:$0xff]   ;;  %v9841_v29 = vld [vmem:[%s14961_s3 + $0x368] ss:$12 sps:$4 sm:$0xff]  }
 0x139   : > { %v2353_v40 = vpop.f32.mrf.mxu0 }
 0x13a   : > { %v11683_v33 = vpack.c.bf16 %v2522_v30, %v2519_v52  ;;  %v2354_v11 = vadd.f32 %v2353_v40, %v2269_v26  ;;  %v2228_v26 = vmax.f32 %v1956_v3, %v2222_v0  ;;  %v9842_v52 = vld [vmem:[%s14961_s3 + $0x2a8] ss:$12 sps:$4 sm:$0xff]   ;;  %v9846_v30 = vld [vmem:[%s14961_s3 + $0x350] ss:$12 sps:$4 sm:$0xff]   ;;  %v9851_v0 = vld [vmem:[%s14961_s3 + $0x320] ss:$12 sps:$4 sm:$0xff]  }
 0x13b   : > { %v2355_v51 = vpop.f32.mrf.mxu0  ;;  %v9852_v3 = vld [vmem:[%s14961_s3 + $0x458] ss:$12 sps:$4 sm:$0xff]  }
 0x13c   : > { %v3642_v44 = vshrl.u32 %v11683_v33, 16  ;;  %v3644_v15 = vshll.u32 %v11683_v33, 16  ;;  %v11697_v14 = vrot.slane %v11683_v33, 4  ;;  %v2356_v45 = vadd.f32 %v2355_v51, %v2271_v10  ;;  %v9848_v51 = vld [vmem:[%s14961_s3 + $0x338] ss:$12 sps:$4 sm:$0xff]  }
 0x13d   : > { %v2433_v7 = vpop.f32.mrf.mxu0 }
 0x13e   : > { %v2483_v56 = vadd.f32 %v2433_v7, %v2350_v35  ;;  %2993 = vmatmul.mubr.bf16.vlgmr.msra.gmra.mxu1 %v11697_v14  ;;  %v6174_v4 = vrot.slane %v3642_v44, 4  ;;  %v6175_v5 = vrot.slane %v3644_v15, 5 }
 0x13f   : > { %v2435_v62 = vpop.f32.mrf.mxu0  ;;  %8741 = vmatpush3.bf16.msra.mxu1 %v9827_v9  ;;  %v9849_v9 = vld [vmem:[%s14961_s3 + $0x470] ss:$12 sps:$4 sm:$0xff]  }
 0x140   : > { %v2489_v39 = vmax.f32 %v2225_v54, %v2483_v56  ;;  %v2484_v42 = vadd.f32 %v2435_v62, %v2352_v57  ;;  %8742 = vmatprep.subr.bf16.mxu1 %v9831_v46  ;;  %v11722_v37 = vor.u32 %v6175_v5, %v6174_v4  ;;  %v9850_v46 = vld [vmem:[%s14961_s3 + $0x278] ss:$12 sps:$4 sm:$0xff]   ;;  %v9853_v62 = vld [vmem:[%s14961_s3 + $0x260] ss:$12 sps:$4 sm:$0xff]   ;;  %v9854_v4 = vld [vmem:[%s14961_s3 + $0x308] ss:$12 sps:$4 sm:$0xff]  }
 0x141   : > { %v2437_v53 = vpop.f32.mrf.mxu0  ;;  %v9855_v5 = vld [vmem:[%s14961_s3 + $0x440] ss:$12 sps:$4 sm:$0xff]  }
 0x142   : > { %v2490_v60 = vmax.f32 %v2226_v18, %v2484_v42  ;;  %v2486_v16 = vadd.f32 %v2437_v53, %v2354_v11  ;;  %v2511_v55 = vadd.f32 %v2499_v47, %v2489_v39  ;;  %v9860_v11 = vld [vmem:[%s14961_s3 + $0xac] ss:$12 sps:$4 sm:$0xff]   ;;  %v9857_v39 = vld [vmem:[%s14961_s3 + $0x428] ss:$12 sps:$4 sm:$0xff]  }
 0x143   : > { %v2439_v21 = vpop.f32.mrf.mxu0  ;;  %8743 = vmatpush3.bf16.msra.mxu1 %v9832_v17  ;;  %v9858_v42 = vld [vmem:[%s14961_s3 + $0xa8] ss:$12 sps:$4 sm:$0xff]  }
 0x144   : > { %v2492_v32 = vmax.f32 %v2228_v26, %v2486_v16  ;;  %v2487_v1 = vadd.f32 %v2439_v21, %v2356_v45  ;;  %8744 = vmatprep.subr.bf16.mxu1 %v9836_v34  ;;  %v2512_v36 = vadd.f32 %v2503_v50, %v2490_v60  ;;  %v2517_v48 = vmax.f32 %v2511_v55, 0.0  ;;  %v9864_v17 = vld [vmem:[%s14961_s3 + $0x94] ss:$12 sps:$4 sm:$0xff]   ;;  %v9868_v53 = vld [vmem:[%s14961_s3 + $0x7c] ss:$12 sps:$4 sm:$0xff]  }
 0x145   : > { %v9865_v34 = vld [vmem:[%s14961_s3 + $0x3f8] ss:$12 sps:$4 sm:$0xff]   ;;  %v9869_v60 = vld [vmem:[%s14961_s3 + $0x3e0] ss:$12 sps:$4 sm:$0xff]   ;;  %v9873_v21 = vld [vmem:[%s14961_s3 + $0x3c8] ss:$12 sps:$4 sm:$0xff]  }
 0x146   : > { %v2514_v38 = vadd.f32 %v2499_v47, %v2492_v32  ;;  %v2493_v10 = vmax.f32 %v2229_v24, %v2487_v1  ;;  %v2518_v40 = vmax.f32 %v2512_v36, 0.0  ;;  %v9866_v26 = vld [vmem:[%s14961_s3 + $0x78] ss:$12 sps:$4 sm:$0xff]   ;;  %v9870_v16 = vld [vmem:[%s14961_s3 + $0x60] ss:$12 sps:$4 sm:$0xff]  }
 0x147   : > { %8745 = vmatpush3.bf16.msra.mxu1 %v9837_v22  ;;  %v9872_v45 = vld [vmem:[%s14961_s3 + $0x64] ss:$12 sps:$4 sm:$0xff]   ;;  %v9876_v24 = vld [vmem:[%s14961_s3 + $0x4c] ss:$12 sps:$4 sm:$0xff]   ;;  %v9874_v32 = vld [vmem:[%s14961_s3 + $0x48] ss:$12 sps:$4 sm:$0xff]  }
 0x148   : > { %v2520_v63 = vmax.f32 %v2514_v38, 0.0  ;;  %v2515_v12 = vadd.f32 %v2503_v50, %v2493_v10  ;;  %8746 = vmatprep.subr.bf16.mxu1 %v9841_v29  ;;  %v9862_v50 = vld [vmem:[%s14961_s3 + $0x90] ss:$12 sps:$4 sm:$0xff]   ;;  %v9879_v55 = vld [vmem:[%s14961_s3 + $0x22c] ss:$12 sps:$4 sm:$0xff]  }
 0x149   : > { %v9877_v1 = vld [vmem:[%s14961_s3 + $0x228] ss:$12 sps:$4 sm:$0xff]   ;;  %v9880_v29 = vld [vmem:[%s14961_s3 + $0x30] ss:$12 sps:$4 sm:$0xff]  }
 0x14a   : > { %v11736_v23 = vpack.c.bf16 %v2520_v63, %v2517_v48  ;;  %v2521_v31 = vmax.f32 %v2515_v12, 0.0  ;;  %v9882_v22 = vld [vmem:[%s14961_s3 + $0x34] ss:$12 sps:$4 sm:$0xff]   ;;  %v9883_v38 = vld [vmem:[%s14961_s3 + $0x210] ss:$12 sps:$4 sm:$0xff]  }
 0x14b   : > { %8747 = vmatpush3.bf16.msra.mxu1 %v9842_v52  ;;  %v9885_v36 = vld [vmem:[%s14961_s3 + $0x214] ss:$12 sps:$4 sm:$0xff]   ;;  %v9888_v10 = vld [vmem:[%s14961_s3 + $0x1c] ss:$12 sps:$4 sm:$0xff]   ;;  %v9886_v48 = vld [vmem:[%s14961_s3 + $0x18] ss:$12 sps:$4 sm:$0xff]  }
 0x14c   : > { %v3628_v47 = vshrl.u32 %v11736_v23, 16  ;;  %v3630_v41 = vshll.u32 %v11736_v23, 16  ;;  %v11740_v49 = vpack.c.bf16 %v2521_v31, %v2518_v40  ;;  %8748 = vmatprep.subr.bf16.mxu1 %v9846_v30  ;;  %v11754_v35 = vrot.slane %v11736_v23, 4  ;;  %v9891_v63 = vld [vmem:[%s14961_s3 + $0x1fc] ss:$12 sps:$4 sm:$0xff]  }
 0x14d   : > { %v9889_v12 = vld [vmem:[%s14961_s3 + $0x1f8] ss:$12 sps:$4 sm:$0xff]   ;;  %v9892_v30 = vld [vmem:[%s14961_s3] ss:$12 sps:$4 sm:$0xff]  }
 0x14e   : > { %v3635_v58 = vshrl.u32 %v11740_v49, 16  ;;  %v3637_v61 = vshll.u32 %v11740_v49, 16  ;;  %v11751_v27 = vrot.slane %v11740_v49, 4  ;;  %v6168_v19 = vrot.slane %v3628_v47, 4  ;;  %v9894_v52 = vld [vmem:[%s14961_s3 + $0x4] ss:$12 sps:$4 sm:$0xff]  }
 0x14f   : > { %v6169_v7 = vrot.slane %v3630_v41, 5  ;;  %8749 = vmatpush3.bf16.msra.mxu1 %v9847_v25  ;;  %v9897_v40 = vld [vmem:[%s14961_s3 + $0x1e4] ss:$12 sps:$4 sm:$0xff]   ;;  %v9895_v31 = vld [vmem:[%s14961_s3 + $0x1e0] ss:$12 sps:$4 sm:$0xff]  }
 0x150   : > { %2951 = vmatprep.mubr.bf16.mxu0 %v11751_v27  ;;  %v6171_v54 = vrot.slane %v3635_v58, 4  ;;  %3033 = vmatprep.mubr.bf16.mxu1 %v11751_v27  ;;  %v6172_v57 = vrot.slane %v3637_v61, 5  ;;  %v9900_v25 = vld [vmem:[%s14961_s3 + $0x16c] ss:$12 sps:$4 sm:$0xff]  }
 0x151   : > { %2952 = vmatmul.mubr.bf16.vlgmr.msra.gmra.mxu0 %v11754_v35  ;;  %v11776_v56 = vor.u32 %v6169_v7, %v6168_v19  ;;  %8750 = vmatprep.subr.bf16.mxu1 %v9848_v51  ;;  %v9898_v51 = vld [vmem:[%s14961_s3 + $0x168] ss:$12 sps:$4 sm:$0xff]  }
 0x152   : > { %9353 = vmatpush3.bf16.msra.mxu0 %v9849_v9  ;;  %9368 = vmatprep.mubr.msk.bf16.mxu0 %vm10946_vm1, %v10944_v2  ;;  %v11784_v18 = vor.u32 %v6172_v57, %v6171_v54  ;;  %v9903_v9 = vld [vmem:[%s14961_s3 + $0x1cc] ss:$12 sps:$4 sm:$0xff]   ;;  %v9901_v19 = vld [vmem:[%s14961_s3 + $0x1c8] ss:$12 sps:$4 sm:$0xff]  }
 0x153   : > { %9354 = vmatprep.subr.bf16.mxu0 %v10944_v2  ;;  %8751 = vmatpush3.bf16.msra.mxu1 %v9850_v46  ;;  %v9906_v7 = vld [vmem:[%s14961_s3 + $0x154] ss:$12 sps:$4 sm:$0xff]   ;;  %v9904_v46 = vld [vmem:[%s14961_s3 + $0x150] ss:$12 sps:$4 sm:$0xff]  }
 0x154   : > { %8752 = vmatprep.subr.bf16.mxu1 %v9851_v0  ;;  %v9909_v54 = vld [vmem:[%s14961_s3 + $0x1b4] ss:$12 sps:$4 sm:$0xff]   ;;  %v9907_v0 = vld [vmem:[%s14961_s3 + $0x1b0] ss:$12 sps:$4 sm:$0xff]  }
 0x155   : > { %v9912_v57 = vld [vmem:[%s14961_s3 + $0x13c] ss:$12 sps:$4 sm:$0xff]  }
 0x156   : > { %9355 = vmatpush3.bf16.msra.mxu0 %v9852_v3  ;;  %v9910_v3 = vld [vmem:[%s14961_s3 + $0x138] ss:$12 sps:$4 sm:$0xff]  }
 0x157   : > { %9356 = vmatprep.subr.bf16.mxu0 %v10944_v2  ;;  %8753 = vmatpush3.bf16.msra.mxu1 %v9853_v62  ;;  %v9915_v62 = vld [vmem:[%s14961_s3 + $0x19c] ss:$12 sps:$4 sm:$0xff]  }
 0x158   : > { %8754 = vmatprep.subr.bf16.mxu1 %v9854_v4  ;;  %v9913_v4 = vld [vmem:[%s14961_s3 + $0x198] ss:$12 sps:$4 sm:$0xff]  }
 0x15a   : > { %9357 = vmatpush3.bf16.msra.mxu0 %v9855_v5  ;;  %v9918_v5 = vld [vmem:[%s14961_s3 + $0x124] ss:$12 sps:$4 sm:$0xff]  }
 0x15b   : > { %9358 = vmatprep.subr.bf16.mxu0 %v10944_v2  ;;  %8755 = vmatpush3.bf16.msra.mxu1 %v9856_v13  ;;  %v9921_v13 = vld [vmem:[%s14961_s3 + $0x184] ss:$12 sps:$4 sm:$0xff]  }
 0x15c   : > { %3465 = vmatprep.subr.bf16.mxu1 %v9860_v11  ;;  %v9916_v11 = vld [vmem:[%s14961_s3 + $0x120] ss:$12 sps:$4 sm:$0xff]  }
 0x15e   : > { %9359 = vmatpush3.bf16.msra.mxu0 %v9857_v39  ;;  %3034 = vmatmul.mubr.bf16.vlgmr.msra.gmra.mxu1 %v11754_v35  ;;  %v9924_v39 = vld [vmem:[%s14961_s3 + $0x10c] ss:$12 sps:$4 sm:$0xff]  }
 0x15f   : > { %9360 = vmatprep.subr.bf16.mxu0 %v10944_v2  ;;  %3466 = vmatpush1.bf16.msra.mxu1 %v9858_v42  ;;  %v9919_v42 = vld [vmem:[%s14961_s3 + $0x180] ss:$12 sps:$4 sm:$0xff]  }
 0x160   : > { %3497 = vmatprep.mubr.bf16.mxu1 %v11740_v49  ;;  %3467 = vmatprep.subr.bf16.mxu1 %v9864_v17  ;;  %v9925_v17 = vld [vmem:[%s14961_s3 + $0x170] ss:$12 sps:$4 sm:$0xff]  }
 0x162   : > { %9361 = vmatpush3.bf16.msra.mxu0 %v9861_v28  ;;  %v9922_v28 = vld [vmem:[%s14961_s3 + $0x108] ss:$12 sps:$4 sm:$0xff]  }
 0x163   : > { %9362 = vmatprep.subr.bf16.mxu0 %v10944_v2  ;;  %3468 = vmatpush1.bf16.msra.mxu1 %v9862_v50  ;;  %v9928_v50 = vld [vmem:[%s14961_s3 + $0xf4] ss:$12 sps:$4 sm:$0xff]  }
 0x164   : > { %3469 = vmatprep.subr.bf16.mxu1 %v9868_v53  ;;  %v9929_v53 = vld [vmem:[%s14961_s3 + $0xb0] ss:$12 sps:$4 sm:$0xff]  }
 0x166   : > { %9363 = vmatpush3.bf16.msra.mxu0 %v9865_v34  ;;  %v9930_v34 = vld [vmem:[%s14961_s3 + $0x158] ss:$12 sps:$4 sm:$0xff]  }
 0x167   : > { %9364 = vmatprep.subr.bf16.mxu0 %v10944_v2  ;;  %3470 = vmatpush1.bf16.msra.mxu1 %v9866_v26  ;;  %v9926_v26 = vld [vmem:[%s14961_s3 + $0xf0] ss:$12 sps:$4 sm:$0xff]  }
 0x168   : > { %3471 = vmatprep.subr.bf16.mxu1 %v9872_v45  ;;  %v9933_v45 = vld [vmem:[%s14961_s3 + $0xdc] ss:$12 sps:$4 sm:$0xff]  }
 0x16a   : > { %9365 = vmatpush3.bf16.msra.mxu0 %v9869_v60  ;;  %v9934_v60 = vld [vmem:[%s14961_s3 + $0x98] ss:$12 sps:$4 sm:$0xff]  }
 0x16b   : > { %9366 = vmatprep.subr.bf16.mxu0 %v10944_v2  ;;  %3472 = vmatpush1.bf16.msra.mxu1 %v9870_v16  ;;  %v9935_v16 = vld [vmem:[%s14961_s3 + $0x140] ss:$12 sps:$4 sm:$0xff]  }
 0x16c   : > { %3473 = vmatprep.subr.bf16.mxu1 %v9876_v24  ;;  %v9938_v24 = vld [vmem:[%s14961_s3 + $0xc4] ss:$12 sps:$4 sm:$0xff]  }
 0x16e   : > { %9367 = vmatpush3.bf16.msra.mxu0 %v9873_v21  ;;  %v9931_v21 = vld [vmem:[%s14961_s3 + $0xd8] ss:$12 sps:$4 sm:$0xff]  }
 0x16f   : > { %3506 = vmatprep.subr.bf16.mxu0 %v9879_v55  ;;  %3474 = vmatpush1.bf16.msra.mxu1 %v9874_v32  ;;  %v9939_v55 = vld [vmem:[%s14961_s3 + $0x80] ss:$12 sps:$4 sm:$0xff]   ;;  %v9940_v32 = vld [vmem:[%s14961_s3 + $0x128] ss:$12 sps:$4 sm:$0xff]  }
 0x170   : > { %3475 = vmatprep.subr.bf16.mxu1 %v9882_v22  ;;  %v9941_v22 = vld [vmem:[%s14961_s3 + $0x68] ss:$12 sps:$4 sm:$0xff]  }
 0x171   : > { %9369 = vmatmul.mubr.bf16.vlgmr.msra.gmra.mxu0 %v11697_v14 }
 0x172   : > { %3507 = vmatpush1.bf16.msra.mxu0 %v9877_v1  ;;  %3538 = vmatprep.mubr.bf16.mxu0 %v10945_v6  ;;  %v9936_v1 = vld [vmem:[%s14961_s3 + $0xc0] ss:$12 sps:$4 sm:$0xff]  }
 0x173   : > { %3508 = vmatprep.subr.bf16.mxu0 %v9885_v36  ;;  %3476 = vmatpush1.bf16.msra.mxu1 %v9880_v29  ;;  %v9943_v29 = vld [vmem:[%s14961_s3 + $0x110] ss:$12 sps:$4 sm:$0xff]  }
 0x174   : > { %3477 = vmatprep.subr.bf16.mxu1 %v9888_v10  ;;  %v9942_v36 = vld [vmem:[%s14961_s3 + $0x230] ss:$12 sps:$4 sm:$0xff]   ;;  %v9946_v10 = vld [vmem:[%s14961_s3 + $0xf8] ss:$12 sps:$4 sm:$0xff]  }
 0x176   : > { %3509 = vmatpush1.bf16.msra.mxu0 %v9883_v38  ;;  %v9944_v38 = vld [vmem:[%s14961_s3 + $0x50] ss:$12 sps:$4 sm:$0xff]  }
 0x177   : > { %3510 = vmatprep.subr.bf16.mxu0 %v9891_v63  ;;  %3478 = vmatpush1.bf16.msra.mxu1 %v9886_v48  ;;  %v9945_v48 = vld [vmem:[%s14961_s3 + $0x218] ss:$12 sps:$4 sm:$0xff]  }
 0x178   : > { %3479 = vmatprep.subr.bf16.mxu1 %v9894_v52  ;;  %v9947_v63 = vld [vmem:[%s14961_s3 + $0x38] ss:$12 sps:$4 sm:$0xff]   ;;  %v9948_v52 = vld [vmem:[%s14961_s3 + $0x200] ss:$12 sps:$4 sm:$0xff]  }
 0x17a   : > { %3511 = vmatpush1.bf16.msra.mxu0 %v9889_v12  ;;  %v9949_v12 = vld [vmem:[%s14961_s3 + $0xe0] ss:$12 sps:$4 sm:$0xff]  }
 0x17b   : > { %3512 = vmatprep.subr.bf16.mxu0 %v9897_v40  ;;  %3480 = vmatpush1.bf16.msra.mxu1 %v9892_v30  ;;  %v9950_v30 = vld [vmem:[%s14961_s3 + $0x20] ss:$12 sps:$4 sm:$0xff]   ;;  %v9952_v40 = vld [vmem:[%s14961_s3 + $0xc8] ss:$12 sps:$4 sm:$0xff]  }
 0x17c   : > { %3481 = vmatprep.subr.bf16.mxu1 %v9900_v25  ;;  %v9953_v25 = vld [vmem:[%s14961_s3 + $0x8] ss:$12 sps:$4 sm:$0xff]  }
 0x17e   : > { %3513 = vmatpush1.bf16.msra.mxu0 %v9895_v31  ;;  %v9951_v31 = vld [vmem:[%s14961_s3 + $0x1e8] ss:$12 sps:$4 sm:$0xff]  }
 0x17f   : > { %3514 = vmatprep.subr.bf16.mxu0 %v9903_v9  ;;  %3482 = vmatpush2.bf16.msra.mxu1 %v9898_v51  ;;  %v9957_v51 = vld [vmem:[%s14961_s3 + $0x52c] ss:$12 sps:$4 sm:$0xff]   ;;  %v9954_v9 = vld [vmem:[%s14961_s3 + $0x1d0] ss:$12 sps:$4 sm:$0xff]  }
 0x180   : > { %3483 = vmatprep.subr.bf16.mxu1 %v9906_v7  ;;  %v9955_v7 = vld [vmem:[%s14961_s3 + $0x528] ss:$12 sps:$4 sm:$0xff]  }
 0x182   : > { %3515 = vmatpush1.bf16.msra.mxu0 %v9901_v19  ;;  %v3639_v19 = vrot.slane %v3637_v61, 1  ;;  %v9958_v61 = vld [vmem:[%s14961_s3 + $0x1b8] ss:$12 sps:$4 sm:$0xff]  }
 0x183   : > { %3516 = vmatprep.subr.bf16.mxu0 %v9909_v54  ;;  %3484 = vmatpush2.bf16.msra.mxu1 %v9904_v46  ;;  %v9961_v46 = vld [vmem:[%s14961_s3 + $0x514] ss:$12 sps:$4 sm:$0xff]  }
 0x184   : > { %3485 = vmatprep.subr.bf16.mxu1 %v9912_v57  ;;  %v12053_v54 = vor.u32 %v3639_v19, %v3635_v58  ;;  %v9965_v58 = vld [vmem:[%s14961_s3 + $0x4fc] ss:$12 sps:$4 sm:$0xff]   ;;  %v9962_v57 = vld [vmem:[%s14961_s3 + $0x1a0] ss:$12 sps:$4 sm:$0xff]  }
 0x185   : > { %v10015_v19 = vld [vmem:[%s14961_s3 + $0x5a0] ss:$12 sps:$4 sm:$0xff]  }
 0x186   : > { %3517 = vmatpush1.bf16.msra.mxu0 %v9907_v0  ;;  %v9959_v0 = vld [vmem:[%s14961_s3 + $0x510] ss:$12 sps:$4 sm:$0xff]  }
 0x187   : > { %3518 = vmatprep.subr.bf16.mxu0 %v9915_v62  ;;  %3486 = vmatpush2.bf16.msra.mxu1 %v9910_v3  ;;  %v9963_v3 = vld [vmem:[%s14961_s3 + $0x4f8] ss:$12 sps:$4 sm:$0xff]  }
 0x188   : > { %3487 = vmatprep.subr.bf16.mxu1 %v9918_v5  ;;  %v9969_v62 = vld [vmem:[%s14961_s3 + $0x4e4] ss:$12 sps:$4 sm:$0xff]   ;;  %v9972_v5 = vld [vmem:[%s14961_s3 + $0x6ac] ss:$12 sps:$4 sm:$0xff]  }
 0x18a   : > { %3519 = vmatpush1.bf16.msra.mxu0 %v9913_v4  ;;  %v9966_v4 = vld [vmem:[%s14961_s3 + $0x188] ss:$12 sps:$4 sm:$0xff]  }
 0x18b   : > { %3520 = vmatprep.subr.bf16.mxu0 %v9921_v13  ;;  %3488 = vmatpush2.bf16.msra.mxu1 %v9916_v11  ;;  %v9967_v13 = vld [vmem:[%s14961_s3 + $0x4e0] ss:$12 sps:$4 sm:$0xff]  }
 0x18c   : > { %3489 = vmatprep.subr.bf16.mxu1 %v9924_v39  ;;  %v9975_v11 = vld [vmem:[%s14961_s3 + $0x4cc] ss:$12 sps:$4 sm:$0xff]   ;;  %v9970_v39 = vld [vmem:[%s14961_s3 + $0x6a8] ss:$12 sps:$4 sm:$0xff]  }
 0x18e   : > { %3521 = vmatpush1.bf16.msra.mxu0 %v9919_v42  ;;  %v9978_v42 = vld [vmem:[%s14961_s3 + $0x694] ss:$12 sps:$4 sm:$0xff]  }
 0x18f   : > { %8771 = vmatprep.subr.bf16.mxu0 %v9925_v17  ;;  %3490 = vmatpush2.bf16.msra.mxu1 %v9922_v28  ;;  %v9973_v17 = vld [vmem:[%s14961_s3 + $0x4c8] ss:$12 sps:$4 sm:$0xff]  }
 0x190   : > { %3491 = vmatprep.subr.bf16.mxu1 %v9928_v50  ;;  %v9981_v28 = vld [vmem:[%s14961_s3 + $0x4b4] ss:$12 sps:$4 sm:$0xff]   ;;  %v9976_v50 = vld [vmem:[%s14961_s3 + $0x690] ss:$12 sps:$4 sm:$0xff]  }
 0x191   : > { %3539 = vmatmul.mubr.bf16.vlgmr.msra.gmra.mxu0 %v11683_v33 }
 0x192   : > { %8772 = vmatpush3.bf16.msra.mxu0 %v9929_v53  ;;  %3579 = vmatprep.mubr.bf16.mxu0 %v11740_v49  ;;  %v9984_v53 = vld [vmem:[%s14961_s3 + $0x67c] ss:$12 sps:$4 sm:$0xff]  }
 0x193   : > { %8773 = vmatprep.subr.bf16.mxu0 %v9930_v34  ;;  %3492 = vmatpush2.bf16.msra.mxu1 %v9926_v26  ;;  %v9979_v34 = vld [vmem:[%s14961_s3 + $0x4b0] ss:$12 sps:$4 sm:$0xff]  }
 0x194   : > { %3493 = vmatprep.subr.bf16.mxu1 %v9933_v45  ;;  %v9987_v26 = vld [vmem:[%s14961_s3 + $0x49c] ss:$12 sps:$4 sm:$0xff]   ;;  %v9982_v45 = vld [vmem:[%s14961_s3 + $0x678] ss:$12 sps:$4 sm:$0xff]  }
 0x196   : > { %8774 = vmatpush3.bf16.msra.mxu0 %v9934_v60  ;;  %v9990_v60 = vld [vmem:[%s14961_s3 + $0x664] ss:$12 sps:$4 sm:$0xff]  }
 0x197   : > { %8775 = vmatprep.subr.bf16.mxu0 %v9935_v16  ;;  %3494 = vmatpush2.bf16.msra.mxu1 %v9931_v21  ;;  %v9985_v16 = vld [vmem:[%s14961_s3 + $0x498] ss:$12 sps:$4 sm:$0xff]  }
 0x198   : > { %3495 = vmatprep.subr.bf16.mxu1 %v9938_v24  ;;  %v9993_v21 = vld [vmem:[%s14961_s3 + $0x484] ss:$12 sps:$4 sm:$0xff]   ;;  %v9988_v24 = vld [vmem:[%s14961_s3 + $0x660] ss:$12 sps:$4 sm:$0xff]  }
 0x19a   : > { %8776 = vmatpush3.bf16.msra.mxu0 %v9939_v55  ;;  %v9996_v55 = vld [vmem:[%s14961_s3 + $0x64c] ss:$12 sps:$4 sm:$0xff]  }
 0x19b   : > { %8777 = vmatprep.subr.bf16.mxu0 %v9940_v32  ;;  %3496 = vmatpush2.bf16.msra.mxu1 %v9936_v1  ;;  %v9991_v32 = vld [vmem:[%s14961_s3 + $0x480] ss:$12 sps:$4 sm:$0xff]  }
 0x19c   : > { %9372 = vmatprep.subr.bf16.mxu1 %v10944_v2  ;;  %v9999_v1 = vld [vmem:[%s14961_s3 + $0x5ec] ss:$12 sps:$4 sm:$0xff]  }
 0x19e   : > { %8778 = vmatpush3.bf16.msra.mxu0 %v9941_v22  ;;  %3498 = vmatmul.mubr.bf16.vlgmr.msra.gmra.mxu1 %v11736_v23  ;;  %v9994_v22 = vld [vmem:[%s14961_s3 + $0x648] ss:$12 sps:$4 sm:$0xff]  }
 0x19f   : > { %8779 = vmatprep.subr.bf16.mxu0 %v9943_v29  ;;  %9373 = vmatpush3.bf16.msra.mxu1 %v9942_v36  ;;  %v10002_v29 = vld [vmem:[%s14961_s3 + $0x634] ss:$12 sps:$4 sm:$0xff]  }
 0x1a0   : > { %9388 = vmatprep.mubr.msk.bf16.mxu1 %vm10946_vm1, %v10944_v2  ;;  %9374 = vmatprep.subr.bf16.mxu1 %v10944_v2  ;;  %v9997_v36 = vld [vmem:[%s14961_s3 + $0x5e8] ss:$12 sps:$4 sm:$0xff]  }
 0x1a2   : > { %8780 = vmatpush3.bf16.msra.mxu0 %v9944_v38  ;;  %v10005_v38 = vld [vmem:[%s14961_s3 + $0x5d4] ss:$12 sps:$4 sm:$0xff]  }
 0x1a3   : > { %8781 = vmatprep.subr.bf16.mxu0 %v9946_v10  ;;  %9375 = vmatpush3.bf16.msra.mxu1 %v9945_v48  ;;  %v10000_v10 = vld [vmem:[%s14961_s3 + $0x630] ss:$12 sps:$4 sm:$0xff]  }
 0x1a4   : > { %9376 = vmatprep.subr.bf16.mxu1 %v10944_v2  ;;  %v10008_v48 = vld [vmem:[%s14961_s3 + $0x61c] ss:$12 sps:$4 sm:$0xff]  }
 0x1a6   : > { %8782 = vmatpush3.bf16.msra.mxu0 %v9947_v63  ;;  %v10003_v63 = vld [vmem:[%s14961_s3 + $0x5d0] ss:$12 sps:$4 sm:$0xff]  }
 0x1a7   : > { %8783 = vmatprep.subr.bf16.mxu0 %v9949_v12  ;;  %9377 = vmatpush3.bf16.msra.mxu1 %v9948_v52  ;;  %v10011_v12 = vld [vmem:[%s14961_s3 + $0x5bc] ss:$12 sps:$4 sm:$0xff]   ;;  %v10006_v52 = vld [vmem:[%s14961_s3 + $0x618] ss:$12 sps:$4 sm:$0xff]  }
 0x1a8   : > { %9378 = vmatprep.subr.bf16.mxu1 %v10944_v2 }
 0x1aa   : > { %8784 = vmatpush3.bf16.msra.mxu0 %v9950_v30  ;;  %v10014_v30 = vld [vmem:[%s14961_s3 + $0x604] ss:$12 sps:$4 sm:$0xff]  }
 0x1ab   : > { %8785 = vmatprep.subr.bf16.mxu0 %v9952_v40  ;;  %9379 = vmatpush3.bf16.msra.mxu1 %v9951_v31  ;;  %v10009_v40 = vld [vmem:[%s14961_s3 + $0x5b8] ss:$12 sps:$4 sm:$0xff]  }
 0x1ac   : > { %9380 = vmatprep.subr.bf16.mxu1 %v10944_v2  ;;  %v10017_v31 = vld [vmem:[%s14961_s3 + $0x5a4] ss:$12 sps:$4 sm:$0xff]  }
 0x1ae   : > { %8786 = vmatpush3.bf16.msra.mxu0 %v9953_v25  ;;  %v10012_v25 = vld [vmem:[%s14961_s3 + $0x600] ss:$12 sps:$4 sm:$0xff]  }
 0x1af   : > { %4035 = vmatprep.subr.bf16.mxu0 %v9957_v51  ;;  %9381 = vmatpush3.bf16.msra.mxu1 %v9954_v9  ;;  %v3646_v51 = vrot.slane %v3644_v15, 1  ;;  %v10018_v9 = vld [vmem:[%s14961_s3 + $0x5f0] ss:$12 sps:$4 sm:$0xff]  }
 0x1b0   : > { %9382 = vmatprep.subr.bf16.mxu1 %v10944_v2 }
 0x1b1   : > { %3580 = vmatmul.mubr.bf16.vlgmr.msra.gmra.mxu0 %v11736_v23  ;;  %v12195_v15 = vor.u32 %v3646_v51, %v3642_v44  ;;  %v10024_v44 = vld [vmem:[%s14961_s3 + $0x518] ss:$12 sps:$4 sm:$0xff]  }
 0x1b2   : > { %4036 = vmatpush1.bf16.msra.mxu0 %v9955_v7  ;;  %4067 = vmatprep.mubr.bf16.mxu0 %v12053_v54  ;;  %v10022_v7 = vld [vmem:[%s14961_s3 + $0x58c] ss:$12 sps:$4 sm:$0xff]  }
 0x1b3   : > { %4037 = vmatprep.subr.bf16.mxu0 %v9961_v46  ;;  %9383 = vmatpush3.bf16.msra.mxu1 %v9958_v61  ;;  %v10019_v46 = vld [vmem:[%s14961_s3 + $0x530] ss:$12 sps:$4 sm:$0xff]   ;;  %v10023_v61 = vld [vmem:[%s14961_s3 + $0x5d8] ss:$12 sps:$4 sm:$0xff]  }
 0x1b4   : > { %9384 = vmatprep.subr.bf16.mxu1 %v10944_v2  ;;  %v10068_v51 = vld [vmem:[%s14961_s3 + $0x94c] ss:$12 sps:$4 sm:$0xff]  }
 0x1b6   : > { %4038 = vmatpush1.bf16.msra.mxu0 %v9959_v0  ;;  %v10020_v0 = vld [vmem:[%s14961_s3 + $0x588] ss:$12 sps:$4 sm:$0xff]  }
 0x1b7   : > { %4039 = vmatprep.subr.bf16.mxu0 %v9965_v58  ;;  %9385 = vmatpush3.bf16.msra.mxu1 %v9962_v57  ;;  %v10027_v58 = vld [vmem:[%s14961_s3 + $0x574] ss:$12 sps:$4 sm:$0xff]  }
 0x1b8   : > { %9386 = vmatprep.subr.bf16.mxu1 %v10944_v2  ;;  %v10028_v57 = vld [vmem:[%s14961_s3 + $0x5c0] ss:$12 sps:$4 sm:$0xff]  }
 0x1ba   : > { %4040 = vmatpush1.bf16.msra.mxu0 %v9963_v3  ;;  %v10025_v3 = vld [vmem:[%s14961_s3 + $0x570] ss:$12 sps:$4 sm:$0xff]  }
 0x1bb   : > { %4041 = vmatprep.subr.bf16.mxu0 %v9969_v62  ;;  %9387 = vmatpush3.bf16.msra.mxu1 %v9966_v4  ;;  %v10032_v62 = vld [vmem:[%s14961_s3 + $0x55c] ss:$12 sps:$4 sm:$0xff]   ;;  %v10029_v4 = vld [vmem:[%s14961_s3 + $0x500] ss:$12 sps:$4 sm:$0xff]  }
 0x1bc   : > { %4076 = vmatprep.subr.bf16.mxu1 %v9972_v5  ;;  %v10033_v5 = vld [vmem:[%s14961_s3 + $0x5a8] ss:$12 sps:$4 sm:$0xff]  }
 0x1be   : > { %4042 = vmatpush1.bf16.msra.mxu0 %v9967_v13  ;;  %9389 = vmatmul.mubr.bf16.vlgmr.msra.gmra.mxu1 %v11683_v33  ;;  %v10030_v13 = vld [vmem:[%s14961_s3 + $0x558] ss:$12 sps:$4 sm:$0xff]  }
 0x1bf   : > { %4043 = vmatprep.subr.bf16.mxu0 %v9975_v11  ;;  %4077 = vmatpush1.bf16.msra.mxu1 %v9970_v39  ;;  %v10037_v11 = vld [vmem:[%s14961_s3 + $0x544] ss:$12 sps:$4 sm:$0xff]   ;;  %v10034_v39 = vld [vmem:[%s14961_s3 + $0x4e8] ss:$12 sps:$4 sm:$0xff]  }
 0x1c0   : > { %4108 = vmatprep.mubr.bf16.mxu1 %v10945_v6  ;;  %4078 = vmatprep.subr.bf16.mxu1 %v9978_v42  ;;  %v10038_v42 = vld [vmem:[%s14961_s3 + $0x590] ss:$12 sps:$4 sm:$0xff]  }
 0x1c2   : > { %4044 = vmatpush1.bf16.msra.mxu0 %v9973_v17  ;;  %v10035_v17 = vld [vmem:[%s14961_s3 + $0x540] ss:$12 sps:$4 sm:$0xff]  }
 0x1c3   : > { %4045 = vmatprep.subr.bf16.mxu0 %v9981_v28  ;;  %4079 = vmatpush1.bf16.msra.mxu1 %v9976_v50  ;;  %v3632_v28 = vrot.slane %v3630_v41, 1  ;;  %v10039_v50 = vld [vmem:[%s14961_s3 + $0x4d0] ss:$12 sps:$4 sm:$0xff]   ;;  %v10042_v41 = vld [vmem:[%s14961_s3 + $0x4b8] ss:$12 sps:$4 sm:$0xff]  }
 0x1c4   : > { %4080 = vmatprep.subr.bf16.mxu1 %v9984_v53  ;;  %v10040_v53 = vld [vmem:[%s14961_s3 + $0x578] ss:$12 sps:$4 sm:$0xff]  }
 0x1c6   : > { %4046 = vmatpush1.bf16.msra.mxu0 %v9979_v34  ;;  %v10041_v34 = vld [vmem:[%s14961_s3 + $0x6b0] ss:$12 sps:$4 sm:$0xff]  }
 0x1c7   : > { %4047 = vmatprep.subr.bf16.mxu0 %v9987_v26  ;;  %4081 = vmatpush1.bf16.msra.mxu1 %v9982_v45  ;;  %v12254_v26 = vor.u32 %v3632_v28, %v3628_v47  ;;  %v10043_v45 = vld [vmem:[%s14961_s3 + $0x560] ss:$12 sps:$4 sm:$0xff]   ;;  %v10044_v47 = vld [vmem:[%s14961_s3 + $0x698] ss:$12 sps:$4 sm:$0xff]  }
 0x1c8   : > { %4082 = vmatprep.subr.bf16.mxu1 %v9990_v60  ;;  %v10045_v60 = vld [vmem:[%s14961_s3 + $0x4a0] ss:$12 sps:$4 sm:$0xff]  }
 0x1ca   : > { %4048 = vmatpush1.bf16.msra.mxu0 %v9985_v16  ;;  %v10046_v16 = vld [vmem:[%s14961_s3 + $0x548] ss:$12 sps:$4 sm:$0xff]  }
 0x1cb   : > { %4049 = vmatprep.subr.bf16.mxu0 %v9993_v21  ;;  %4083 = vmatpush1.bf16.msra.mxu1 %v9988_v24  ;;  %v10047_v21 = vld [vmem:[%s14961_s3 + $0x680] ss:$12 sps:$4 sm:$0xff]   ;;  %v10048_v24 = vld [vmem:[%s14961_s3 + $0x488] ss:$12 sps:$4 sm:$0xff]  }
 0x1cc   : > { %4084 = vmatprep.subr.bf16.mxu1 %v9996_v55  ;;  %v10052_v55 = vld [vmem:[%s14961_s3 + $0x9ac] ss:$12 sps:$4 sm:$0xff]  }
 0x1ce   : > { %4050 = vmatpush1.bf16.msra.mxu0 %v9991_v32  ;;  %v10049_v32 = vld [vmem:[%s14961_s3 + $0x668] ss:$12 sps:$4 sm:$0xff]  }
 0x1cf   : > { %4051 = vmatprep.subr.bf16.mxu0 %v9999_v1  ;;  %4085 = vmatpush1.bf16.msra.mxu1 %v9994_v22  ;;  %v10050_v1 = vld [vmem:[%s14961_s3 + $0x9a8] ss:$12 sps:$4 sm:$0xff]  }
 0x1d0   : > { %4086 = vmatprep.subr.bf16.mxu1 %v10002_v29  ;;  %v10056_v22 = vld [vmem:[%s14961_s3 + $0x994] ss:$12 sps:$4 sm:$0xff]   ;;  %v10053_v29 = vld [vmem:[%s14961_s3 + $0x650] ss:$12 sps:$4 sm:$0xff]  }
 0x1d2   : > { %4052 = vmatpush2.bf16.msra.mxu0 %v9997_v36 }
 0x1d3   : > { %4053 = vmatprep.subr.bf16.mxu0 %v10005_v38  ;;  %4087 = vmatpush1.bf16.msra.mxu1 %v10000_v10  ;;  %v10054_v38 = vld [vmem:[%s14961_s3 + $0x990] ss:$12 sps:$4 sm:$0xff]  }
 0x1d4   : > { %4088 = vmatprep.subr.bf16.mxu1 %v10008_v48  ;;  %v10060_v48 = vld [vmem:[%s14961_s3 + $0x97c] ss:$12 sps:$4 sm:$0xff]  }
 0x1d6   : > { %4054 = vmatpush2.bf16.msra.mxu0 %v10003_v63  ;;  %v10057_v63 = vld [vmem:[%s14961_s3 + $0x638] ss:$12 sps:$4 sm:$0xff]  }
 0x1d7   : > { %4055 = vmatprep.subr.bf16.mxu0 %v10011_v12  ;;  %4089 = vmatpush1.bf16.msra.mxu1 %v10006_v52  ;;  %v10058_v52 = vld [vmem:[%s14961_s3 + $0x978] ss:$12 sps:$4 sm:$0xff]  }
 0x1d8   : > { %4090 = vmatprep.subr.bf16.mxu1 %v10014_v30 }
 0x1da   : > { %4056 = vmatpush2.bf16.msra.mxu0 %v10009_v40  ;;  %v10064_v40 = vld [vmem:[%s14961_s3 + $0x964] ss:$12 sps:$4 sm:$0xff]  }
 0x1db   : > { %4057 = vmatprep.subr.bf16.mxu0 %v10017_v31  ;;  %4091 = vmatpush1.bf16.msra.mxu1 %v10012_v25  ;;  %v10061_v31 = vld [vmem:[%s14961_s3 + $0x620] ss:$12 sps:$4 sm:$0xff]  }
 0x1dc   : > { %8802 = vmatprep.subr.bf16.mxu1 %v10018_v9  ;;  %v10062_v25 = vld [vmem:[%s14961_s3 + $0x960] ss:$12 sps:$4 sm:$0xff]   ;;  %v10065_v9 = vld [vmem:[%s14961_s3 + $0x608] ss:$12 sps:$4 sm:$0xff]  }
 0x1de   : > { %4058 = vmatpush2.bf16.msra.mxu0 %v10015_v19  ;;  %4109 = vmatmul.mubr.bf16.vlgmr.msra.gmra.mxu1 %v12195_v15  ;;  %v10071_v19 = vld [vmem:[%s14961_s3 + $0xb2c] ss:$12 sps:$4 sm:$0xff]  }
 0x1df   : > { %4059 = vmatprep.subr.bf16.mxu0 %v10022_v7  ;;  %8803 = vmatpush3.bf16.msra.mxu1 %v10019_v46  ;;  %v10066_v7 = vld [vmem:[%s14961_s3 + $0x948] ss:$12 sps:$4 sm:$0xff]  }
 0x1e0   : > { %4149 = vmatprep.mubr.bf16.mxu1 %v12053_v54  ;;  %8804 = vmatprep.subr.bf16.mxu1 %v10023_v61  ;;  %v10074_v46 = vld [vmem:[%s14961_s3 + $0x934] ss:$12 sps:$4 sm:$0xff]  }
 0x1e1   : > { %v10069_v61 = vld [vmem:[%s14961_s3 + $0xb28] ss:$12 sps:$4 sm:$0xff]  }
 0x1e2   : > { %4060 = vmatpush2.bf16.msra.mxu0 %v10020_v0  ;;  %v10077_v0 = vld [vmem:[%s14961_s3 + $0xb14] ss:$12 sps:$4 sm:$0xff]  }
 0x1e3   : > { %4061 = vmatprep.subr.bf16.mxu0 %v10027_v58  ;;  %8805 = vmatpush3.bf16.msra.mxu1 %v10024_v44  ;;  %v10072_v58 = vld [vmem:[%s14961_s3 + $0x930] ss:$12 sps:$4 sm:$0xff]  }
 0x1e4   : > { %8806 = vmatprep.subr.bf16.mxu1 %v10028_v57  ;;  %v10080_v57 = vld [vmem:[%s14961_s3 + $0x91c] ss:$12 sps:$4 sm:$0xff]  }
 0x1e6   : > { %4062 = vmatpush2.bf16.msra.mxu0 %v10025_v3 }
 0x1e7   : > { %4063 = vmatprep.subr.bf16.mxu0 %v10032_v62  ;;  %8807 = vmatpush3.bf16.msra.mxu1 %v10029_v4  ;;  %v10075_v62 = vld [vmem:[%s14961_s3 + $0xb10] ss:$12 sps:$4 sm:$0xff]  }
 0x1e8   : > { %8808 = vmatprep.subr.bf16.mxu1 %v10033_v5  ;;  %v10083_v5 = vld [vmem:[%s14961_s3 + $0xafc] ss:$12 sps:$4 sm:$0xff]  }
 0x1ea   : > { %4064 = vmatpush2.bf16.msra.mxu0 %v10030_v13 }
 0x1eb   : > { %4065 = vmatprep.subr.bf16.mxu0 %v10037_v11  ;;  %8809 = vmatpush3.bf16.msra.mxu1 %v10034_v39  ;;  %v10078_v11 = vld [vmem:[%s14961_s3 + $0x918] ss:$12 sps:$4 sm:$0xff]  }
 0x1ec   : > { %8810 = vmatprep.subr.bf16.mxu1 %v10038_v42  ;;  %v10086_v42 = vld [vmem:[%s14961_s3 + $0x904] ss:$12 sps:$4 sm:$0xff]  }
 0x1ee   : > { %4066 = vmatpush2.bf16.msra.mxu0 %v10035_v17  ;;  %v10081_v17 = vld [vmem:[%s14961_s3 + $0xaf8] ss:$12 sps:$4 sm:$0xff]  }
 0x1ef   : > { %9392 = vmatprep.subr.bf16.mxu0 %v10944_v2  ;;  %8811 = vmatpush3.bf16.msra.mxu1 %v10039_v50  ;;  %v10089_v50 = vld [vmem:[%s14961_s3 + $0xae4] ss:$12 sps:$4 sm:$0xff]  }
 0x1f0   : > { %8812 = vmatprep.subr.bf16.mxu1 %v10040_v53  ;;  %v10084_v53 = vld [vmem:[%s14961_s3 + $0x900] ss:$12 sps:$4 sm:$0xff]  }
 0x1f1   : > { %4068 = vmatmul.mubr.bf16.vlgmr.msra.gmra.mxu0 %v12254_v26 }
 0x1f2   : > { %9393 = vmatpush3.bf16.msra.mxu0 %v10041_v34  ;;  %9408 = vmatprep.mubr.msk.bf16.mxu0 %vm10946_vm1, %v10944_v2  ;;  %v10092_v34 = vld [vmem:[%s14961_s3 + $0xa6c] ss:$12 sps:$4 sm:$0xff]  }
 0x1f3   : > { %9394 = vmatprep.subr.bf16.mxu0 %v10944_v2  ;;  %8813 = vmatpush3.bf16.msra.mxu1 %v10042_v41  ;;  %v10087_v41 = vld [vmem:[%s14961_s3 + $0xae0] ss:$12 sps:$4 sm:$0xff]  }
 0x1f4   : > { %8814 = vmatprep.subr.bf16.mxu1 %v10043_v45  ;;  %v10095_v45 = vld [vmem:[%s14961_s3 + $0xacc] ss:$12 sps:$4 sm:$0xff]  }
 0x1f6   : > { %9395 = vmatpush3.bf16.msra.mxu0 %v10044_v47  ;;  %v10090_v47 = vld [vmem:[%s14961_s3 + $0xa68] ss:$12 sps:$4 sm:$0xff]  }
 0x1f7   : > { %9396 = vmatprep.subr.bf16.mxu0 %v10944_v2  ;;  %8815 = vmatpush3.bf16.msra.mxu1 %v10045_v60  ;;  %v10098_v60 = vld [vmem:[%s14961_s3 + $0xa54] ss:$12 sps:$4 sm:$0xff]  }
 0x1f8   : > { %8816 = vmatprep.subr.bf16.mxu1 %v10046_v16  ;;  %v10093_v16 = vld [vmem:[%s14961_s3 + $0xac8] ss:$12 sps:$4 sm:$0xff]  }
 0x1fa   : > { %9397 = vmatpush3.bf16.msra.mxu0 %v10047_v21 }
 0x1fb   : > { %9398 = vmatprep.subr.bf16.mxu0 %v10944_v2  ;;  %8817 = vmatpush3.bf16.msra.mxu1 %v10048_v24  ;;  %v10101_v24 = vld [vmem:[%s14961_s3 + $0xab4] ss:$12 sps:$4 sm:$0xff]  }
 0x1fc   : > { %4584 = vmatprep.subr.bf16.mxu1 %v10052_v55  ;;  %v10096_v55 = vld [vmem:[%s14961_s3 + $0xa50] ss:$12 sps:$4 sm:$0xff]  }
 0x1fe   : > { %9399 = vmatpush3.bf16.msra.mxu0 %v10049_v32  ;;  %4150 = vmatmul.mubr.bf16.vlgmr.msra.gmra.mxu1 %v12254_v26  ;;  %v2994_v36 = vpop.f32.mrf.mxu1 }
 0x1ff   : > { %9400 = vmatprep.subr.bf16.mxu0 %v10944_v2  ;;  %4585 = vmatpush1.bf16.msra.mxu1 %v10050_v1  ;;  %v10104_v1 = vld [vmem:[%s14961_s3 + $0xa3c] ss:$12 sps:$4 sm:$0xff]  }
 0x200   : > { %4616 = vmatprep.mubr.bf16.mxu1 %v11751_v27  ;;  %v2996_v10 = vpop.f32.mrf.mxu1  ;;  %4586 = vmatprep.subr.bf16.mxu1 %v10056_v22 }
 0x202   : > { %9401 = vmatpush3.bf16.msra.mxu0 %v10053_v29  ;;  %v2998_v12 = vpop.f32.mrf.mxu1  ;;  %v10099_v29 = vld [vmem:[%s14961_s3 + $0xab0] ss:$12 sps:$4 sm:$0xff]  }
 0x203   : > { %9402 = vmatprep.subr.bf16.mxu0 %v10944_v2  ;;  %4587 = vmatpush1.bf16.msra.mxu1 %v10054_v38  ;;  %v10107_v38 = vld [vmem:[%s14961_s3 + $0xa9c] ss:$12 sps:$4 sm:$0xff]   ;;  %v10105_v12 = vld [vmem:[%s14961_s3 + $0xa98] ss:$12 sps:$4 sm:$0xff]  }
 0x204   : > { %v2999_v30 = vpop.f32.mrf.mxu1  ;;  %4588 = vmatprep.subr.bf16.mxu1 %v10060_v48 }
 0x205   : > { %v10108_v30 = vld [vmem:[%s14961_s3 + $0xa20] ss:$12 sps:$4 sm:$0xff]  }
 0x206   : > { %9403 = vmatpush3.bf16.msra.mxu0 %v10057_v63  ;;  %v10110_v63 = vld [vmem:[%s14961_s3 + $0xa24] ss:$12 sps:$4 sm:$0xff]  }
 0x207   : > { %9404 = vmatprep.subr.bf16.mxu0 %v10944_v2  ;;  %4589 = vmatpush1.bf16.msra.mxu1 %v10058_v52  ;;  %v10113_v52 = vld [vmem:[%s14961_s3 + $0xa84] ss:$12 sps:$4 sm:$0xff]  }
 0x208   : > { %4590 = vmatprep.subr.bf16.mxu1 %v10064_v40  ;;  %v10116_v40 = vld [vmem:[%s14961_s3 + $0xa0c] ss:$12 sps:$4 sm:$0xff]  }
 0x20a   : > { %9405 = vmatpush3.bf16.msra.mxu0 %v10061_v31  ;;  %v10111_v31 = vld [vmem:[%s14961_s3 + $0xa80] ss:$12 sps:$4 sm:$0xff]  }
 0x20b   : > { %9406 = vmatprep.subr.bf16.mxu0 %v10944_v2  ;;  %4591 = vmatpush1.bf16.msra.mxu1 %v10062_v25  ;;  %v10117_v25 = vld [vmem:[%s14961_s3 + $0xa70] ss:$12 sps:$4 sm:$0xff]  }
 0x20c   : > { %4592 = vmatprep.subr.bf16.mxu1 %v10068_v51  ;;  %v10114_v51 = vld [vmem:[%s14961_s3 + $0xa08] ss:$12 sps:$4 sm:$0xff]  }
 0x20e   : > { %9407 = vmatpush3.bf16.msra.mxu0 %v10065_v9  ;;  %v10120_v9 = vld [vmem:[%s14961_s3 + $0x9f4] ss:$12 sps:$4 sm:$0xff]  }
 0x20f   : > { %4625 = vmatprep.subr.bf16.mxu0 %v10071_v19  ;;  %4593 = vmatpush1.bf16.msra.mxu1 %v10066_v7  ;;  %v10121_v19 = vld [vmem:[%s14961_s3 + $0x9b0] ss:$12 sps:$4 sm:$0xff]   ;;  %v10122_v7 = vld [vmem:[%s14961_s3 + $0xa58] ss:$12 sps:$4 sm:$0xff]  }
 0x210   : > { %4594 = vmatprep.subr.bf16.mxu1 %v10074_v46  ;;  %v10118_v46 = vld [vmem:[%s14961_s3 + $0x9f0] ss:$12 sps:$4 sm:$0xff]  }
 0x211   : > { %9409 = vmatmul.mubr.bf16.vlgmr.msra.gmra.mxu0 %v12195_v15  ;;  %v2953_v44 = vpop.f32.mrf.mxu0 }
 0x212   : > { %v12354_v3 = vadd.f32 %v2994_v36, %v2953_v44  ;;  %4626 = vmatpush1.bf16.msra.mxu0 %v10069_v61  ;;  %4657 = vmatprep.mubr.bf16.mxu0 %v10945_v6  ;;  %v10126_v44 = vld [vmem:[%s14961_s3 + $0x998] ss:$12 sps:$4 sm:$0xff]  }
 0x213   : > { %v2955_v4 = vpop.f32.mrf.mxu0  ;;  %4627 = vmatprep.subr.bf16.mxu0 %v10077_v0  ;;  %4595 = vmatpush1.bf16.msra.mxu1 %v10072_v58  ;;  %v10125_v0 = vld [vmem:[%s14961_s3 + $0x9dc] ss:$12 sps:$4 sm:$0xff]  }
 0x214   : > { %v12363_v13 = vadd.f32 %v2996_v10, %v2955_v4  ;;  %4596 = vmatprep.subr.bf16.mxu1 %v10080_v57  ;;  %v10102_v10 = vld [vmem:[%s14961_s3 + $0xa38] ss:$12 sps:$4 sm:$0xff]  }
 0x215   : > { %v2957_v39 = vpop.f32.mrf.mxu0  ;;  %v10123_v4 = vld [vmem:[%s14961_s3 + $0x9d8] ss:$12 sps:$4 sm:$0xff]  }
 0x216   : > { %4628 = vmatpush1.bf16.msra.mxu0 %v10075_v62  ;;  %v10127_v62 = vld [vmem:[%s14961_s3 + $0xa40] ss:$12 sps:$4 sm:$0xff]  }
 0x217   : > { %v2958_v28 = vpop.f32.mrf.mxu0  ;;  %4629 = vmatprep.subr.bf16.mxu0 %v10083_v5  ;;  %4597 = vmatpush1.bf16.msra.mxu1 %v10078_v11  ;;  %v10130_v11 = vld [vmem:[%s14961_s3 + $0x9c4] ss:$12 sps:$4 sm:$0xff]   ;;  %v10131_v39 = vld [vmem:[%s14961_s3 + $0x980] ss:$12 sps:$4 sm:$0xff]  }
 0x218   : > { %4598 = vmatprep.subr.bf16.mxu1 %v10086_v42  ;;  %v10128_v28 = vld [vmem:[%s14961_s3 + $0x9c0] ss:$12 sps:$4 sm:$0xff]  }
 0x21a   : > { %4630 = vmatpush1.bf16.msra.mxu0 %v10081_v17  ;;  %v10132_v17 = vld [vmem:[%s14961_s3 + $0xa28] ss:$12 sps:$4 sm:$0xff]  }
 0x21b   : > { %4631 = vmatprep.subr.bf16.mxu0 %v10089_v50  ;;  %4599 = vmatpush1.bf16.msra.mxu1 %v10084_v53  ;;  %v10133_v50 = vld [vmem:[%s14961_s3 + $0x968] ss:$12 sps:$4 sm:$0xff]   ;;  %v10135_v53 = vld [vmem:[%s14961_s3 + $0xa10] ss:$12 sps:$4 sm:$0xff]  }
 0x21c   : > { %4600 = vmatprep.subr.bf16.mxu1 %v10092_v34  ;;  %v10134_v34 = vld [vmem:[%s14961_s3 + $0xb30] ss:$12 sps:$4 sm:$0xff]  }
 0x21e   : > { %4632 = vmatpush1.bf16.msra.mxu0 %v10087_v41  ;;  %v8756_v21 = vpop.f32.mrf.mxu1  ;;  %v10136_v41 = vld [vmem:[%s14961_s3 + $0x950] ss:$12 sps:$4 sm:$0xff]  }
 0x21f   : > { %4633 = vmatprep.subr.bf16.mxu0 %v10095_v45  ;;  %4601 = vmatpush2.bf16.msra.mxu1 %v10090_v47  ;;  %v10138_v45 = vld [vmem:[%s14961_s3 + $0x9f8] ss:$12 sps:$4 sm:$0xff]  }
 0x220   : > { %v8757_v32 = vpop.f32.mrf.mxu1  ;;  %4602 = vmatprep.subr.bf16.mxu1 %v10098_v60  ;;  %v10137_v47 = vld [vmem:[%s14961_s3 + $0xb18] ss:$12 sps:$4 sm:$0xff]  }
 0x221   : > { %v8758_v22 = vadd.f32 %v8757_v32, %v8756_v21  ;;  %v10139_v60 = vld [vmem:[%s14961_s3 + $0x938] ss:$12 sps:$4 sm:$0xff]   ;;  %v10140_v21 = vld [vmem:[%s14961_s3 + $0xb00] ss:$12 sps:$4 sm:$0xff]   ;;  %v10143_v32 = vld [vmem:[%s14961_s3 + $0xae8] ss:$12 sps:$4 sm:$0xff]  }
 0x222   : > { %4634 = vmatpush1.bf16.msra.mxu0 %v10093_v16  ;;  %v8759_v36 = vpop.f32.mrf.mxu1  ;;  %v10141_v16 = vld [vmem:[%s14961_s3 + $0x9e0] ss:$12 sps:$4 sm:$0xff]  }
 0x223   : > { %4635 = vmatprep.subr.bf16.mxu0 %v10101_v24  ;;  %4603 = vmatpush2.bf16.msra.mxu1 %v10096_v55  ;;  %v10142_v24 = vld [vmem:[%s14961_s3 + $0x920] ss:$12 sps:$4 sm:$0xff]   ;;  %v10144_v55 = vld [vmem:[%s14961_s3 + $0x9c8] ss:$12 sps:$4 sm:$0xff]  }
 0x224   : > { %v8760_v48 = vpop.f32.mrf.mxu1  ;;  %4604 = vmatprep.subr.bf16.mxu1 %v10104_v1  ;;  %v10145_v1 = vld [vmem:[%s14961_s3 + $0x908] ss:$12 sps:$4 sm:$0xff]  }
 0x225   : > { %v10147_v36 = vld [vmem:[%s14961_s3 + $0x768] ss:$12 sps:$4 sm:$0xff]  }
 0x226   : > { %4636 = vmatpush1.bf16.msra.mxu0 %v10099_v29  ;;  %v10146_v29 = vld [vmem:[%s14961_s3 + $0xad0] ss:$12 sps:$4 sm:$0xff]  }
 0x227   : > { %4637 = vmatprep.subr.bf16.mxu0 %v10107_v38  ;;  %4605 = vmatpush2.bf16.msra.mxu1 %v10102_v10  ;;  %v10153_v38 = vld [vmem:[%s14961_s3 + $0x754] ss:$12 sps:$4 sm:$0xff]   ;;  %v10150_v10 = vld [vmem:[%s14961_s3 + $0xab8] ss:$12 sps:$4 sm:$0xff]  }
 0x228   : > { %4606 = vmatprep.subr.bf16.mxu1 %v10110_v63  ;;  %v10151_v63 = vld [vmem:[%s14961_s3 + $0x750] ss:$12 sps:$4 sm:$0xff]  }
 0x22a   : > { %4638 = vmatpush1.bf16.msra.mxu0 %v10105_v12 }
 0x22b   : > { %4639 = vmatprep.subr.bf16.mxu0 %v10113_v52  ;;  %4607 = vmatpush2.bf16.msra.mxu1 %v10108_v30  ;;  %v10157_v52 = vld [vmem:[%s14961_s3 + $0x73c] ss:$12 sps:$4 sm:$0xff]   ;;  %v10154_v30 = vld [vmem:[%s14961_s3 + $0xaa0] ss:$12 sps:$4 sm:$0xff]  }
 0x22c   : > { %4608 = vmatprep.subr.bf16.mxu1 %v10116_v40 }
 0x22e   : > { %4640 = vmatpush1.bf16.msra.mxu0 %v10111_v31  ;;  %v10155_v31 = vld [vmem:[%s14961_s3 + $0x738] ss:$12 sps:$4 sm:$0xff]  }
 0x22f   : > { %8833 = vmatprep.subr.bf16.mxu0 %v10117_v25  ;;  %4609 = vmatpush2.bf16.msra.mxu1 %v10114_v51  ;;  %v10161_v51 = vld [vmem:[%s14961_s3 + $0x724] ss:$12 sps:$4 sm:$0xff]  }
 0x230   : > { %4610 = vmatprep.subr.bf16.mxu1 %v10120_v9  ;;  %v10158_v9 = vld [vmem:[%s14961_s3 + $0xa88] ss:$12 sps:$4 sm:$0xff]  }
 0x231   : > { %v3075_v61 = vpop.f32.mrf.mxu0  ;;  %4658 = vmatmul.mubr.bf16.vlgmr.msra.gmra.mxu0 %v11697_v14 }
 0x232   : > { %v12456_v58 = vadd.f32 %v8758_v22, %v3075_v61  ;;  %8834 = vmatpush3.bf16.msra.mxu0 %v10121_v19  ;;  %4698 = vmatprep.mubr.bf16.mxu0 %v11751_v27  ;;  %v10149_v22 = vld [vmem:[%s14961_s3 + $0x76c] ss:$12 sps:$4 sm:$0xff]   ;;  %v10162_v61 = vld [vmem:[%s14961_s3 + $0x8e8] ss:$12 sps:$4 sm:$0xff]  }
 0x233   : > { %v9370_v57 = vpop.f32.mrf.mxu0  ;;  %8835 = vmatprep.subr.bf16.mxu0 %v10122_v7  ;;  %4611 = vmatpush2.bf16.msra.mxu1 %v10118_v46  ;;  %v10164_v19 = vld [vmem:[%s14961_s3 + $0x8ec] ss:$12 sps:$4 sm:$0xff]  }
 0x234   : > { %4612 = vmatprep.subr.bf16.mxu1 %v10125_v0  ;;  %v10159_v7 = vld [vmem:[%s14961_s3 + $0x720] ss:$12 sps:$4 sm:$0xff]  }
 0x235   : > { %v3078_v5 = vpop.f32.mrf.mxu0  ;;  %v10167_v46 = vld [vmem:[%s14961_s3 + $0x70c] ss:$12 sps:$4 sm:$0xff]   ;;  %v10170_v0 = vld [vmem:[%s14961_s3 + $0x8d4] ss:$12 sps:$4 sm:$0xff]  }
 0x236   : > { %8836 = vmatpush3.bf16.msra.mxu0 %v10126_v44  ;;  %v10165_v44 = vld [vmem:[%s14961_s3 + $0x708] ss:$12 sps:$4 sm:$0xff]   ;;  %v10168_v5 = vld [vmem:[%s14961_s3 + $0x8d0] ss:$12 sps:$4 sm:$0xff]  }
 0x237   : > { %v9371_v42 = vpop.f32.mrf.mxu0  ;;  %8837 = vmatprep.subr.bf16.mxu0 %v10127_v62  ;;  %4613 = vmatpush2.bf16.msra.mxu1 %v10123_v4  ;;  %v10173_v62 = vld [vmem:[%s14961_s3 + $0x6f4] ss:$12 sps:$4 sm:$0xff]  }
 0x238   : > { %4614 = vmatprep.subr.bf16.mxu1 %v10130_v11 }
 0x23a   : > { %8838 = vmatpush3.bf16.msra.mxu0 %v10131_v39  ;;  %v10176_v39 = vld [vmem:[%s14961_s3 + $0x8bc] ss:$12 sps:$4 sm:$0xff]  }
 0x23b   : > { %8839 = vmatprep.subr.bf16.mxu0 %v10132_v17  ;;  %4615 = vmatpush2.bf16.msra.mxu1 %v10128_v28 }
 0x23c   : > { %9412 = vmatprep.subr.bf16.mxu1 %v10944_v2 }
 0x23e   : > { %8840 = vmatpush3.bf16.msra.mxu0 %v10133_v50  ;;  %4617 = vmatmul.mubr.bf16.vlgmr.msra.gmra.mxu1 %v11754_v35  ;;  %v10179_v50 = vld [vmem:[%s14961_s3 + $0x6dc] ss:$12 sps:$4 sm:$0xff]  }
 0x23f   : > { %8841 = vmatprep.subr.bf16.mxu0 %v10135_v53  ;;  %9413 = vmatpush3.bf16.msra.mxu1 %v10134_v34  ;;  %v10174_v34 = vld [vmem:[%s14961_s3 + $0x8b8] ss:$12 sps:$4 sm:$0xff]  }
 0x240   : > { %9428 = vmatprep.mubr.msk.bf16.mxu1 %vm10946_vm1, %v10944_v2  ;;  %9414 = vmatprep.subr.bf16.mxu1 %v10944_v2 }
 0x242   : > { %8842 = vmatpush3.bf16.msra.mxu0 %v10136_v41 }
 0x243   : > { %8843 = vmatprep.subr.bf16.mxu0 %v10138_v45  ;;  %9415 = vmatpush3.bf16.msra.mxu1 %v10137_v47  ;;  %v10177_v45 = vld [vmem:[%s14961_s3 + $0x6d8] ss:$12 sps:$4 sm:$0xff]  }
 0x244   : > { %9416 = vmatprep.subr.bf16.mxu1 %v10944_v2  ;;  %v10185_v47 = vld [vmem:[%s14961_s3 + $0x6c4] ss:$12 sps:$4 sm:$0xff]  }
 0x246   : > { %8844 = vmatpush3.bf16.msra.mxu0 %v10139_v60  ;;  %v10180_v60 = vld [vmem:[%s14961_s3 + $0x8a0] ss:$12 sps:$4 sm:$0xff]  }
 0x247   : > { %8845 = vmatprep.subr.bf16.mxu0 %v10141_v16  ;;  %9417 = vmatpush3.bf16.msra.mxu1 %v10140_v21  ;;  %v10188_v16 = vld [vmem:[%s14961_s3 + $0x88c] ss:$12 sps:$4 sm:$0xff]  }
 0x248   : > { %9418 = vmatprep.subr.bf16.mxu1 %v10944_v2  ;;  %v10183_v21 = vld [vmem:[%s14961_s3 + $0x6c0] ss:$12 sps:$4 sm:$0xff]  }
 0x24a   : > { %8846 = vmatpush3.bf16.msra.mxu0 %v10142_v24  ;;  %v10191_v24 = vld [vmem:[%s14961_s3 + $0x82c] ss:$12 sps:$4 sm:$0xff]  }
 0x24b   : > { %8847 = vmatprep.subr.bf16.mxu0 %v10144_v55  ;;  %9419 = vmatpush3.bf16.msra.mxu1 %v10143_v32  ;;  %v10186_v55 = vld [vmem:[%s14961_s3 + $0x888] ss:$12 sps:$4 sm:$0xff]  }
 0x24c   : > { %9420 = vmatprep.subr.bf16.mxu1 %v10944_v2  ;;  %v10194_v32 = vld [vmem:[%s14961_s3 + $0x874] ss:$12 sps:$4 sm:$0xff]  }
 0x24e   : > { %8848 = vmatpush3.bf16.msra.mxu0 %v10145_v1  ;;  %v10189_v1 = vld [vmem:[%s14961_s3 + $0x828] ss:$12 sps:$4 sm:$0xff]  }
 0x24f   : > { %5130 = vmatprep.subr.bf16.mxu0 %v10149_v22  ;;  %9421 = vmatpush3.bf16.msra.mxu1 %v10146_v29  ;;  %v10197_v22 = vld [vmem:[%s14961_s3 + $0x814] ss:$12 sps:$4 sm:$0xff]   ;;  %v10192_v29 = vld [vmem:[%s14961_s3 + $0x870] ss:$12 sps:$4 sm:$0xff]  }
 0x250   : > { %9422 = vmatprep.subr.bf16.mxu1 %v10944_v2 }
 0x251   : > { %v3540_v48 = vpop.f32.mrf.mxu0  ;;  %4699 = vmatmul.mubr.bf16.vlgmr.msra.gmra.mxu0 %v11754_v35 }
 0x252   : > { %5131 = vmatpush1.bf16.msra.mxu0 %v10147_v36  ;;  %5162 = vmatprep.mubr.bf16.mxu0 %v11740_v49 }
 0x253   : > { %v3542_v12 = vpop.f32.mrf.mxu0  ;;  %5132 = vmatprep.subr.bf16.mxu0 %v10153_v38  ;;  %9423 = vmatpush3.bf16.msra.mxu1 %v10150_v10  ;;  %v10200_v38 = vld [vmem:[%s14961_s3 + $0x85c] ss:$12 sps:$4 sm:$0xff]  }
 0x254   : > { %9424 = vmatprep.subr.bf16.mxu1 %v10944_v2  ;;  %v10195_v10 = vld [vmem:[%s14961_s3 + $0x810] ss:$12 sps:$4 sm:$0xff]  }
 0x255   : > { %v3544_v40 = vpop.f32.mrf.mxu0 }
 0x256   : > { %5133 = vmatpush1.bf16.msra.mxu0 %v10151_v63  ;;  %v10203_v63 = vld [vmem:[%s14961_s3 + $0x7fc] ss:$12 sps:$4 sm:$0xff]   ;;  %v10206_v40 = vld [vmem:[%s14961_s3 + $0x844] ss:$12 sps:$4 sm:$0xff]  }
 0x257   : > { %v3545_v25 = vpop.f32.mrf.mxu0  ;;  %5134 = vmatprep.subr.bf16.mxu0 %v10157_v52  ;;  %9425 = vmatpush3.bf16.msra.mxu1 %v10154_v30  ;;  %v10198_v52 = vld [vmem:[%s14961_s3 + $0x858] ss:$12 sps:$4 sm:$0xff]  }
 0x258   : > { %9426 = vmatprep.subr.bf16.mxu1 %v10944_v2 }
 0x25a   : > { %5135 = vmatpush1.bf16.msra.mxu0 %v10155_v31  ;;  %v10201_v31 = vld [vmem:[%s14961_s3 + $0x7f8] ss:$12 sps:$4 sm:$0xff]  }
 0x25b   : > { %5136 = vmatprep.subr.bf16.mxu0 %v10161_v51  ;;  %9427 = vmatpush3.bf16.msra.mxu1 %v10158_v9  ;;  %v10209_v9 = vld [vmem:[%s14961_s3 + $0x7e4] ss:$12 sps:$4 sm:$0xff]  }
 0x25c   : > { %5171 = vmatprep.subr.bf16.mxu1 %v10164_v19  ;;  %v10204_v19 = vld [vmem:[%s14961_s3 + $0x840] ss:$12 sps:$4 sm:$0xff]  }
 0x25e   : > { %5137 = vmatpush1.bf16.msra.mxu0 %v10159_v7  ;;  %v3499_v57 = vpop.f32.mrf.mxu1  ;;  %9429 = vmatmul.mubr.bf16.vlgmr.msra.gmra.mxu1 %v11697_v14  ;;  %v10210_v7 = vld [vmem:[%s14961_s3 + $0x830] ss:$12 sps:$4 sm:$0xff]  }
 0x25f   : > { %5138 = vmatprep.subr.bf16.mxu0 %v10167_v46  ;;  %v3500_v4 = vadd.f32 %v3499_v57, %v12354_v3  ;;  %5172 = vmatpush1.bf16.msra.mxu1 %v10162_v61  ;;  %v10171_v3 = vld [vmem:[%s14961_s3 + $0x6f0] ss:$12 sps:$4 sm:$0xff]   ;;  %v10214_v46 = vld [vmem:[%s14961_s3 + $0x7cc] ss:$12 sps:$4 sm:$0xff]  }
 0x260   : > { %5203 = vmatprep.mubr.bf16.mxu1 %v10945_v6  ;;  %v3501_v11 = vpop.f32.mrf.mxu1  ;;  %5173 = vmatprep.subr.bf16.mxu1 %v10170_v0  ;;  %v10211_v61 = vld [vmem:[%s14961_s3 + $0x770] ss:$12 sps:$4 sm:$0xff]   ;;  %v10215_v0 = vld [vmem:[%s14961_s3 + $0x818] ss:$12 sps:$4 sm:$0xff]  }
 0x261   : > { %v12595_v42 = vadd.f32 %v3540_v48, %v3500_v4  ;;  %v3502_v17 = vadd.f32 %v3501_v11, %v12363_v13  ;;  %v10182_v13 = vld [vmem:[%s14961_s3 + $0x8a4] ss:$12 sps:$4 sm:$0xff]  }
 0x262   : > { %5139 = vmatpush1.bf16.msra.mxu0 %v10165_v44  ;;  %v3503_v28 = vpop.f32.mrf.mxu1  ;;  %v10212_v44 = vld [vmem:[%s14961_s3 + $0x7c8] ss:$12 sps:$4 sm:$0xff]  }
 0x263   : > { %5140 = vmatprep.subr.bf16.mxu0 %v10173_v62  ;;  %v12604_v53 = vadd.f32 %v3542_v12, %v3502_v17  ;;  %5174 = vmatpush1.bf16.msra.mxu1 %v10168_v5  ;;  %v10219_v62 = vld [vmem:[%s14961_s3 + $0x7b4] ss:$12 sps:$4 sm:$0xff]   ;;  %v10216_v5 = vld [vmem:[%s14961_s3 + $0x758] ss:$12 sps:$4 sm:$0xff]   ;;  %v10217_v17 = vld [vmem:[%s14961_s3 + $0x7b0] ss:$12 sps:$4 sm:$0xff]  }
 0x264   : > { %v3504_v41 = vpop.f32.mrf.mxu1  ;;  %5175 = vmatprep.subr.bf16.mxu1 %v10176_v39  ;;  %v10220_v39 = vld [vmem:[%s14961_s3 + $0x800] ss:$12 sps:$4 sm:$0xff]  }
 0x265   : > { %v10221_v28 = vld [vmem:[%s14961_s3 + $0x740] ss:$12 sps:$4 sm:$0xff]   ;;  %v10222_v41 = vld [vmem:[%s14961_s3 + $0x798] ss:$12 sps:$4 sm:$0xff]  }
 0x266   : > { %5141 = vmatpush1.bf16.msra.mxu0 %v10171_v3 }
 0x267   : > { %5142 = vmatprep.subr.bf16.mxu0 %v10179_v50  ;;  %5176 = vmatpush1.bf16.msra.mxu1 %v10174_v34  ;;  %v10225_v34 = vld [vmem:[%s14961_s3 + $0x7e8] ss:$12 sps:$4 sm:$0xff]  }
 0x268   : > { %5177 = vmatprep.subr.bf16.mxu1 %v10182_v13  ;;  %v10229_v13 = vld [vmem:[%s14961_s3 + $0x784] ss:$12 sps:$4 sm:$0xff]  }
 0x26a   : > { %5143 = vmatpush1.bf16.msra.mxu0 %v10177_v45  ;;  %v10226_v45 = vld [vmem:[%s14961_s3 + $0x728] ss:$12 sps:$4 sm:$0xff]  }
 0x26b   : > { %5144 = vmatprep.subr.bf16.mxu0 %v10185_v47  ;;  %5178 = vmatpush1.bf16.msra.mxu1 %v10180_v60  ;;  %v10230_v47 = vld [vmem:[%s14961_s3 + $0x7d0] ss:$12 sps:$4 sm:$0xff]   ;;  %v10227_v60 = vld [vmem:[%s14961_s3 + $0x780] ss:$12 sps:$4 sm:$0xff]  }
 0x26c   : > { %5179 = vmatprep.subr.bf16.mxu1 %v10188_v16  ;;  %v10231_v16 = vld [vmem:[%s14961_s3 + $0x710] ss:$12 sps:$4 sm:$0xff]  }
 0x26e   : > { %5145 = vmatpush1.bf16.msra.mxu0 %v10183_v21  ;;  %v10232_v21 = vld [vmem:[%s14961_s3 + $0x7b8] ss:$12 sps:$4 sm:$0xff]  }
 0x26f   : > { %5146 = vmatprep.subr.bf16.mxu0 %v10191_v24  ;;  %5180 = vmatpush1.bf16.msra.mxu1 %v10186_v55  ;;  %v10233_v24 = vld [vmem:[%s14961_s3 + $0x8f0] ss:$12 sps:$4 sm:$0xff]   ;;  %v10234_v55 = vld [vmem:[%s14961_s3 + $0x6f8] ss:$12 sps:$4 sm:$0xff]  }
 0x270   : > { %5181 = vmatprep.subr.bf16.mxu1 %v10194_v32  ;;  %v10235_v32 = vld [vmem:[%s14961_s3 + $0x7a0] ss:$12 sps:$4 sm:$0xff]  }
 0x271   : > { %v8787_v36 = vpop.f32.mrf.mxu0 }
 0x272   : > { %5147 = vmatpush2.bf16.msra.mxu0 %v10189_v1  ;;  %v10236_v1 = vld [vmem:[%s14961_s3 + $0x8d8] ss:$12 sps:$4 sm:$0xff]  }
 0x273   : > { %v8788_v48 = vpop.f32.mrf.mxu0  ;;  %5148 = vmatprep.subr.bf16.mxu0 %v10197_v22  ;;  %5182 = vmatpush1.bf16.msra.mxu1 %v10192_v29  ;;  %v10237_v22 = vld [vmem:[%s14961_s3 + $0x6e0] ss:$12 sps:$4 sm:$0xff]   ;;  %v10238_v29 = vld [vmem:[%s14961_s3 + $0x788] ss:$12 sps:$4 sm:$0xff]  }
 0x274   : > { %v8789_v12 = vadd.f32 %v8788_v48, %v8787_v36  ;;  %5183 = vmatprep.subr.bf16.mxu1 %v10200_v38  ;;  %v10239_v36 = vld [vmem:[%s14961_s3 + $0x8c0] ss:$12 sps:$4 sm:$0xff]   ;;  %v10240_v38 = vld [vmem:[%s14961_s3 + $0x6c8] ss:$12 sps:$4 sm:$0xff]  }
 0x275   : > { %v8790_v30 = vpop.f32.mrf.mxu0  ;;  %v10241_v48 = vld [vmem:[%s14961_s3 + $0x8a8] ss:$12 sps:$4 sm:$0xff]  }
 0x276   : > { %5149 = vmatpush2.bf16.msra.mxu0 %v10195_v10  ;;  %v3582_v25 = vadd.f32 %v8789_v12, %v12456_v58  ;;  %v10207_v58 = vld [vmem:[%s14961_s3 + $0x7e0] ss:$12 sps:$4 sm:$0xff]  }
 0x277   : > { %v8791_v51 = vpop.f32.mrf.mxu0  ;;  %5150 = vmatprep.subr.bf16.mxu0 %v10203_v63  ;;  %5184 = vmatpush1.bf16.msra.mxu1 %v10198_v52  ;;  %v10244_v10 = vld [vmem:[%s14961_s3 + $0xbec] ss:$12 sps:$4 sm:$0xff]   ;;  %v10242_v63 = vld [vmem:[%s14961_s3 + $0xbe8] ss:$12 sps:$4 sm:$0xff]   ;;  %v10245_v52 = vld [vmem:[%s14961_s3 + $0x890] ss:$12 sps:$4 sm:$0xff]  }
 0x278   : > { %5185 = vmatprep.subr.bf16.mxu1 %v10206_v40  ;;  %v10248_v12 = vld [vmem:[%s14961_s3 + $0xbd4] ss:$12 sps:$4 sm:$0xff]   ;;  %v10246_v40 = vld [vmem:[%s14961_s3 + $0xbd0] ss:$12 sps:$4 sm:$0xff]  }
 0x27a   : > { %5151 = vmatpush2.bf16.msra.mxu0 %v10201_v31 }
 0x27b   : > { %5152 = vmatprep.subr.bf16.mxu0 %v10209_v9  ;;  %5186 = vmatpush1.bf16.msra.mxu1 %v10204_v19  ;;  %v10250_v9 = vld [vmem:[%s14961_s3 + $0xbb8] ss:$12 sps:$4 sm:$0xff]  }
 0x27c   : > { %8864 = vmatprep.subr.bf16.mxu1 %v10210_v7  ;;  %v10256_v7 = vld [vmem:[%s14961_s3 + $0xba4] ss:$12 sps:$4 sm:$0xff]  }
 0x27e   : > { %5153 = vmatpush2.bf16.msra.mxu0 %v10207_v58  ;;  %v3621_v57 = vpop.f32.mrf.mxu1  ;;  %5204 = vmatmul.mubr.bf16.vlgmr.msra.gmra.mxu1 %v11683_v33  ;;  %v10253_v58 = vld [vmem:[%s14961_s3 + $0x860] ss:$12 sps:$4 sm:$0xff]  }
 0x27f   : > { %5154 = vmatprep.subr.bf16.mxu0 %v10214_v46  ;;  %v12692_v4 = vadd.f32 %v3621_v57, %v3582_v25  ;;  %8865 = vmatpush3.bf16.msra.mxu1 %v10211_v61  ;;  %v10252_v25 = vld [vmem:[%s14961_s3 + $0xbbc] ss:$12 sps:$4 sm:$0xff]   ;;  %v10254_v46 = vld [vmem:[%s14961_s3 + $0xba0] ss:$12 sps:$4 sm:$0xff]  }
 0x280   : > { %5244 = vmatprep.mubr.bf16.mxu1 %v11740_v49  ;;  %v9390_v11 = vpop.f32.mrf.mxu1  ;;  %8866 = vmatprep.subr.bf16.mxu1 %v10215_v0  ;;  %v10224_v49 = vld [vmem:[%s14961_s3 + $0x79c] ss:$12 sps:$4 sm:$0xff]   ;;  %v10260_v61 = vld [vmem:[%s14961_s3 + $0xb8c] ss:$12 sps:$4 sm:$0xff]  }
 0x281   : > { %v10257_v0 = vld [vmem:[%s14961_s3 + $0x848] ss:$12 sps:$4 sm:$0xff]  }
 0x282   : > { %5155 = vmatpush2.bf16.msra.mxu0 %v10212_v44  ;;  %v3624_v3 = vpop.f32.mrf.mxu1  ;;  %v10263_v44 = vld [vmem:[%s14961_s3 + $0xd6c] ss:$12 sps:$4 sm:$0xff]   ;;  %v10258_v57 = vld [vmem:[%s14961_s3 + $0xb88] ss:$12 sps:$4 sm:$0xff]  }
 0x283   : > { %5156 = vmatprep.subr.bf16.mxu0 %v10219_v62  ;;  %8867 = vmatpush3.bf16.msra.mxu1 %v10216_v5  ;;  %v10266_v62 = vld [vmem:[%s14961_s3 + $0xb74] ss:$12 sps:$4 sm:$0xff]   ;;  %v10272_v3 = vld [vmem:[%s14961_s3 + $0xb5c] ss:$12 sps:$4 sm:$0xff]  }
 0x284   : > { %v9391_v50 = vpop.f32.mrf.mxu1  ;;  %8868 = vmatprep.subr.bf16.mxu1 %v10220_v39  ;;  %v10261_v5 = vld [vmem:[%s14961_s3 + $0xd68] ss:$12 sps:$4 sm:$0xff]   ;;  %v10264_v39 = vld [vmem:[%s14961_s3 + $0xb70] ss:$12 sps:$4 sm:$0xff]  }
 0x285   : > { %v10269_v11 = vld [vmem:[%s14961_s3 + $0xd54] ss:$12 sps:$4 sm:$0xff]  }
 0x286   : > { %5157 = vmatpush2.bf16.msra.mxu0 %v10217_v17 }
 0x287   : > { %5158 = vmatprep.subr.bf16.mxu0 %v10224_v49  ;;  %8869 = vmatpush3.bf16.msra.mxu1 %v10221_v28  ;;  %v10267_v28 = vld [vmem:[%s14961_s3 + $0xd50] ss:$12 sps:$4 sm:$0xff]  }
 0x288   : > { %8870 = vmatprep.subr.bf16.mxu1 %v10225_v34  ;;  %v10275_v34 = vld [vmem:[%s14961_s3 + $0xd3c] ss:$12 sps:$4 sm:$0xff]  }
 0x28a   : > { %5159 = vmatpush2.bf16.msra.mxu0 %v10222_v41 }
 0x28b   : > { %5160 = vmatprep.subr.bf16.mxu0 %v10229_v13  ;;  %8871 = vmatpush3.bf16.msra.mxu1 %v10226_v45  ;;  %v10270_v13 = vld [vmem:[%s14961_s3 + $0xb58] ss:$12 sps:$4 sm:$0xff]  }
 0x28c   : > { %8872 = vmatprep.subr.bf16.mxu1 %v10230_v47  ;;  %v10278_v47 = vld [vmem:[%s14961_s3 + $0xb44] ss:$12 sps:$4 sm:$0xff]  }
 0x28e   : > { %5161 = vmatpush2.bf16.msra.mxu0 %v10227_v60 }
 0x28f   : > { %9432 = vmatprep.subr.bf16.mxu0 %v10944_v2  ;;  %8873 = vmatpush3.bf16.msra.mxu1 %v10231_v16 }
 0x290   : > { %8874 = vmatprep.subr.bf16.mxu1 %v10232_v21  ;;  %v10281_v21 = vld [vmem:[%s14961_s3 + $0xd24] ss:$12 sps:$4 sm:$0xff]  }
 0x291   : > { %5163 = vmatmul.mubr.bf16.vlgmr.msra.gmra.mxu0 %v11736_v23 }
 0x292   : > { %9433 = vmatpush3.bf16.msra.mxu0 %v10233_v24  ;;  %9448 = vmatprep.mubr.msk.bf16.mxu0 %vm10946_vm1, %v10944_v2  ;;  %v10276_v24 = vld [vmem:[%s14961_s3 + $0xb40] ss:$12 sps:$4 sm:$0xff]  }
 0x293   : > { %9434 = vmatprep.subr.bf16.mxu0 %v10944_v2  ;;  %8875 = vmatpush3.bf16.msra.mxu1 %v10234_v55  ;;  %v10279_v55 = vld [vmem:[%s14961_s3 + $0xd20] ss:$12 sps:$4 sm:$0xff]  }
 0x294   : > { %8876 = vmatprep.subr.bf16.mxu1 %v10235_v32  ;;  %v10287_v32 = vld [vmem:[%s14961_s3 + $0xd0c] ss:$12 sps:$4 sm:$0xff]  }
 0x296   : > { %9435 = vmatpush3.bf16.msra.mxu0 %v10236_v1  ;;  %v10282_v1 = vld [vmem:[%s14961_s3 + $0xca8] ss:$12 sps:$4 sm:$0xff]  }
 0x297   : > { %9436 = vmatprep.subr.bf16.mxu0 %v10944_v2  ;;  %8877 = vmatpush3.bf16.msra.mxu1 %v10237_v22  ;;  %v10290_v22 = vld [vmem:[%s14961_s3 + $0xc94] ss:$12 sps:$4 sm:$0xff]  }
 0x298   : > { %8878 = vmatprep.subr.bf16.mxu1 %v10238_v29  ;;  %v10285_v29 = vld [vmem:[%s14961_s3 + $0xd08] ss:$12 sps:$4 sm:$0xff]  }
 0x29a   : > { %9437 = vmatpush3.bf16.msra.mxu0 %v10239_v36 }
 0x29b   : > { %9438 = vmatprep.subr.bf16.mxu0 %v10944_v2  ;;  %8879 = vmatpush3.bf16.msra.mxu1 %v10240_v38  ;;  %v10293_v38 = vld [vmem:[%s14961_s3 + $0xcf4] ss:$12 sps:$4 sm:$0xff]  }
 0x29c   : > { %5676 = vmatprep.subr.bf16.mxu1 %v10244_v10  ;;  %v10288_v10 = vld [vmem:[%s14961_s3 + $0xc90] ss:$12 sps:$4 sm:$0xff]  }
 0x29e   : > { %9439 = vmatpush3.bf16.msra.mxu0 %v10241_v48  ;;  %v4110_v30 = vpop.f32.mrf.mxu1  ;;  %5245 = vmatmul.mubr.bf16.vlgmr.msra.gmra.mxu1 %v11736_v23  ;;  %v10249_v23 = vld [vmem:[%s14961_s3 + $0x878] ss:$12 sps:$4 sm:$0xff]  }
 0x29f   : > { %9440 = vmatprep.subr.bf16.mxu0 %v10944_v2  ;;  %5677 = vmatpush1.bf16.msra.mxu1 %v10242_v63  ;;  %v10296_v63 = vld [vmem:[%s14961_s3 + $0xc7c] ss:$12 sps:$4 sm:$0xff]  }
 0x2a0   : > { %5708 = vmatprep.mubr.bf16.mxu1 %v12053_v54  ;;  %v4112_v31 = vpop.f32.mrf.mxu1  ;;  %5678 = vmatprep.subr.bf16.mxu1 %v10248_v12 }
 0x2a2   : > { %9441 = vmatpush3.bf16.msra.mxu0 %v10245_v52  ;;  %v4114_v51 = vpop.f32.mrf.mxu1  ;;  %v10291_v52 = vld [vmem:[%s14961_s3 + $0xcf0] ss:$12 sps:$4 sm:$0xff]  }
 0x2a3   : > { %9442 = vmatprep.subr.bf16.mxu0 %v10944_v2  ;;  %5679 = vmatpush1.bf16.msra.mxu1 %v10246_v40  ;;  %v10299_v40 = vld [vmem:[%s14961_s3 + $0xcdc] ss:$12 sps:$4 sm:$0xff]   ;;  %v10297_v51 = vld [vmem:[%s14961_s3 + $0xcd8] ss:$12 sps:$4 sm:$0xff]  }
 0x2a4   : > { %v4115_v19 = vpop.f32.mrf.mxu1  ;;  %5680 = vmatprep.subr.bf16.mxu1 %v10252_v25 }
 0x2a5   : > { %v10300_v19 = vld [vmem:[%s14961_s3 + $0xc60] ss:$12 sps:$4 sm:$0xff]  }
 0x2a6   : > { %9443 = vmatpush3.bf16.msra.mxu0 %v10249_v23  ;;  %v10302_v23 = vld [vmem:[%s14961_s3 + $0xc64] ss:$12 sps:$4 sm:$0xff]  }
 0x2a7   : > { %9444 = vmatprep.subr.bf16.mxu0 %v10944_v2  ;;  %5681 = vmatpush1.bf16.msra.mxu1 %v10250_v9  ;;  %v10305_v9 = vld [vmem:[%s14961_s3 + $0xcc4] ss:$12 sps:$4 sm:$0xff]  }
 0x2a8   : > { %5682 = vmatprep.subr.bf16.mxu1 %v10256_v7  ;;  %v10308_v7 = vld [vmem:[%s14961_s3 + $0xc4c] ss:$12 sps:$4 sm:$0xff]  }
 0x2aa   : > { %9445 = vmatpush3.bf16.msra.mxu0 %v10253_v58  ;;  %v10303_v58 = vld [vmem:[%s14961_s3 + $0xcc0] ss:$12 sps:$4 sm:$0xff]  }
 0x2ab   : > { %9446 = vmatprep.subr.bf16.mxu0 %v10944_v2  ;;  %5683 = vmatpush1.bf16.msra.mxu1 %v10254_v46  ;;  %v10309_v46 = vld [vmem:[%s14961_s3 + $0xcb0] ss:$12 sps:$4 sm:$0xff]  }
 0x2ac   : > { %5684 = vmatprep.subr.bf16.mxu1 %v10260_v61  ;;  %v10306_v61 = vld [vmem:[%s14961_s3 + $0xc48] ss:$12 sps:$4 sm:$0xff]  }
 0x2ae   : > { %9447 = vmatpush3.bf16.msra.mxu0 %v10257_v0  ;;  %v10312_v0 = vld [vmem:[%s14961_s3 + $0xc34] ss:$12 sps:$4 sm:$0xff]  }
 0x2af   : > { %5717 = vmatprep.subr.bf16.mxu0 %v10263_v44  ;;  %5685 = vmatpush1.bf16.msra.mxu1 %v10258_v57  ;;  %v10313_v44 = vld [vmem:[%s14961_s3 + $0xbf0] ss:$12 sps:$4 sm:$0xff]   ;;  %v10314_v57 = vld [vmem:[%s14961_s3 + $0xc98] ss:$12 sps:$4 sm:$0xff]  }
 0x2b0   : > { %5686 = vmatprep.subr.bf16.mxu1 %v10266_v62  ;;  %v10310_v62 = vld [vmem:[%s14961_s3 + $0xc30] ss:$12 sps:$4 sm:$0xff]  }
 0x2b1   : > { %v4069_v17 = vpop.f32.mrf.mxu0  ;;  %9449 = vmatmul.mubr.bf16.vlgmr.msra.gmra.mxu0 %v11683_v33 }
 0x2b2   : > { %v4111_v49 = vadd.f32 %v4110_v30, %v4069_v17  ;;  %5718 = vmatpush1.bf16.msra.mxu0 %v10261_v5  ;;  %5749 = vmatprep.mubr.bf16.mxu0 %v10945_v6  ;;  %v10318_v17 = vld [vmem:[%s14961_s3 + $0xbd8] ss:$12 sps:$4 sm:$0xff]  }
 0x2b3   : > { %v4071_v50 = vpop.f32.mrf.mxu0  ;;  %5719 = vmatprep.subr.bf16.mxu0 %v10269_v11  ;;  %5687 = vmatpush1.bf16.msra.mxu1 %v10264_v39  ;;  %v10317_v11 = vld [vmem:[%s14961_s3 + $0xc1c] ss:$12 sps:$4 sm:$0xff]  }
 0x2b4   : > { %v12843_v33 = vadd.f32 %v4111_v49, %v12595_v42  ;;  %v4113_v41 = vadd.f32 %v4112_v31, %v4071_v50  ;;  %5688 = vmatprep.subr.bf16.mxu1 %v10272_v3  ;;  %v10273_v42 = vld [vmem:[%s14961_s3 + $0xd38] ss:$12 sps:$4 sm:$0xff]   ;;  %v10319_v49 = vld [vmem:[%s14961_s3 + $0xc80] ss:$12 sps:$4 sm:$0xff]  }
 0x2b5   : > { %v4073_v45 = vpop.f32.mrf.mxu0  ;;  %v10294_v31 = vld [vmem:[%s14961_s3 + $0xc78] ss:$12 sps:$4 sm:$0xff]  }
 0x2b6   : > { %v12852_v60 = vadd.f32 %v4113_v41, %v12604_v53  ;;  %5720 = vmatpush1.bf16.msra.mxu0 %v10267_v28  ;;  %v10284_v53 = vld [vmem:[%s14961_s3 + $0xcac] ss:$12 sps:$4 sm:$0xff]   ;;  %v10322_v41 = vld [vmem:[%s14961_s3 + $0xc04] ss:$12 sps:$4 sm:$0xff]  }
 0x2b7   : > { %v4074_v16 = vpop.f32.mrf.mxu0  ;;  %5721 = vmatprep.subr.bf16.mxu0 %v10275_v34  ;;  %5689 = vmatpush1.bf16.msra.mxu1 %v10270_v13  ;;  %v10315_v50 = vld [vmem:[%s14961_s3 + $0xc18] ss:$12 sps:$4 sm:$0xff]   ;;  %v10323_v13 = vld [vmem:[%s14961_s3 + $0xbc0] ss:$12 sps:$4 sm:$0xff]  }
 0x2b8   : > { %5690 = vmatprep.subr.bf16.mxu1 %v10278_v47  ;;  %v10320_v47 = vld [vmem:[%s14961_s3 + $0xc00] ss:$12 sps:$4 sm:$0xff]   ;;  %v10327_v16 = vld [vmem:[%s14961_s3 + $0xc50] ss:$12 sps:$4 sm:$0xff]  }
 0x2ba   : > { %5722 = vmatpush1.bf16.msra.mxu0 %v10273_v42  ;;  %v10325_v42 = vld [vmem:[%s14961_s3 + $0xba8] ss:$12 sps:$4 sm:$0xff]  }
 0x2bb   : > { %5723 = vmatprep.subr.bf16.mxu0 %v10281_v21  ;;  %5691 = vmatpush1.bf16.msra.mxu1 %v10276_v24  ;;  %v10326_v21 = vld [vmem:[%s14961_s3 + $0xd70] ss:$12 sps:$4 sm:$0xff]  }
 0x2bc   : > { %5692 = vmatprep.subr.bf16.mxu1 %v10284_v53  ;;  %v10328_v24 = vld [vmem:[%s14961_s3 + $0xb90] ss:$12 sps:$4 sm:$0xff]   ;;  %v10330_v53 = vld [vmem:[%s14961_s3 + $0xc38] ss:$12 sps:$4 sm:$0xff]  }
 0x2be   : > { %5724 = vmatpush1.bf16.msra.mxu0 %v10279_v55  ;;  %v8818_v36 = vpop.f32.mrf.mxu1  ;;  %v10329_v55 = vld [vmem:[%s14961_s3 + $0xd58] ss:$12 sps:$4 sm:$0xff]  }
 0x2bf   : > { %5725 = vmatprep.subr.bf16.mxu0 %v10287_v32  ;;  %5693 = vmatpush2.bf16.msra.mxu1 %v10282_v1  ;;  %v10331_v32 = vld [vmem:[%s14961_s3 + $0xb78] ss:$12 sps:$4 sm:$0xff]   ;;  %v10333_v1 = vld [vmem:[%s14961_s3 + $0xc20] ss:$12 sps:$4 sm:$0xff]  }
 0x2c0   : > { %v8819_v48 = vpop.f32.mrf.mxu1  ;;  %5694 = vmatprep.subr.bf16.mxu1 %v10290_v22  ;;  %v10332_v22 = vld [vmem:[%s14961_s3 + $0xd40] ss:$12 sps:$4 sm:$0xff]  }
 0x2c1   : > { %v8820_v12 = vadd.f32 %v8819_v48, %v8818_v36  ;;  %v10336_v36 = vld [vmem:[%s14961_s3 + $0xc08] ss:$12 sps:$4 sm:$0xff]   ;;  %v10338_v48 = vld [vmem:[%s14961_s3 + $0xd10] ss:$12 sps:$4 sm:$0xff]  }
 0x2c2   : > { %5726 = vmatpush1.bf16.msra.mxu0 %v10285_v29  ;;  %v8821_v30 = vpop.f32.mrf.mxu1  ;;  %v10334_v29 = vld [vmem:[%s14961_s3 + $0xb60] ss:$12 sps:$4 sm:$0xff]  }
 0x2c3   : > { %5727 = vmatprep.subr.bf16.mxu0 %v10293_v38  ;;  %5695 = vmatpush2.bf16.msra.mxu1 %v10288_v10  ;;  %v10335_v38 = vld [vmem:[%s14961_s3 + $0xd28] ss:$12 sps:$4 sm:$0xff]  }
 0x2c4   : > { %v8822_v25 = vpop.f32.mrf.mxu1  ;;  %5696 = vmatprep.subr.bf16.mxu1 %v10296_v63  ;;  %v10337_v10 = vld [vmem:[%s14961_s3 + $0xb48] ss:$12 sps:$4 sm:$0xff]   ;;  %v10450_v63 = vld [vmem:[%s14961_s3 + $0x2ec] ss:$12 sps:$4 sm:$0xff]  }
 0x2c5   : > { %v10451_v30 = vld [vmem:[%s14961_s3 + $0x2e8] ss:$12 sps:$4 sm:$0xff]   ;;  %v10340_v25 = vld [vmem:[%s14961_s3 + $0xce0] ss:$12 sps:$4 sm:$0xff]  }
 0x2c6   : > { %5728 = vmatpush1.bf16.msra.mxu0 %v10291_v52 }
 0x2c7   : > { %5729 = vmatprep.subr.bf16.mxu0 %v10299_v40  ;;  %5697 = vmatpush2.bf16.msra.mxu1 %v10294_v31  ;;  %v10452_v31 = vld [vmem:[%s14961_s3 + $0x2d4] ss:$12 sps:$4 sm:$0xff]  }
 0x2c8   : > { %5698 = vmatprep.subr.bf16.mxu1 %v10302_v23 }
 0x2ca   : > { %5730 = vmatpush1.bf16.msra.mxu0 %v10297_v51  ;;  %v10453_v51 = vld [vmem:[%s14961_s3 + $0x2d0] ss:$12 sps:$4 sm:$0xff]  }
 0x2cb   : > { %5731 = vmatprep.subr.bf16.mxu0 %v10305_v9  ;;  %5699 = vmatpush2.bf16.msra.mxu1 %v10300_v19  ;;  %v10454_v19 = vld [vmem:[%s14961_s3 + $0x2bc] ss:$12 sps:$4 sm:$0xff]  }
 0x2cc   : > { %5700 = vmatprep.subr.bf16.mxu1 %v10308_v7  ;;  %v10341_v7 = vld [vmem:[%s14961_s3 + $0xcc8] ss:$12 sps:$4 sm:$0xff]  }
 0x2ce   : > { %5732 = vmatpush1.bf16.msra.mxu0 %v10303_v58  ;;  %v10455_v58 = vld [vmem:[%s14961_s3 + $0x2b8] ss:$12 sps:$4 sm:$0xff]  }
 0x2cf   : > { %8895 = vmatprep.subr.bf16.mxu0 %v10309_v46  ;;  %5701 = vmatpush2.bf16.msra.mxu1 %v10306_v61  ;;  %v10456_v46 = vld [vmem:[%s14961_s3 + $0x2a4] ss:$12 sps:$4 sm:$0xff]   ;;  %v10457_v61 = vld [vmem:[%s14961_s3 + $0x46c] ss:$12 sps:$4 sm:$0xff]  }
 0x2d0   : > { %5702 = vmatprep.subr.bf16.mxu1 %v10312_v0  ;;  %v10458_v0 = vld [vmem:[%s14961_s3 + $0x2a0] ss:$12 sps:$4 sm:$0xff]  }
 0x2d1   : > { %v4191_v5 = vpop.f32.mrf.mxu0  ;;  %5750 = vmatmul.mubr.bf16.vlgmr.msra.gmra.mxu0 %v12195_v15 }
 0x2d2   : > { %v4192_v39 = vadd.f32 %v8820_v12, %v4191_v5  ;;  %8896 = vmatpush3.bf16.msra.mxu0 %v10313_v44  ;;  %5790 = vmatprep.mubr.bf16.mxu0 %v12053_v54  ;;  %v10339_v12 = vld [vmem:[%s14961_s3 + $0xcf8] ss:$12 sps:$4 sm:$0xff]   ;;  %v10460_v5 = vld [vmem:[%s14961_s3 + $0x468] ss:$12 sps:$4 sm:$0xff]  }
 0x2d3   : > { %v9410_v3 = vpop.f32.mrf.mxu0  ;;  %8897 = vmatprep.subr.bf16.mxu0 %v10314_v57  ;;  %5703 = vmatpush2.bf16.msra.mxu1 %v10310_v62  ;;  %v10459_v57 = vld [vmem:[%s14961_s3 + $0x28c] ss:$12 sps:$4 sm:$0xff]  }
 0x2d4   : > { %v12947_v28 = vadd.f32 %v4192_v39, %v12692_v4  ;;  %5704 = vmatprep.subr.bf16.mxu1 %v10317_v11  ;;  %v10324_v4 = vld [vmem:[%s14961_s3 + $0xc68] ss:$12 sps:$4 sm:$0xff]  }
 0x2d5   : > { %v4194_v34 = vpop.f32.mrf.mxu0  ;;  %v10461_v39 = vld [vmem:[%s14961_s3 + $0x454] ss:$12 sps:$4 sm:$0xff]  }
 0x2d6   : > { %8898 = vmatpush3.bf16.msra.mxu0 %v10318_v17  ;;  %v10462_v3 = vld [vmem:[%s14961_s3 + $0x288] ss:$12 sps:$4 sm:$0xff]   ;;  %v10464_v34 = vld [vmem:[%s14961_s3 + $0x450] ss:$12 sps:$4 sm:$0xff]  }
 0x2d7   : > { %v9411_v45 = vpop.f32.mrf.mxu0  ;;  %8899 = vmatprep.subr.bf16.mxu0 %v10319_v49  ;;  %5705 = vmatpush2.bf16.msra.mxu1 %v10315_v50  ;;  %v10463_v50 = vld [vmem:[%s14961_s3 + $0x274] ss:$12 sps:$4 sm:$0xff]  }
 0x2d8   : > { %5706 = vmatprep.subr.bf16.mxu1 %v10322_v41  ;;  %v10466_v45 = vld [vmem:[%s14961_s3 + $0x270] ss:$12 sps:$4 sm:$0xff]  }
 0x2da   : > { %8900 = vmatpush3.bf16.msra.mxu0 %v10323_v13  ;;  %v10465_v13 = vld [vmem:[%s14961_s3 + $0x43c] ss:$12 sps:$4 sm:$0xff]  }
 0x2db   : > { %8901 = vmatprep.subr.bf16.mxu0 %v10324_v4  ;;  %5707 = vmatpush2.bf16.msra.mxu1 %v10320_v47  ;;  %v10467_v4 = vld [vmem:[%s14961_s3 + $0x25c] ss:$12 sps:$4 sm:$0xff]   ;;  %v10468_v47 = vld [vmem:[%s14961_s3 + $0x438] ss:$12 sps:$4 sm:$0xff]  }
 0x2dc   : > { %9452 = vmatprep.subr.bf16.mxu1 %v10944_v2 }
 0x2de   : > { %8902 = vmatpush3.bf16.msra.mxu0 %v10325_v42  ;;  %5709 = vmatmul.mubr.bf16.vlgmr.msra.gmra.mxu1 %v12254_v26  ;;  %v10469_v42 = vld [vmem:[%s14961_s3 + $0x424] ss:$12 sps:$4 sm:$0xff]  }
 0x2df   : > { %8903 = vmatprep.subr.bf16.mxu0 %v10327_v16  ;;  %9453 = vmatpush3.bf16.msra.mxu1 %v10326_v21  ;;  %v10470_v16 = vld [vmem:[%s14961_s3 + $0x258] ss:$12 sps:$4 sm:$0xff]  }
 0x2e0   : > { %9468 = vmatprep.mubr.msk.bf16.mxu1 %vm10946_vm1, %v10944_v2  ;;  %9454 = vmatprep.subr.bf16.mxu1 %v10944_v2  ;;  %v10471_v21 = vld [vmem:[%s14961_s3 + $0x244] ss:$12 sps:$4 sm:$0xff]  }
 0x2e2   : > { %8904 = vmatpush3.bf16.msra.mxu0 %v10328_v24  ;;  %v10472_v24 = vld [vmem:[%s14961_s3 + $0x420] ss:$12 sps:$4 sm:$0xff]  }
 0x2e3   : > { %8905 = vmatprep.subr.bf16.mxu0 %v10330_v53  ;;  %9455 = vmatpush3.bf16.msra.mxu1 %v10329_v55  ;;  %v10473_v53 = vld [vmem:[%s14961_s3 + $0x40c] ss:$12 sps:$4 sm:$0xff]  }
 0x2e4   : > { %9456 = vmatprep.subr.bf16.mxu1 %v10944_v2  ;;  %v10474_v55 = vld [vmem:[%s14961_s3 + $0x240] ss:$12 sps:$4 sm:$0xff]  }
 0x2e6   : > { %8906 = vmatpush3.bf16.msra.mxu0 %v10331_v32  ;;  %v10475_v32 = vld [vmem:[%s14961_s3 + $0x3ac] ss:$12 sps:$4 sm:$0xff]  }
 0x2e7   : > { %8907 = vmatprep.subr.bf16.mxu0 %v10333_v1  ;;  %9457 = vmatpush3.bf16.msra.mxu1 %v10332_v22  ;;  %v10476_v1 = vld [vmem:[%s14961_s3 + $0x408] ss:$12 sps:$4 sm:$0xff]  }
 0x2e8   : > { %9458 = vmatprep.subr.bf16.mxu1 %v10944_v2 }
 0x2ea   : > { %8908 = vmatpush3.bf16.msra.mxu0 %v10334_v29  ;;  %v10477_v29 = vld [vmem:[%s14961_s3 + $0x3f4] ss:$12 sps:$4 sm:$0xff]  }
 0x2eb   : > { %8909 = vmatprep.subr.bf16.mxu0 %v10336_v36  ;;  %9459 = vmatpush3.bf16.msra.mxu1 %v10335_v38  ;;  %v10478_v36 = vld [vmem:[%s14961_s3 + $0x3a8] ss:$12 sps:$4 sm:$0xff]  }
 0x2ec   : > { %9460 = vmatprep.subr.bf16.mxu1 %v10944_v2 }
 0x2ee   : > { %8910 = vmatpush3.bf16.msra.mxu0 %v10337_v10  ;;  %v10479_v10 = vld [vmem:[%s14961_s3 + $0x394] ss:$12 sps:$4 sm:$0xff]  }
 0x2ef   : > { %5844 = vmatprep.subr.bf16.mxu0 %v10450_v63  ;;  %9461 = vmatpush3.bf16.msra.mxu1 %v10338_v48  ;;  %v10480_v63 = vld [vmem:[%s14961_s3 + $0x3f0] ss:$12 sps:$4 sm:$0xff]  }
 0x2f0   : > { %9462 = vmatprep.subr.bf16.mxu1 %v10944_v2 }
 0x2f1   : > { %v4659_v52 = vpop.f32.mrf.mxu0  ;;  %5791 = vmatmul.mubr.bf16.vlgmr.msra.gmra.mxu0 %v12254_v26 }
 0x2f2   : > { %5845 = vmatpush1.bf16.msra.mxu0 %v10451_v30  ;;  %5876 = vmatprep.mubr.bf16.mxu0 %v12053_v54  ;;  %v10482_v30 = vld [vmem:[%s14961_s3 + $0x390] ss:$12 sps:$4 sm:$0xff]  }
 0x2f3   : > { %v4661_v40 = vpop.f32.mrf.mxu0  ;;  %5846 = vmatprep.subr.bf16.mxu0 %v10452_v31  ;;  %9463 = vmatpush3.bf16.msra.mxu1 %v10339_v12  ;;  %v10483_v31 = vld [vmem:[%s14961_s3 + $0x37c] ss:$12 sps:$4 sm:$0xff]  }
 0x2f4   : > { %9464 = vmatprep.subr.bf16.mxu1 %v10944_v2 }
 0x2f5   : > { %v4663_v23 = vpop.f32.mrf.mxu0 }
 0x2f6   : > { %5847 = vmatpush1.bf16.msra.mxu0 %v10453_v51  ;;  %v10485_v23 = vld [vmem:[%s14961_s3 + $0x3c4] ss:$12 sps:$4 sm:$0xff]  }
 0x2f7   : > { %v4664_v9 = vpop.f32.mrf.mxu0  ;;  %5848 = vmatprep.subr.bf16.mxu0 %v10454_v19  ;;  %9465 = vmatpush3.bf16.msra.mxu1 %v10340_v25  ;;  %v10484_v25 = vld [vmem:[%s14961_s3 + $0x3d8] ss:$12 sps:$4 sm:$0xff]   ;;  %v10488_v19 = vld [vmem:[%s14961_s3 + $0x3c0] ss:$12 sps:$4 sm:$0xff]  }
 0x2f8   : > { %9466 = vmatprep.subr.bf16.mxu1 %v10944_v2  ;;  %v10486_v51 = vld [vmem:[%s14961_s3 + $0x378] ss:$12 sps:$4 sm:$0xff]  }
 0x2f9   : > { %v10487_v9 = vld [vmem:[%s14961_s3 + $0x364] ss:$12 sps:$4 sm:$0xff]  }
 0x2fa   : > { %5849 = vmatpush1.bf16.msra.mxu0 %v10455_v58  ;;  %v10490_v58 = vld [vmem:[%s14961_s3 + $0x360] ss:$12 sps:$4 sm:$0xff]  }
 0x2fb   : > { %5850 = vmatprep.subr.bf16.mxu0 %v10456_v46  ;;  %9467 = vmatpush3.bf16.msra.mxu1 %v10341_v7  ;;  %v10489_v7 = vld [vmem:[%s14961_s3 + $0x3b0] ss:$12 sps:$4 sm:$0xff]  }
 0x2fc   : > { %5885 = vmatprep.subr.bf16.mxu1 %v10457_v61  ;;  %v10491_v61 = vld [vmem:[%s14961_s3 + $0x34c] ss:$12 sps:$4 sm:$0xff]  }
 0x2fe   : > { %5851 = vmatpush1.bf16.msra.mxu0 %v10458_v0  ;;  %v4618_v44 = vpop.f32.mrf.mxu1  ;;  %9469 = vmatmul.mubr.bf16.vlgmr.msra.gmra.mxu1 %v12195_v15 }
 0x2ff   : > { %5852 = vmatprep.subr.bf16.mxu0 %v10459_v57  ;;  %v13059_v62 = vadd.f32 %v4659_v52, %v4618_v44  ;;  %5886 = vmatpush1.bf16.msra.mxu1 %v10460_v5  ;;  %v10481_v52 = vld [vmem:[%s14961_s3 + $0x3dc] ss:$12 sps:$4 sm:$0xff]   ;;  %v10493_v5 = vld [vmem:[%s14961_s3 + $0x398] ss:$12 sps:$4 sm:$0xff]  }
 0x300   : > { %5917 = vmatprep.mubr.bf16.mxu1 %v10945_v6  ;;  %v4620_v11 = vpop.f32.mrf.mxu1  ;;  %5887 = vmatprep.subr.bf16.mxu1 %v10461_v39  ;;  %v10492_v44 = vld [vmem:[%s14961_s3 + $0x2f0] ss:$12 sps:$4 sm:$0xff]  }
 0x301   : > { %v13068_v17 = vadd.f32 %v4661_v40, %v4620_v11  ;;  %v10494_v11 = vld [vmem:[%s14961_s3 + $0x348] ss:$12 sps:$4 sm:$0xff]  }
 0x302   : > { %5853 = vmatpush1.bf16.msra.mxu0 %v10462_v3  ;;  %v4622_v49 = vpop.f32.mrf.mxu1  ;;  %v10495_v3 = vld [vmem:[%s14961_s3 + $0x334] ss:$12 sps:$4 sm:$0xff]  }
 0x303   : > { %5854 = vmatprep.subr.bf16.mxu0 %v10463_v50  ;;  %5888 = vmatpush1.bf16.msra.mxu1 %v10464_v34  ;;  %v10496_v49 = vld [vmem:[%s14961_s3 + $0x2d8] ss:$12 sps:$4 sm:$0xff]   ;;  %v10497_v34 = vld [vmem:[%s14961_s3 + $0x380] ss:$12 sps:$4 sm:$0xff]  }
 0x304   : > { %v4623_v41 = vpop.f32.mrf.mxu1  ;;  %5889 = vmatprep.subr.bf16.mxu1 %v10465_v13  ;;  %v10499_v13 = vld [vmem:[%s14961_s3 + $0x31c] ss:$12 sps:$4 sm:$0xff]  }
 0x305   : > { %v10498_v41 = vld [vmem:[%s14961_s3 + $0x330] ss:$12 sps:$4 sm:$0xff]  }
 0x306   : > { %5855 = vmatpush1.bf16.msra.mxu0 %v10466_v45  ;;  %v10500_v45 = vld [vmem:[%s14961_s3 + $0x2c0] ss:$12 sps:$4 sm:$0xff]  }
 0x307   : > { %5856 = vmatprep.subr.bf16.mxu0 %v10467_v4  ;;  %5890 = vmatpush1.bf16.msra.mxu1 %v10468_v47  ;;  %v10501_v4 = vld [vmem:[%s14961_s3 + $0x368] ss:$12 sps:$4 sm:$0xff]   ;;  %v10502_v47 = vld [vmem:[%s14961_s3 + $0x318] ss:$12 sps:$4 sm:$0xff]  }
 0x308   : > { %5891 = vmatprep.subr.bf16.mxu1 %v10469_v42  ;;  %v10503_v42 = vld [vmem:[%s14961_s3 + $0x304] ss:$12 sps:$4 sm:$0xff]  }
 0x30a   : > { %5857 = vmatpush1.bf16.msra.mxu0 %v10470_v16  ;;  %v10504_v16 = vld [vmem:[%s14961_s3 + $0x2a8] ss:$12 sps:$4 sm:$0xff]  }
 0x30b   : > { %5858 = vmatprep.subr.bf16.mxu0 %v10471_v21  ;;  %5892 = vmatpush1.bf16.msra.mxu1 %v10472_v24  ;;  %v10505_v21 = vld [vmem:[%s14961_s3 + $0x350] ss:$12 sps:$4 sm:$0xff]   ;;  %v10506_v24 = vld [vmem:[%s14961_s3 + $0x300] ss:$12 sps:$4 sm:$0xff]  }
 0x30c   : > { %5893 = vmatprep.subr.bf16.mxu1 %v10473_v53  ;;  %v10507_v53 = vld [vmem:[%s14961_s3 + $0x290] ss:$12 sps:$4 sm:$0xff]  }
 0x30e   : > { %5859 = vmatpush1.bf16.msra.mxu0 %v10474_v55  ;;  %v10508_v55 = vld [vmem:[%s14961_s3 + $0x338] ss:$12 sps:$4 sm:$0xff]  }
 0x30f   : > { %5860 = vmatprep.subr.bf16.mxu0 %v10475_v32  ;;  %5894 = vmatpush1.bf16.msra.mxu1 %v10476_v1  ;;  %v10509_v32 = vld [vmem:[%s14961_s3 + $0x470] ss:$12 sps:$4 sm:$0xff]   ;;  %v10510_v1 = vld [vmem:[%s14961_s3 + $0x278] ss:$12 sps:$4 sm:$0xff]  }
 0x310   : > { %5895 = vmatprep.subr.bf16.mxu1 %v10477_v29  ;;  %v10512_v29 = vld [vmem:[%s14961_s3 + $0x458] ss:$12 sps:$4 sm:$0xff]  }
 0x311   : > { %v8849_v22 = vpop.f32.mrf.mxu0 }
 0x312   : > { %5861 = vmatpush2.bf16.msra.mxu0 %v10478_v36  ;;  %v10513_v36 = vld [vmem:[%s14961_s3 + $0x260] ss:$12 sps:$4 sm:$0xff]  }
 0x313   : > { %v8850_v38 = vpop.f32.mrf.mxu0  ;;  %5862 = vmatprep.subr.bf16.mxu0 %v10479_v10  ;;  %5896 = vmatpush1.bf16.msra.mxu1 %v10480_v63  ;;  %v10515_v10 = vld [vmem:[%s14961_s3 + $0x440] ss:$12 sps:$4 sm:$0xff]  }
 0x314   : > { %v8851_v48 = vadd.f32 %v8850_v38, %v8849_v22  ;;  %5897 = vmatprep.subr.bf16.mxu1 %v10481_v52  ;;  %v10511_v22 = vld [vmem:[%s14961_s3 + $0x320] ss:$12 sps:$4 sm:$0xff]   ;;  %v10514_v38 = vld [vmem:[%s14961_s3 + $0x308] ss:$12 sps:$4 sm:$0xff]  }
 0x315   : > { %v8852_v12 = vpop.f32.mrf.mxu0  ;;  %v10517_v63 = vld [vmem:[%s14961_s3 + $0xac] ss:$12 sps:$4 sm:$0xff]  }
 0x316   : > { %5863 = vmatpush2.bf16.msra.mxu0 %v10482_v30  ;;  %v10518_v12 = vld [vmem:[%s14961_s3 + $0x428] ss:$12 sps:$4 sm:$0xff]  }
 0x317   : > { %v8853_v40 = vpop.f32.mrf.mxu0  ;;  %5864 = vmatprep.subr.bf16.mxu0 %v10483_v31  ;;  %5898 = vmatpush1.bf16.msra.mxu1 %v10484_v25  ;;  %v10519_v30 = vld [vmem:[%s14961_s3 + $0xa8] ss:$12 sps:$4 sm:$0xff]   ;;  %v10521_v25 = vld [vmem:[%s14961_s3 + $0x410] ss:$12 sps:$4 sm:$0xff]  }
 0x318   : > { %5899 = vmatprep.subr.bf16.mxu1 %v10485_v23  ;;  %v10520_v31 = vld [vmem:[%s14961_s3 + $0x94] ss:$12 sps:$4 sm:$0xff]  }
 0x31a   : > { %5865 = vmatpush2.bf16.msra.mxu0 %v10486_v51  ;;  %v10522_v51 = vld [vmem:[%s14961_s3 + $0x90] ss:$12 sps:$4 sm:$0xff]  }
 0x31b   : > { %5866 = vmatprep.subr.bf16.mxu0 %v10487_v9  ;;  %5900 = vmatpush1.bf16.msra.mxu1 %v10488_v19  ;;  %v10523_v19 = vld [vmem:[%s14961_s3 + $0x7c] ss:$12 sps:$4 sm:$0xff]  }
 0x31c   : > { %8926 = vmatprep.subr.bf16.mxu1 %v10489_v7  ;;  %v10524_v7 = vld [vmem:[%s14961_s3 + $0x3f8] ss:$12 sps:$4 sm:$0xff]  }
 0x31e   : > { %5867 = vmatpush2.bf16.msra.mxu0 %v10490_v58  ;;  %v4740_v46 = vpop.f32.mrf.mxu1  ;;  %5918 = vmatmul.mubr.bf16.vlgmr.msra.gmra.mxu1 %v12195_v15  ;;  %v10525_v58 = vld [vmem:[%s14961_s3 + $0x78] ss:$12 sps:$4 sm:$0xff]  }
 0x31f   : > { %5868 = vmatprep.subr.bf16.mxu0 %v10491_v61  ;;  %v13161_v0 = vadd.f32 %v8851_v48, %v4740_v46  ;;  %8927 = vmatpush3.bf16.msra.mxu1 %v10492_v44  ;;  %v10516_v48 = vld [vmem:[%s14961_s3 + $0x248] ss:$12 sps:$4 sm:$0xff]   ;;  %v10526_v46 = vld [vmem:[%s14961_s3 + $0x64] ss:$12 sps:$4 sm:$0xff]   ;;  %v10527_v61 = vld [vmem:[%s14961_s3 + $0x3e0] ss:$12 sps:$4 sm:$0xff]  }
 0x320   : > { %5958 = vmatprep.mubr.bf16.mxu1 %v12053_v54  ;;  %v9430_v57 = vpop.f32.mrf.mxu1  ;;  %8928 = vmatprep.subr.bf16.mxu1 %v10493_v5  ;;  %v10528_v44 = vld [vmem:[%s14961_s3 + $0x60] ss:$12 sps:$4 sm:$0xff]   ;;  %v10530_v5 = vld [vmem:[%s14961_s3 + $0x3c8] ss:$12 sps:$4 sm:$0xff]  }
 0x321   : > { %v10529_v57 = vld [vmem:[%s14961_s3 + $0x4c] ss:$12 sps:$4 sm:$0xff]  }
 0x322   : > { %5869 = vmatpush2.bf16.msra.mxu0 %v10494_v11  ;;  %v4743_v39 = vpop.f32.mrf.mxu1  ;;  %v10531_v11 = vld [vmem:[%s14961_s3 + $0x22c] ss:$12 sps:$4 sm:$0xff]  }
 0x323   : > { %5870 = vmatprep.subr.bf16.mxu0 %v10495_v3  ;;  %8929 = vmatpush3.bf16.msra.mxu1 %v10496_v49  ;;  %v10532_v39 = vld [vmem:[%s14961_s3 + $0x48] ss:$12 sps:$4 sm:$0xff]  }
 0x324   : > { %v9431_v50 = vpop.f32.mrf.mxu1  ;;  %8930 = vmatprep.subr.bf16.mxu1 %v10497_v34  ;;  %v10533_v49 = vld [vmem:[%s14961_s3 + $0x34] ss:$12 sps:$4 sm:$0xff]  }
 0x325   : > { %v10534_v34 = vld [vmem:[%s14961_s3 + $0x228] ss:$12 sps:$4 sm:$0xff]  }
 0x326   : > { %5871 = vmatpush2.bf16.msra.mxu0 %v10498_v41 }
 0x327   : > { %5872 = vmatprep.subr.bf16.mxu0 %v10499_v13  ;;  %8931 = vmatpush3.bf16.msra.mxu1 %v10500_v45  ;;  %v10535_v13 = vld [vmem:[%s14961_s3 + $0x214] ss:$12 sps:$4 sm:$0xff]  }
 0x328   : > { %8932 = vmatprep.subr.bf16.mxu1 %v10501_v4 }
 0x32a   : > { %5873 = vmatpush2.bf16.msra.mxu0 %v10502_v47 }
 0x32b   : > { %5874 = vmatprep.subr.bf16.mxu0 %v10503_v42  ;;  %8933 = vmatpush3.bf16.msra.mxu1 %v10504_v16  ;;  %v10537_v42 = vld [vmem:[%s14961_s3 + $0x1c] ss:$12 sps:$4 sm:$0xff]  }
 0x32c   : > { %8934 = vmatprep.subr.bf16.mxu1 %v10505_v21  ;;  %v10538_v21 = vld [vmem:[%s14961_s3 + $0x210] ss:$12 sps:$4 sm:$0xff]  }
 0x32e   : > { %5875 = vmatpush2.bf16.msra.mxu0 %v10506_v24 }
 0x32f   : > { %9472 = vmatprep.subr.bf16.mxu0 %v10944_v2  ;;  %8935 = vmatpush3.bf16.msra.mxu1 %v10507_v53  ;;  %v10540_v53 = vld [vmem:[%s14961_s3 + $0x18] ss:$12 sps:$4 sm:$0xff]  }
 0x330   : > { %8936 = vmatprep.subr.bf16.mxu1 %v10508_v55  ;;  %v10541_v55 = vld [vmem:[%s14961_s3 + $0x4] ss:$12 sps:$4 sm:$0xff]  }
 0x331   : > { %5877 = vmatmul.mubr.bf16.vlgmr.msra.gmra.mxu0 %v12254_v26 }
 0x332   : > { %9473 = vmatpush3.bf16.msra.mxu0 %v10509_v32  ;;  %9488 = vmatprep.mubr.msk.bf16.mxu0 %vm10946_vm1, %v10944_v2  ;;  %v10542_v32 = vld [vmem:[%s14961_s3 + $0x1f8] ss:$12 sps:$4 sm:$0xff]  }
 0x333   : > { %9474 = vmatprep.subr.bf16.mxu0 %v10944_v2  ;;  %8937 = vmatpush3.bf16.msra.mxu1 %v10510_v1  ;;  %v10543_v1 = vld [vmem:[%s14961_s3 + $0x1e4] ss:$12 sps:$4 sm:$0xff]  }
 0x334   : > { %8938 = vmatprep.subr.bf16.mxu1 %v10511_v22  ;;  %v10544_v22 = vld [vmem:[%s14961_s3] ss:$12 sps:$4 sm:$0xff]  }
 0x336   : > { %9475 = vmatpush3.bf16.msra.mxu0 %v10512_v29  ;;  %v10545_v29 = vld [vmem:[%s14961_s3 + $0x16c] ss:$12 sps:$4 sm:$0xff]  }
 0x337   : > { %9476 = vmatprep.subr.bf16.mxu0 %v10944_v2  ;;  %8939 = vmatpush3.bf16.msra.mxu1 %v10513_v36  ;;  %v10546_v36 = vld [vmem:[%s14961_s3 + $0x1e0] ss:$12 sps:$4 sm:$0xff]  }
 0x338   : > { %8940 = vmatprep.subr.bf16.mxu1 %v10514_v38 }
 0x33a   : > { %9477 = vmatpush3.bf16.msra.mxu0 %v10515_v10  ;;  %v10547_v10 = vld [vmem:[%s14961_s3 + $0x1cc] ss:$12 sps:$4 sm:$0xff]  }
 0x33b   : > { %9478 = vmatprep.subr.bf16.mxu0 %v10944_v2  ;;  %8941 = vmatpush3.bf16.msra.mxu1 %v10516_v48  ;;  %v10548_v48 = vld [vmem:[%s14961_s3 + $0x168] ss:$12 sps:$4 sm:$0xff]  }
 0x33c   : > { %6006 = vmatprep.subr.bf16.mxu1 %v10517_v63 }
 0x33e   : > { %9479 = vmatpush3.bf16.msra.mxu0 %v10518_v12  ;;  %v5205_v52 = vpop.f32.mrf.mxu1  ;;  %5959 = vmatmul.mubr.bf16.vlgmr.msra.gmra.mxu1 %v12254_v26  ;;  %v10549_v12 = vld [vmem:[%s14961_s3 + $0x154] ss:$12 sps:$4 sm:$0xff]  }
 0x33f   : > { %9480 = vmatprep.subr.bf16.mxu0 %v10944_v2  ;;  %6007 = vmatpush1.bf16.msra.mxu1 %v10519_v30  ;;  %v10550_v30 = vld [vmem:[%s14961_s3 + $0x1c8] ss:$12 sps:$4 sm:$0xff]  }
 0x340   : > { %6038 = vmatprep.mubr.bf16.mxu1 %v11751_v27  ;;  %v5207_v40 = vpop.f32.mrf.mxu1  ;;  %6008 = vmatprep.subr.bf16.mxu1 %v10520_v31  ;;  %v10551_v31 = vld [vmem:[%s14961_s3 + $0x1b4] ss:$12 sps:$4 sm:$0xff]  }
 0x342   : > { %9481 = vmatpush3.bf16.msra.mxu0 %v10521_v25  ;;  %v5209_v23 = vpop.f32.mrf.mxu1  ;;  %v10552_v25 = vld [vmem:[%s14961_s3 + $0x150] ss:$12 sps:$4 sm:$0xff]  }
 0x343   : > { %9482 = vmatprep.subr.bf16.mxu0 %v10944_v2  ;;  %6009 = vmatpush1.bf16.msra.mxu1 %v10522_v51 }
 0x344   : > { %v5210_v9 = vpop.f32.mrf.mxu1  ;;  %6010 = vmatprep.subr.bf16.mxu1 %v10523_v19  ;;  %v10554_v19 = vld [vmem:[%s14961_s3 + $0x1b0] ss:$12 sps:$4 sm:$0xff]  }
 0x345   : > { %v10553_v9 = vld [vmem:[%s14961_s3 + $0x13c] ss:$12 sps:$4 sm:$0xff]  }
 0x346   : > { %9483 = vmatpush3.bf16.msra.mxu0 %v10524_v7  ;;  %v10555_v7 = vld [vmem:[%s14961_s3 + $0x19c] ss:$12 sps:$4 sm:$0xff]  }
 0x347   : > { %9484 = vmatprep.subr.bf16.mxu0 %v10944_v2  ;;  %6011 = vmatpush1.bf16.msra.mxu1 %v10525_v58  ;;  %v10557_v58 = vld [vmem:[%s14961_s3 + $0x124] ss:$12 sps:$4 sm:$0xff]  }
 0x348   : > { %6012 = vmatprep.subr.bf16.mxu1 %v10526_v46  ;;  %v10558_v46 = vld [vmem:[%s14961_s3 + $0x198] ss:$12 sps:$4 sm:$0xff]  }
 0x34a   : > { %9485 = vmatpush3.bf16.msra.mxu0 %v10527_v61  ;;  %v10559_v61 = vld [vmem:[%s14961_s3 + $0x184] ss:$12 sps:$4 sm:$0xff]  }
 0x34b   : > { %9486 = vmatprep.subr.bf16.mxu0 %v10944_v2  ;;  %6013 = vmatpush1.bf16.msra.mxu1 %v10528_v44  ;;  %v10560_v44 = vld [vmem:[%s14961_s3 + $0x120] ss:$12 sps:$4 sm:$0xff]  }
 0x34c   : > { %6014 = vmatprep.subr.bf16.mxu1 %v10529_v57  ;;  %v10561_v57 = vld [vmem:[%s14961_s3 + $0x10c] ss:$12 sps:$4 sm:$0xff]  }
 0x34e   : > { %9487 = vmatpush3.bf16.msra.mxu0 %v10530_v5  ;;  %v10562_v5 = vld [vmem:[%s14961_s3 + $0x180] ss:$12 sps:$4 sm:$0xff]  }
 0x34f   : > { %6047 = vmatprep.subr.bf16.mxu0 %v10531_v11  ;;  %6015 = vmatpush1.bf16.msra.mxu1 %v10532_v39  ;;  %v10563_v11 = vld [vmem:[%s14961_s3 + $0x170] ss:$12 sps:$4 sm:$0xff]   ;;  %v10564_v39 = vld [vmem:[%s14961_s3 + $0x108] ss:$12 sps:$4 sm:$0xff]  }
 0x350   : > { %6016 = vmatprep.subr.bf16.mxu1 %v10533_v49  ;;  %v10565_v49 = vld [vmem:[%s14961_s3 + $0xf4] ss:$12 sps:$4 sm:$0xff]  }
 0x351   : > { %v5164_v3 = vpop.f32.mrf.mxu0  ;;  %9489 = vmatmul.mubr.bf16.vlgmr.msra.gmra.mxu0 %v12195_v15 }
 0x352   : > { %v5165_v50 = vadd.f32 %v5164_v3, %v13059_v62  ;;  %6048 = vmatpush1.bf16.msra.mxu0 %v10534_v34  ;;  %6079 = vmatprep.mubr.bf16.mxu0 %v10945_v6  ;;  %v10536_v62 = vld [vmem:[%s14961_s3 + $0x30] ss:$12 sps:$4 sm:$0xff]  }
 0x353   : > { %v5166_v41 = vpop.f32.mrf.mxu0  ;;  %6049 = vmatprep.subr.bf16.mxu0 %v10535_v13  ;;  %6017 = vmatpush1.bf16.msra.mxu1 %v10536_v62  ;;  %v10566_v34 = vld [vmem:[%s14961_s3 + $0xb0] ss:$12 sps:$4 sm:$0xff]   ;;  %v10567_v13 = vld [vmem:[%s14961_s3 + $0x158] ss:$12 sps:$4 sm:$0xff]  }
 0x354   : > { %v13312_v45 = vadd.f32 %v5205_v52, %v5165_v50  ;;  %v5167_v4 = vadd.f32 %v5166_v41, %v13068_v17  ;;  %6018 = vmatprep.subr.bf16.mxu1 %v10537_v42  ;;  %v10539_v17 = vld [vmem:[%s14961_s3 + $0x1fc] ss:$12 sps:$4 sm:$0xff]   ;;  %v10570_v42 = vld [vmem:[%s14961_s3 + $0x98] ss:$12 sps:$4 sm:$0xff]  }
 0x355   : > { %v5168_v47 = vpop.f32.mrf.mxu0 }
 0x356   : > { %v13321_v16 = vadd.f32 %v5207_v40, %v5167_v4  ;;  %6050 = vmatpush1.bf16.msra.mxu0 %v10538_v21  ;;  %v10568_v4 = vld [vmem:[%s14961_s3 + $0xf0] ss:$12 sps:$4 sm:$0xff]  }
 0x357   : > { %v5169_v24 = vpop.f32.mrf.mxu0  ;;  %6051 = vmatprep.subr.bf16.mxu0 %v10539_v17  ;;  %6019 = vmatpush1.bf16.msra.mxu1 %v10540_v53  ;;  %v10569_v47 = vld [vmem:[%s14961_s3 + $0xdc] ss:$12 sps:$4 sm:$0xff]   ;;  %v10572_v17 = vld [vmem:[%s14961_s3 + $0xd8] ss:$12 sps:$4 sm:$0xff]  }
 0x358   : > { %6020 = vmatprep.subr.bf16.mxu1 %v10541_v55  ;;  %v10571_v24 = vld [vmem:[%s14961_s3 + $0x140] ss:$12 sps:$4 sm:$0xff]   ;;  %v10573_v53 = vld [vmem:[%s14961_s3 + $0xc4] ss:$12 sps:$4 sm:$0xff]  }
 0x359   : > { %v10574_v55 = vld [vmem:[%s14961_s3 + $0x80] ss:$12 sps:$4 sm:$0xff]  }
 0x35a   : > { %6052 = vmatpush1.bf16.msra.mxu0 %v10542_v32  ;;  %v10575_v32 = vld [vmem:[%s14961_s3 + $0x128] ss:$12 sps:$4 sm:$0xff]  }
 0x35b   : > { %6053 = vmatprep.subr.bf16.mxu0 %v10543_v1  ;;  %6021 = vmatpush1.bf16.msra.mxu1 %v10544_v22  ;;  %v10576_v1 = vld [vmem:[%s14961_s3 + $0xc0] ss:$12 sps:$4 sm:$0xff]   ;;  %v10577_v22 = vld [vmem:[%s14961_s3 + $0x68] ss:$12 sps:$4 sm:$0xff]  }
 0x35c   : > { %6022 = vmatprep.subr.bf16.mxu1 %v10545_v29  ;;  %v10578_v29 = vld [vmem:[%s14961_s3 + $0x110] ss:$12 sps:$4 sm:$0xff]  }
 0x35e   : > { %6054 = vmatpush1.bf16.msra.mxu0 %v10546_v36  ;;  %v8880_v38 = vpop.f32.mrf.mxu1  ;;  %v10579_v36 = vld [vmem:[%s14961_s3 + $0x230] ss:$12 sps:$4 sm:$0xff]  }
 0x35f   : > { %6055 = vmatprep.subr.bf16.mxu0 %v10547_v10  ;;  %6023 = vmatpush2.bf16.msra.mxu1 %v10548_v48  ;;  %v10581_v10 = vld [vmem:[%s14961_s3 + $0xf8] ss:$12 sps:$4 sm:$0xff]  }
 0x360   : > { %v8881_v63 = vpop.f32.mrf.mxu1  ;;  %6024 = vmatprep.subr.bf16.mxu1 %v10549_v12  ;;  %v10582_v48 = vld [vmem:[%s14961_s3 + $0x218] ss:$12 sps:$4 sm:$0xff]   ;;  %v10584_v12 = vld [vmem:[%s14961_s3 + $0xe0] ss:$12 sps:$4 sm:$0xff]  }
 0x361   : > { %v8882_v52 = vadd.f32 %v8881_v63, %v8880_v38  ;;  %v10580_v38 = vld [vmem:[%s14961_s3 + $0x50] ss:$12 sps:$4 sm:$0xff]   ;;  %v10583_v63 = vld [vmem:[%s14961_s3 + $0x38] ss:$12 sps:$4 sm:$0xff]  }
 0x362   : > { %6056 = vmatpush1.bf16.msra.mxu0 %v10550_v30  ;;  %v8883_v40 = vpop.f32.mrf.mxu1  ;;  %v10586_v30 = vld [vmem:[%s14961_s3 + $0x20] ss:$12 sps:$4 sm:$0xff]  }
 0x363   : > { %6057 = vmatprep.subr.bf16.mxu0 %v10551_v31  ;;  %6025 = vmatpush2.bf16.msra.mxu1 %v10552_v25  ;;  %v5247_v23 = vadd.f32 %v8882_v52, %v13161_v0  ;;  %v10556_v0 = vld [vmem:[%s14961_s3 + $0x138] ss:$12 sps:$4 sm:$0xff]   ;;  %v10585_v52 = vld [vmem:[%s14961_s3 + $0x200] ss:$12 sps:$4 sm:$0xff]   ;;  %v10587_v40 = vld [vmem:[%s14961_s3 + $0xc8] ss:$12 sps:$4 sm:$0xff]  }
 0x364   : > { %v8884_v51 = vpop.f32.mrf.mxu1  ;;  %6026 = vmatprep.subr.bf16.mxu1 %v10553_v9  ;;  %v10588_v31 = vld [vmem:[%s14961_s3 + $0x1e8] ss:$12 sps:$4 sm:$0xff]  }
 0x365   : > { %v10589_v25 = vld [vmem:[%s14961_s3 + $0x8] ss:$12 sps:$4 sm:$0xff]   ;;  %v10591_v51 = vld [vmem:[%s14961_s3 + $0x1d0] ss:$12 sps:$4 sm:$0xff]  }
 0x366   : > { %6058 = vmatpush1.bf16.msra.mxu0 %v10554_v19  ;;  %v10592_v19 = vld [vmem:[%s14961_s3 + $0x528] ss:$12 sps:$4 sm:$0xff]  }
 0x367   : > { %6059 = vmatprep.subr.bf16.mxu0 %v10555_v7  ;;  %6027 = vmatpush2.bf16.msra.mxu1 %v10556_v0  ;;  %v10593_v0 = vld [vmem:[%s14961_s3 + $0x514] ss:$12 sps:$4 sm:$0xff]  }
 0x368   : > { %6028 = vmatprep.subr.bf16.mxu1 %v10557_v58  ;;  %v10594_v58 = vld [vmem:[%s14961_s3 + $0x1b8] ss:$12 sps:$4 sm:$0xff]  }
 0x36a   : > { %6060 = vmatpush1.bf16.msra.mxu0 %v10558_v46 }
 0x36b   : > { %6061 = vmatprep.subr.bf16.mxu0 %v10559_v61  ;;  %6029 = vmatpush2.bf16.msra.mxu1 %v10560_v44  ;;  %v10595_v61 = vld [vmem:[%s14961_s3 + $0x510] ss:$12 sps:$4 sm:$0xff]  }
 0x36c   : > { %6030 = vmatprep.subr.bf16.mxu1 %v10561_v57  ;;  %v10596_v57 = vld [vmem:[%s14961_s3 + $0x4fc] ss:$12 sps:$4 sm:$0xff]  }
 0x36e   : > { %6062 = vmatpush1.bf16.msra.mxu0 %v10562_v5  ;;  %v10597_v5 = vld [vmem:[%s14961_s3 + $0x1a0] ss:$12 sps:$4 sm:$0xff]  }
 0x36f   : > { %8957 = vmatprep.subr.bf16.mxu0 %v10563_v11  ;;  %6031 = vmatpush2.bf16.msra.mxu1 %v10564_v39  ;;  %v10598_v11 = vld [vmem:[%s14961_s3 + $0x4f8] ss:$12 sps:$4 sm:$0xff]  }
 0x370   : > { %6032 = vmatprep.subr.bf16.mxu1 %v10565_v49  ;;  %v10599_v39 = vld [vmem:[%s14961_s3 + $0x4e4] ss:$12 sps:$4 sm:$0xff]   ;;  %v10601_v49 = vld [vmem:[%s14961_s3 + $0x6ac] ss:$12 sps:$4 sm:$0xff]  }
 0x371   : > { %v5286_v3 = vpop.f32.mrf.mxu0  ;;  %6080 = vmatmul.mubr.bf16.vlgmr.msra.gmra.mxu0 %v11697_v14 }
 0x372   : > { %v13409_v50 = vadd.f32 %v5286_v3, %v5247_v23  ;;  %8958 = vmatpush3.bf16.msra.mxu0 %v10566_v34  ;;  %6120 = vmatprep.mubr.bf16.mxu0 %v11751_v27  ;;  %v10590_v23 = vld [vmem:[%s14961_s3 + $0x52c] ss:$12 sps:$4 sm:$0xff]   ;;  %v10600_v3 = vld [vmem:[%s14961_s3 + $0x188] ss:$12 sps:$4 sm:$0xff]  }
 0x373   : > { %v9450_v41 = vpop.f32.mrf.mxu0  ;;  %8959 = vmatprep.subr.bf16.mxu0 %v10567_v13  ;;  %6033 = vmatpush2.bf16.msra.mxu1 %v10568_v4  ;;  %v10602_v34 = vld [vmem:[%s14961_s3 + $0x4e0] ss:$12 sps:$4 sm:$0xff]  }
 0x374   : > { %6034 = vmatprep.subr.bf16.mxu1 %v10569_v47  ;;  %v10603_v13 = vld [vmem:[%s14961_s3 + $0x4cc] ss:$12 sps:$4 sm:$0xff]  }
 0x375   : > { %v5289_v62 = vpop.f32.mrf.mxu0 }
 0x376   : > { %8960 = vmatpush3.bf16.msra.mxu0 %v10570_v42  ;;  %v10604_v62 = vld [vmem:[%s14961_s3 + $0x6a8] ss:$12 sps:$4 sm:$0xff]  }
 0x377   : > { %v9451_v21 = vpop.f32.mrf.mxu0  ;;  %8961 = vmatprep.subr.bf16.mxu0 %v10571_v24  ;;  %6035 = vmatpush2.bf16.msra.mxu1 %v10572_v17  ;;  %v10605_v42 = vld [vmem:[%s14961_s3 + $0x694] ss:$12 sps:$4 sm:$0xff]  }
 0x378   : > { %6036 = vmatprep.subr.bf16.mxu1 %v10573_v53  ;;  %v10606_v17 = vld [vmem:[%s14961_s3 + $0x4c8] ss:$12 sps:$4 sm:$0xff]  }
 0x37a   : > { %8962 = vmatpush3.bf16.msra.mxu0 %v10574_v55  ;;  %v10607_v55 = vld [vmem:[%s14961_s3 + $0x4b4] ss:$12 sps:$4 sm:$0xff]  }
 0x37b   : > { %8963 = vmatprep.subr.bf16.mxu0 %v10575_v32  ;;  %6037 = vmatpush2.bf16.msra.mxu1 %v10576_v1 }
 0x37c   : > { %9492 = vmatprep.subr.bf16.mxu1 %v10944_v2 }
 0x37e   : > { %8964 = vmatpush3.bf16.msra.mxu0 %v10577_v22  ;;  %6039 = vmatmul.mubr.bf16.vlgmr.msra.gmra.mxu1 %v11754_v35 }
 0x37f   : > { %8965 = vmatprep.subr.bf16.mxu0 %v10578_v29  ;;  %9493 = vmatpush3.bf16.msra.mxu1 %v10579_v36  ;;  %v10609_v29 = vld [vmem:[%s14961_s3 + $0x67c] ss:$12 sps:$4 sm:$0xff]  }
 0x380   : > { %9508 = vmatprep.mubr.msk.bf16.mxu1 %vm10946_vm1, %v10944_v2  ;;  %9494 = vmatprep.subr.bf16.mxu1 %v10944_v2 }
 0x382   : > { %8966 = vmatpush3.bf16.msra.mxu0 %v10580_v38  ;;  %v10610_v38 = vld [vmem:[%s14961_s3 + $0x4b0] ss:$12 sps:$4 sm:$0xff]  }
 0x383   : > { %8967 = vmatprep.subr.bf16.mxu0 %v10581_v10  ;;  %9495 = vmatpush3.bf16.msra.mxu1 %v10582_v48  ;;  %v10612_v10 = vld [vmem:[%s14961_s3 + $0x678] ss:$12 sps:$4 sm:$0xff]  }
 0x384   : > { %9496 = vmatprep.subr.bf16.mxu1 %v10944_v2  ;;  %v10613_v48 = vld [vmem:[%s14961_s3 + $0x664] ss:$12 sps:$4 sm:$0xff]  }
 0x386   : > { %8968 = vmatpush3.bf16.msra.mxu0 %v10583_v63  ;;  %v10614_v63 = vld [vmem:[%s14961_s3 + $0x498] ss:$12 sps:$4 sm:$0xff]  }
 0x387   : > { %8969 = vmatprep.subr.bf16.mxu0 %v10584_v12  ;;  %9497 = vmatpush3.bf16.msra.mxu1 %v10585_v52  ;;  %v10615_v12 = vld [vmem:[%s14961_s3 + $0x484] ss:$12 sps:$4 sm:$0xff]   ;;  %v10616_v52 = vld [vmem:[%s14961_s3 + $0x660] ss:$12 sps:$4 sm:$0xff]  }
 0x388   : > { %9498 = vmatprep.subr.bf16.mxu1 %v10944_v2 }
 0x38a   : > { %8970 = vmatpush3.bf16.msra.mxu0 %v10586_v30  ;;  %v10617_v30 = vld [vmem:[%s14961_s3 + $0x64c] ss:$12 sps:$4 sm:$0xff]  }
 0x38b   : > { %8971 = vmatprep.subr.bf16.mxu0 %v10587_v40  ;;  %9499 = vmatpush3.bf16.msra.mxu1 %v10588_v31  ;;  %v10618_v40 = vld [vmem:[%s14961_s3 + $0x480] ss:$12 sps:$4 sm:$0xff]  }
 0x38c   : > { %9500 = vmatprep.subr.bf16.mxu1 %v10944_v2  ;;  %v10619_v31 = vld [vmem:[%s14961_s3 + $0x5ec] ss:$12 sps:$4 sm:$0xff]  }
 0x38e   : > { %8972 = vmatpush3.bf16.msra.mxu0 %v10589_v25  ;;  %v10620_v25 = vld [vmem:[%s14961_s3 + $0x648] ss:$12 sps:$4 sm:$0xff]  }
 0x38f   : > { %6180 = vmatprep.subr.bf16.mxu0 %v10590_v23  ;;  %9501 = vmatpush3.bf16.msra.mxu1 %v10591_v51  ;;  %v10621_v51 = vld [vmem:[%s14961_s3 + $0x634] ss:$12 sps:$4 sm:$0xff]  }
 0x390   : > { %9502 = vmatprep.subr.bf16.mxu1 %v10944_v2 }
 0x391   : > { %v5751_v9 = vpop.f32.mrf.mxu0  ;;  %6121 = vmatmul.mubr.bf16.vlgmr.msra.gmra.mxu0 %v11754_v35 }
 0x392   : > { %6181 = vmatpush1.bf16.msra.mxu0 %v10592_v19  ;;  %6212 = vmatprep.mubr.bf16.mxu0 %v11784_v18 }
 0x393   : > { %v5753_v7 = vpop.f32.mrf.mxu0  ;;  %6182 = vmatprep.subr.bf16.mxu0 %v10593_v0  ;;  %9503 = vmatpush3.bf16.msra.mxu1 %v10594_v58  ;;  %v10624_v58 = vld [vmem:[%s14961_s3 + $0x630] ss:$12 sps:$4 sm:$0xff]  }
 0x394   : > { %9504 = vmatprep.subr.bf16.mxu1 %v10944_v2 }
 0x395   : > { %v5755_v46 = vpop.f32.mrf.mxu0 }
 0x396   : > { %6183 = vmatpush1.bf16.msra.mxu0 %v10595_v61  ;;  %v10625_v61 = vld [vmem:[%s14961_s3 + $0x61c] ss:$12 sps:$4 sm:$0xff]  }
 0x397   : > { %v5756_v44 = vpop.f32.mrf.mxu0  ;;  %6184 = vmatprep.subr.bf16.mxu0 %v10596_v57  ;;  %9505 = vmatpush3.bf16.msra.mxu1 %v10597_v5  ;;  %v10627_v5 = vld [vmem:[%s14961_s3 + $0x5bc] ss:$12 sps:$4 sm:$0xff]  }
 0x398   : > { %9506 = vmatprep.subr.bf16.mxu1 %v10944_v2  ;;  %v10626_v44 = vld [vmem:[%s14961_s3 + $0x5d0] ss:$12 sps:$4 sm:$0xff]  }
 0x39a   : > { %6185 = vmatpush1.bf16.msra.mxu0 %v10598_v11  ;;  %v10628_v11 = vld [vmem:[%s14961_s3 + $0x618] ss:$12 sps:$4 sm:$0xff]  }
 0x39b   : > { %6186 = vmatprep.subr.bf16.mxu0 %v10599_v39  ;;  %9507 = vmatpush3.bf16.msra.mxu1 %v10600_v3  ;;  %v10629_v39 = vld [vmem:[%s14961_s3 + $0x604] ss:$12 sps:$4 sm:$0xff]  }
 0x39c   : > { %6221 = vmatprep.subr.bf16.mxu1 %v10601_v49  ;;  %v10630_v3 = vld [vmem:[%s14961_s3 + $0x5b8] ss:$12 sps:$4 sm:$0xff]  }
 0x39d   : > { %v10631_v49 = vld [vmem:[%s14961_s3 + $0x5a4] ss:$12 sps:$4 sm:$0xff]  }
 0x39e   : > { %6187 = vmatpush1.bf16.msra.mxu0 %v10602_v34  ;;  %v5710_v41 = vpop.f32.mrf.mxu1  ;;  %9509 = vmatmul.mubr.bf16.vlgmr.msra.gmra.mxu1 %v11697_v14  ;;  %v10632_v34 = vld [vmem:[%s14961_s3 + $0x600] ss:$12 sps:$4 sm:$0xff]  }
 0x39f   : > { %6188 = vmatprep.subr.bf16.mxu0 %v10603_v13  ;;  %v5752_v4 = vadd.f32 %v5751_v9, %v5710_v41  ;;  %6222 = vmatpush1.bf16.msra.mxu1 %v10604_v62  ;;  %v10622_v9 = vld [vmem:[%s14961_s3 + $0x5e8] ss:$12 sps:$4 sm:$0xff]   ;;  %v10633_v41 = vld [vmem:[%s14961_s3 + $0x5f0] ss:$12 sps:$4 sm:$0xff]   ;;  %v10634_v13 = vld [vmem:[%s14961_s3 + $0x5a0] ss:$12 sps:$4 sm:$0xff]  }
 0x3a0   : > { %6253 = vmatprep.mubr.bf16.mxu1 %v10945_v6  ;;  %v5712_v47 = vpop.f32.mrf.mxu1  ;;  %6223 = vmatprep.subr.bf16.mxu1 %v10605_v42  ;;  %v10635_v62 = vld [vmem:[%s14961_s3 + $0x58c] ss:$12 sps:$4 sm:$0xff]   ;;  %v10636_v42 = vld [vmem:[%s14961_s3 + $0x530] ss:$12 sps:$4 sm:$0xff]  }
 0x3a1   : > { %v13548_v21 = vadd.f32 %v5752_v4, %v13312_v45  ;;  %v5754_v24 = vadd.f32 %v5753_v7, %v5712_v47  ;;  %v10608_v45 = vld [vmem:[%s14961_s3 + $0x690] ss:$12 sps:$4 sm:$0xff]   ;;  %v10623_v7 = vld [vmem:[%s14961_s3 + $0x5d4] ss:$12 sps:$4 sm:$0xff]  }
 0x3a2   : > { %6189 = vmatpush1.bf16.msra.mxu0 %v10606_v17  ;;  %v5714_v53 = vpop.f32.mrf.mxu1  ;;  %v10637_v17 = vld [vmem:[%s14961_s3 + $0x5d8] ss:$12 sps:$4 sm:$0xff]  }
 0x3a3   : > { %6190 = vmatprep.subr.bf16.mxu0 %v10607_v55  ;;  %v5841_v32 = vmax.f32 %v12843_v33, %v13548_v21  ;;  %v13559_v1 = vadd.f32 %v5754_v24, %v13321_v16  ;;  %6224 = vmatpush1.bf16.msra.mxu1 %v10608_v45  ;;  %v10611_v16 = vld [vmem:[%s14961_s3 + $0x49c] ss:$12 sps:$4 sm:$0xff]   ;;  %v10828_v33 = vld [vmem:[%s14961_s3 + $0xb58] ss:$12 sps:$4 sm:$0xff]  }
 0x3a4   : > { %v5715_v22 = vpop.f32.mrf.mxu1  ;;  %6225 = vmatprep.subr.bf16.mxu1 %v10609_v29  ;;  %v10638_v55 = vld [vmem:[%s14961_s3 + $0x588] ss:$12 sps:$4 sm:$0xff]   ;;  %v10829_v21 = vld [vmem:[%s14961_s3 + $0xb44] ss:$12 sps:$4 sm:$0xff]  }
 0x3a5   : > { %v5842_v36 = vmax.f32 %v12852_v60, %v13559_v1  ;;  %v10639_v22 = vld [vmem:[%s14961_s3 + $0x574] ss:$12 sps:$4 sm:$0xff]   ;;  %v10831_v60 = vld [vmem:[%s14961_s3 + $0xd24] ss:$12 sps:$4 sm:$0xff]  }
 0x3a6   : > { %6191 = vmatpush1.bf16.msra.mxu0 %v10610_v38  ;;  %v10640_v38 = vld [vmem:[%s14961_s3 + $0x518] ss:$12 sps:$4 sm:$0xff]   ;;  %v10832_v1 = vld [vmem:[%s14961_s3 + $0xb40] ss:$12 sps:$4 sm:$0xff]  }
 0x3a7   : > { %6192 = vmatprep.subr.bf16.mxu0 %v10611_v16  ;;  %6226 = vmatpush1.bf16.msra.mxu1 %v10612_v10  ;;  %v10641_v16 = vld [vmem:[%s14961_s3 + $0x5c0] ss:$12 sps:$4 sm:$0xff]   ;;  %v10642_v10 = vld [vmem:[%s14961_s3 + $0x570] ss:$12 sps:$4 sm:$0xff]  }
 0x3a8   : > { %6227 = vmatprep.subr.bf16.mxu1 %v10613_v48  ;;  %v10643_v48 = vld [vmem:[%s14961_s3 + $0x55c] ss:$12 sps:$4 sm:$0xff]  }
 0x3aa   : > { %6193 = vmatpush1.bf16.msra.mxu0 %v10614_v63  ;;  %v10644_v63 = vld [vmem:[%s14961_s3 + $0x500] ss:$12 sps:$4 sm:$0xff]  }
 0x3ab   : > { %6194 = vmatprep.subr.bf16.mxu0 %v10615_v12  ;;  %6228 = vmatpush1.bf16.msra.mxu1 %v10616_v52  ;;  %v10645_v12 = vld [vmem:[%s14961_s3 + $0x5a8] ss:$12 sps:$4 sm:$0xff]   ;;  %v10646_v52 = vld [vmem:[%s14961_s3 + $0x558] ss:$12 sps:$4 sm:$0xff]  }
 0x3ac   : > { %6229 = vmatprep.subr.bf16.mxu1 %v10617_v30  ;;  %v10647_v30 = vld [vmem:[%s14961_s3 + $0x544] ss:$12 sps:$4 sm:$0xff]  }
 0x3ae   : > { %6195 = vmatpush1.bf16.msra.mxu0 %v10618_v40  ;;  %v10648_v40 = vld [vmem:[%s14961_s3 + $0x4e8] ss:$12 sps:$4 sm:$0xff]  }
 0x3af   : > { %6196 = vmatprep.subr.bf16.mxu0 %v10619_v31  ;;  %6230 = vmatpush1.bf16.msra.mxu1 %v10620_v25  ;;  %v10649_v31 = vld [vmem:[%s14961_s3 + $0x590] ss:$12 sps:$4 sm:$0xff]   ;;  %v10650_v25 = vld [vmem:[%s14961_s3 + $0x540] ss:$12 sps:$4 sm:$0xff]  }
 0x3b0   : > { %6231 = vmatprep.subr.bf16.mxu1 %v10621_v51  ;;  %v10652_v51 = vld [vmem:[%s14961_s3 + $0x578] ss:$12 sps:$4 sm:$0xff]  }
 0x3b1   : > { %v8911_v23 = vpop.f32.mrf.mxu0 }
 0x3b2   : > { %6197 = vmatpush2.bf16.msra.mxu0 %v10622_v9  ;;  %v10653_v9 = vld [vmem:[%s14961_s3 + $0x6b0] ss:$12 sps:$4 sm:$0xff]  }
 0x3b3   : > { %v8912_v19 = vpop.f32.mrf.mxu0  ;;  %6198 = vmatprep.subr.bf16.mxu0 %v10623_v7  ;;  %6232 = vmatpush1.bf16.msra.mxu1 %v10624_v58  ;;  %v10655_v7 = vld [vmem:[%s14961_s3 + $0x560] ss:$12 sps:$4 sm:$0xff]  }
 0x3b4   : > { %v8913_v0 = vadd.f32 %v8912_v19, %v8911_v23  ;;  %6233 = vmatprep.subr.bf16.mxu1 %v10625_v61  ;;  %v10651_v23 = vld [vmem:[%s14961_s3 + $0x4d0] ss:$12 sps:$4 sm:$0xff]   ;;  %v10654_v19 = vld [vmem:[%s14961_s3 + $0x4b8] ss:$12 sps:$4 sm:$0xff]   ;;  %v10657_v58 = vld [vmem:[%s14961_s3 + $0x4a0] ss:$12 sps:$4 sm:$0xff]  }
 0x3b5   : > { %v8914_v46 = vpop.f32.mrf.mxu0  ;;  %v10659_v61 = vld [vmem:[%s14961_s3 + $0x680] ss:$12 sps:$4 sm:$0xff]  }
 0x3b6   : > { %6199 = vmatpush2.bf16.msra.mxu0 %v10626_v44  ;;  %v10658_v46 = vld [vmem:[%s14961_s3 + $0x548] ss:$12 sps:$4 sm:$0xff]  }
 0x3b7   : > { %v8915_v57 = vpop.f32.mrf.mxu0  ;;  %6200 = vmatprep.subr.bf16.mxu0 %v10627_v5  ;;  %6234 = vmatpush1.bf16.msra.mxu1 %v10628_v11  ;;  %v10660_v44 = vld [vmem:[%s14961_s3 + $0x488] ss:$12 sps:$4 sm:$0xff]  }
 0x3b8   : > { %6235 = vmatprep.subr.bf16.mxu1 %v10629_v39  ;;  %v10661_v57 = vld [vmem:[%s14961_s3 + $0x9ac] ss:$12 sps:$4 sm:$0xff]   ;;  %v10662_v5 = vld [vmem:[%s14961_s3 + $0x668] ss:$12 sps:$4 sm:$0xff]  }
 0x3b9   : > { %v10663_v39 = vld [vmem:[%s14961_s3 + $0x9a8] ss:$12 sps:$4 sm:$0xff]  }
 0x3ba   : > { %6201 = vmatpush2.bf16.msra.mxu0 %v10630_v3 }
 0x3bb   : > { %6202 = vmatprep.subr.bf16.mxu0 %v10631_v49  ;;  %6236 = vmatpush1.bf16.msra.mxu1 %v10632_v34  ;;  %v10664_v49 = vld [vmem:[%s14961_s3 + $0x994] ss:$12 sps:$4 sm:$0xff]   ;;  %v10665_v34 = vld [vmem:[%s14961_s3 + $0x650] ss:$12 sps:$4 sm:$0xff]  }
 0x3bc   : > { %8988 = vmatprep.subr.bf16.mxu1 %v10633_v41 }
 0x3be   : > { %6203 = vmatpush2.bf16.msra.mxu0 %v10634_v13  ;;  %v5832_v4 = vpop.f32.mrf.mxu1  ;;  %6254 = vmatmul.mubr.bf16.vlgmr.msra.gmra.mxu1 %v11722_v37  ;;  %v10666_v13 = vld [vmem:[%s14961_s3 + $0x990] ss:$12 sps:$4 sm:$0xff]  }
 0x3bf   : > { %6204 = vmatprep.subr.bf16.mxu0 %v10635_v62  ;;  %v5833_v47 = vadd.f32 %v8913_v0, %v5832_v4  ;;  %8989 = vmatpush3.bf16.msra.mxu1 %v10636_v42  ;;  %v10656_v0 = vld [vmem:[%s14961_s3 + $0x698] ss:$12 sps:$4 sm:$0xff]   ;;  %v10667_v62 = vld [vmem:[%s14961_s3 + $0x97c] ss:$12 sps:$4 sm:$0xff]  }
 0x3c0   : > { %6294 = vmatprep.mubr.bf16.mxu1 %v11784_v18  ;;  %v9470_v24 = vpop.f32.mrf.mxu1  ;;  %8990 = vmatprep.subr.bf16.mxu1 %v10637_v17  ;;  %v10669_v42 = vld [vmem:[%s14961_s3 + $0x978] ss:$12 sps:$4 sm:$0xff]   ;;  %v10671_v17 = vld [vmem:[%s14961_s3 + $0x620] ss:$12 sps:$4 sm:$0xff]  }
 0x3c1   : > { %v13656_v53 = vadd.f32 %v5833_v47, %v13409_v50  ;;  %v10668_v47 = vld [vmem:[%s14961_s3 + $0x638] ss:$12 sps:$4 sm:$0xff]  }
 0x3c2   : > { %6205 = vmatpush2.bf16.msra.mxu0 %v10638_v55  ;;  %v5835_v45 = vpop.f32.mrf.mxu1  ;;  %v10670_v24 = vld [vmem:[%s14961_s3 + $0x964] ss:$12 sps:$4 sm:$0xff]   ;;  %v10672_v55 = vld [vmem:[%s14961_s3 + $0x960] ss:$12 sps:$4 sm:$0xff]  }
 0x3c3   : > { %6206 = vmatprep.subr.bf16.mxu0 %v10639_v22  ;;  %v5843_v29 = vmax.f32 %v12947_v28, %v13656_v53  ;;  %8991 = vmatpush3.bf16.msra.mxu1 %v10640_v38  ;;  %v10673_v45 = vld [vmem:[%s14961_s3 + $0x94c] ss:$12 sps:$4 sm:$0xff]   ;;  %v10674_v22 = vld [vmem:[%s14961_s3 + $0x608] ss:$12 sps:$4 sm:$0xff]   ;;  %v10861_v28 = vld [vmem:[%s14961_s3 + $0xc04] ss:$12 sps:$4 sm:$0xff]  }
 0x3c4   : > { %v9471_v50 = vpop.f32.mrf.mxu1  ;;  %8992 = vmatprep.subr.bf16.mxu1 %v10641_v16  ;;  %v10675_v38 = vld [vmem:[%s14961_s3 + $0xb2c] ss:$12 sps:$4 sm:$0xff]  }
 0x3c5   : > { %v10676_v50 = vld [vmem:[%s14961_s3 + $0x948] ss:$12 sps:$4 sm:$0xff]   ;;  %v10862_v53 = vld [vmem:[%s14961_s3 + $0xbc0] ss:$12 sps:$4 sm:$0xff]  }
 0x3c6   : > { %6207 = vmatpush2.bf16.msra.mxu0 %v10642_v10  ;;  %v10677_v10 = vld [vmem:[%s14961_s3 + $0x934] ss:$12 sps:$4 sm:$0xff]  }
 0x3c7   : > { %6208 = vmatprep.subr.bf16.mxu0 %v10643_v48  ;;  %8993 = vmatpush3.bf16.msra.mxu1 %v10644_v63  ;;  %v10678_v63 = vld [vmem:[%s14961_s3 + $0xb28] ss:$12 sps:$4 sm:$0xff]  }
 0x3c8   : > { %8994 = vmatprep.subr.bf16.mxu1 %v10645_v12 }
 0x3ca   : > { %6209 = vmatpush2.bf16.msra.mxu0 %v10646_v52  ;;  %v10679_v52 = vld [vmem:[%s14961_s3 + $0xb14] ss:$12 sps:$4 sm:$0xff]  }
 0x3cb   : > { %6210 = vmatprep.subr.bf16.mxu0 %v10647_v30  ;;  %8995 = vmatpush3.bf16.msra.mxu1 %v10648_v40  ;;  %v10680_v40 = vld [vmem:[%s14961_s3 + $0x930] ss:$12 sps:$4 sm:$0xff]  }
 0x3cc   : > { %8996 = vmatprep.subr.bf16.mxu1 %v10649_v31 }
 0x3ce   : > { %6211 = vmatpush2.bf16.msra.mxu0 %v10650_v25  ;;  %v10681_v25 = vld [vmem:[%s14961_s3 + $0x91c] ss:$12 sps:$4 sm:$0xff]  }
 0x3cf   : > { %9512 = vmatprep.subr.bf16.mxu0 %v10944_v2  ;;  %8997 = vmatpush3.bf16.msra.mxu1 %v10651_v23  ;;  %v10682_v23 = vld [vmem:[%s14961_s3 + $0xb10] ss:$12 sps:$4 sm:$0xff]  }
 0x3d0   : > { %8998 = vmatprep.subr.bf16.mxu1 %v10652_v51 }
 0x3d1   : > { %6213 = vmatmul.mubr.bf16.vlgmr.msra.gmra.mxu0 %v11776_v56 }
 0x3d2   : > { %9513 = vmatpush3.bf16.msra.mxu0 %v10653_v9  ;;  %9528 = vmatprep.mubr.msk.bf16.mxu0 %vm10946_vm1, %v10944_v2  ;;  %v10683_v9 = vld [vmem:[%s14961_s3 + $0xafc] ss:$12 sps:$4 sm:$0xff]  }
 0x3d3   : > { %9514 = vmatprep.subr.bf16.mxu0 %v10944_v2  ;;  %8999 = vmatpush3.bf16.msra.mxu1 %v10654_v19  ;;  %v10684_v19 = vld [vmem:[%s14961_s3 + $0x918] ss:$12 sps:$4 sm:$0xff]  }
 0x3d4   : > { %9000 = vmatprep.subr.bf16.mxu1 %v10655_v7  ;;  %v10685_v7 = vld [vmem:[%s14961_s3 + $0x904] ss:$12 sps:$4 sm:$0xff]  }
 0x3d6   : > { %9515 = vmatpush3.bf16.msra.mxu0 %v10656_v0  ;;  %v10686_v0 = vld [vmem:[%s14961_s3 + $0xaf8] ss:$12 sps:$4 sm:$0xff]  }
 0x3d7   : > { %9516 = vmatprep.subr.bf16.mxu0 %v10944_v2  ;;  %9001 = vmatpush3.bf16.msra.mxu1 %v10657_v58  ;;  %v10687_v58 = vld [vmem:[%s14961_s3 + $0xae4] ss:$12 sps:$4 sm:$0xff]  }
 0x3d8   : > { %9002 = vmatprep.subr.bf16.mxu1 %v10658_v46  ;;  %v10688_v46 = vld [vmem:[%s14961_s3 + $0x900] ss:$12 sps:$4 sm:$0xff]  }
 0x3da   : > { %9517 = vmatpush3.bf16.msra.mxu0 %v10659_v61  ;;  %v10689_v61 = vld [vmem:[%s14961_s3 + $0xa6c] ss:$12 sps:$4 sm:$0xff]  }
 0x3db   : > { %9518 = vmatprep.subr.bf16.mxu0 %v10944_v2  ;;  %9003 = vmatpush3.bf16.msra.mxu1 %v10660_v44  ;;  %v10690_v44 = vld [vmem:[%s14961_s3 + $0xae0] ss:$12 sps:$4 sm:$0xff]  }
 0x3dc   : > { %6348 = vmatprep.subr.bf16.mxu1 %v10661_v57 }
 0x3de   : > { %9519 = vmatpush3.bf16.msra.mxu0 %v10662_v5  ;;  %v5919_v11 = vpop.f32.mrf.mxu1  ;;  %6295 = vmatmul.mubr.bf16.vlgmr.msra.gmra.mxu1 %v11776_v56  ;;  %v10691_v5 = vld [vmem:[%s14961_s3 + $0xacc] ss:$12 sps:$4 sm:$0xff]  }
 0x3df   : > { %9520 = vmatprep.subr.bf16.mxu0 %v10944_v2  ;;  %6349 = vmatpush1.bf16.msra.mxu1 %v10663_v39 }
 0x3e0   : > { %6380 = vmatprep.mubr.bf16.mxu1 %v12053_v54  ;;  %v5921_v3 = vpop.f32.mrf.mxu1  ;;  %6350 = vmatprep.subr.bf16.mxu1 %v10664_v49 }
 0x3e2   : > { %9521 = vmatpush3.bf16.msra.mxu0 %v10665_v34  ;;  %v5923_v41 = vpop.f32.mrf.mxu1  ;;  %v10694_v34 = vld [vmem:[%s14961_s3 + $0xac8] ss:$12 sps:$4 sm:$0xff]  }
 0x3e3   : > { %9522 = vmatprep.subr.bf16.mxu0 %v10944_v2  ;;  %6351 = vmatpush1.bf16.msra.mxu1 %v10666_v13  ;;  %v10695_v13 = vld [vmem:[%s14961_s3 + $0xab4] ss:$12 sps:$4 sm:$0xff]  }
 0x3e4   : > { %v5924_v4 = vpop.f32.mrf.mxu1  ;;  %6352 = vmatprep.subr.bf16.mxu1 %v10667_v62 }
 0x3e5   : > { %v10696_v4 = vld [vmem:[%s14961_s3 + $0xa50] ss:$12 sps:$4 sm:$0xff]  }
 0x3e6   : > { %9523 = vmatpush3.bf16.msra.mxu0 %v10668_v47  ;;  %v10697_v47 = vld [vmem:[%s14961_s3 + $0xa3c] ss:$12 sps:$4 sm:$0xff]  }
 0x3e7   : > { %9524 = vmatprep.subr.bf16.mxu0 %v10944_v2  ;;  %6353 = vmatpush1.bf16.msra.mxu1 %v10669_v42  ;;  %v10698_v42 = vld [vmem:[%s14961_s3 + $0xab0] ss:$12 sps:$4 sm:$0xff]  }
 0x3e8   : > { %6354 = vmatprep.subr.bf16.mxu1 %v10670_v24  ;;  %v10699_v24 = vld [vmem:[%s14961_s3 + $0xa9c] ss:$12 sps:$4 sm:$0xff]  }
 0x3ea   : > { %9525 = vmatpush3.bf16.msra.mxu0 %v10671_v17  ;;  %v10700_v17 = vld [vmem:[%s14961_s3 + $0xa38] ss:$12 sps:$4 sm:$0xff]  }
 0x3eb   : > { %9526 = vmatprep.subr.bf16.mxu0 %v10944_v2  ;;  %6355 = vmatpush1.bf16.msra.mxu1 %v10672_v55  ;;  %v10701_v55 = vld [vmem:[%s14961_s3 + $0xa24] ss:$12 sps:$4 sm:$0xff]  }
 0x3ec   : > { %6356 = vmatprep.subr.bf16.mxu1 %v10673_v45  ;;  %v10702_v45 = vld [vmem:[%s14961_s3 + $0xa98] ss:$12 sps:$4 sm:$0xff]  }
 0x3ee   : > { %9527 = vmatpush3.bf16.msra.mxu0 %v10674_v22  ;;  %v10703_v22 = vld [vmem:[%s14961_s3 + $0xa84] ss:$12 sps:$4 sm:$0xff]  }
 0x3ef   : > { %6389 = vmatprep.subr.bf16.mxu0 %v10675_v38  ;;  %6357 = vmatpush1.bf16.msra.mxu1 %v10676_v50  ;;  %v10704_v38 = vld [vmem:[%s14961_s3 + $0xa20] ss:$12 sps:$4 sm:$0xff]  }
 0x3f0   : > { %6358 = vmatprep.subr.bf16.mxu1 %v10677_v10  ;;  %v10705_v50 = vld [vmem:[%s14961_s3 + $0xa0c] ss:$12 sps:$4 sm:$0xff]   ;;  %v10707_v10 = vld [vmem:[%s14961_s3 + $0xa70] ss:$12 sps:$4 sm:$0xff]  }
 0x3f1   : > { %v5878_v16 = vpop.f32.mrf.mxu0  ;;  %9529 = vmatmul.mubr.bf16.vlgmr.msra.gmra.mxu0 %v11722_v37 }
 0x3f2   : > { %v13794_v48 = vadd.f32 %v5919_v11, %v5878_v16  ;;  %6390 = vmatpush1.bf16.msra.mxu0 %v10678_v63  ;;  %6421 = vmatprep.mubr.bf16.mxu0 %v10945_v6  ;;  %v10692_v11 = vld [vmem:[%s14961_s3 + $0xa68] ss:$12 sps:$4 sm:$0xff]   ;;  %v10706_v16 = vld [vmem:[%s14961_s3 + $0xa80] ss:$12 sps:$4 sm:$0xff]  }
 0x3f3   : > { %v5880_v12 = vpop.f32.mrf.mxu0  ;;  %6391 = vmatprep.subr.bf16.mxu0 %v10679_v52  ;;  %6359 = vmatpush1.bf16.msra.mxu1 %v10680_v40  ;;  %v10708_v63 = vld [vmem:[%s14961_s3 + $0xa08] ss:$12 sps:$4 sm:$0xff]  }
 0x3f4   : > { %v13803_v30 = vadd.f32 %v5921_v3, %v5880_v12  ;;  %6360 = vmatprep.subr.bf16.mxu1 %v10681_v25  ;;  %v10693_v3 = vld [vmem:[%s14961_s3 + $0xa54] ss:$12 sps:$4 sm:$0xff]  }
 0x3f5   : > { %v5882_v31 = vpop.f32.mrf.mxu0  ;;  %v10709_v52 = vld [vmem:[%s14961_s3 + $0x9f4] ss:$12 sps:$4 sm:$0xff]  }
 0x3f6   : > { %6392 = vmatpush1.bf16.msra.mxu0 %v10682_v23  ;;  %v10710_v31 = vld [vmem:[%s14961_s3 + $0x9b0] ss:$12 sps:$4 sm:$0xff]   ;;  %v10711_v23 = vld [vmem:[%s14961_s3 + $0xa58] ss:$12 sps:$4 sm:$0xff]  }
 0x3f7   : > { %v5883_v51 = vpop.f32.mrf.mxu0  ;;  %6393 = vmatprep.subr.bf16.mxu0 %v10683_v9  ;;  %6361 = vmatpush1.bf16.msra.mxu1 %v10684_v19  ;;  %v10713_v19 = vld [vmem:[%s14961_s3 + $0x9dc] ss:$12 sps:$4 sm:$0xff]  }
 0x3f8   : > { %6362 = vmatprep.subr.bf16.mxu1 %v10685_v7  ;;  %v10712_v51 = vld [vmem:[%s14961_s3 + $0x9f0] ss:$12 sps:$4 sm:$0xff]  }
 0x3fa   : > { %6394 = vmatpush1.bf16.msra.mxu0 %v10686_v0  ;;  %v10715_v0 = vld [vmem:[%s14961_s3 + $0xa40] ss:$12 sps:$4 sm:$0xff]  }
 0x3fb   : > { %6395 = vmatprep.subr.bf16.mxu0 %v10687_v58  ;;  %6363 = vmatpush1.bf16.msra.mxu1 %v10688_v46  ;;  %v10716_v58 = vld [vmem:[%s14961_s3 + $0x9d8] ss:$12 sps:$4 sm:$0xff]  }
 0x3fc   : > { %6364 = vmatprep.subr.bf16.mxu1 %v10689_v61  ;;  %v10717_v46 = vld [vmem:[%s14961_s3 + $0x9c4] ss:$12 sps:$4 sm:$0xff]   ;;  %v10718_v61 = vld [vmem:[%s14961_s3 + $0x980] ss:$12 sps:$4 sm:$0xff]  }
 0x3fe   : > { %6396 = vmatpush1.bf16.msra.mxu0 %v10690_v44  ;;  %v8942_v57 = vpop.f32.mrf.mxu1  ;;  %v10719_v44 = vld [vmem:[%s14961_s3 + $0xa28] ss:$12 sps:$4 sm:$0xff]  }
 0x3ff   : > { %6397 = vmatprep.subr.bf16.mxu0 %v10691_v5  ;;  %6365 = vmatpush2.bf16.msra.mxu1 %v10692_v11  ;;  %v10721_v5 = vld [vmem:[%s14961_s3 + $0x968] ss:$12 sps:$4 sm:$0xff]   ;;  %v10722_v11 = vld [vmem:[%s14961_s3 + $0xa10] ss:$12 sps:$4 sm:$0xff]  }
 0x400   : > { %v8943_v39 = vpop.f32.mrf.mxu1  ;;  %6366 = vmatprep.subr.bf16.mxu1 %v10693_v3  ;;  %v10724_v3 = vld [vmem:[%s14961_s3 + $0x950] ss:$12 sps:$4 sm:$0xff]  }
 0x401   : > { %v8944_v49 = vadd.f32 %v8943_v39, %v8942_v57  ;;  %v10720_v57 = vld [vmem:[%s14961_s3 + $0x9c0] ss:$12 sps:$4 sm:$0xff]   ;;  %v10723_v39 = vld [vmem:[%s14961_s3 + $0xb30] ss:$12 sps:$4 sm:$0xff]  }
 0x402   : > { %6398 = vmatpush1.bf16.msra.mxu0 %v10694_v34  ;;  %v8945_v41 = vpop.f32.mrf.mxu1  ;;  %v10726_v34 = vld [vmem:[%s14961_s3 + $0xb18] ss:$12 sps:$4 sm:$0xff]  }
 0x403   : > { %6399 = vmatprep.subr.bf16.mxu0 %v10695_v13  ;;  %6367 = vmatpush2.bf16.msra.mxu1 %v10696_v4  ;;  %v10727_v41 = vld [vmem:[%s14961_s3 + $0x938] ss:$12 sps:$4 sm:$0xff]   ;;  %v10728_v13 = vld [vmem:[%s14961_s3 + $0x9e0] ss:$12 sps:$4 sm:$0xff]  }
 0x404   : > { %v8946_v62 = vpop.f32.mrf.mxu1  ;;  %6368 = vmatprep.subr.bf16.mxu1 %v10697_v47  ;;  %v10729_v4 = vld [vmem:[%s14961_s3 + $0xb00] ss:$12 sps:$4 sm:$0xff]   ;;  %v10731_v47 = vld [vmem:[%s14961_s3 + $0x9c8] ss:$12 sps:$4 sm:$0xff]  }
 0x405   : > { %v10730_v62 = vld [vmem:[%s14961_s3 + $0x920] ss:$12 sps:$4 sm:$0xff]  }
 0x406   : > { %6400 = vmatpush1.bf16.msra.mxu0 %v10698_v42  ;;  %v10732_v42 = vld [vmem:[%s14961_s3 + $0xae8] ss:$12 sps:$4 sm:$0xff]  }
 0x407   : > { %6401 = vmatprep.subr.bf16.mxu0 %v10699_v24  ;;  %6369 = vmatpush2.bf16.msra.mxu1 %v10700_v17  ;;  %v10733_v24 = vld [vmem:[%s14961_s3 + $0x908] ss:$12 sps:$4 sm:$0xff]   ;;  %v10734_v17 = vld [vmem:[%s14961_s3 + $0x76c] ss:$12 sps:$4 sm:$0xff]  }
 0x408   : > { %6370 = vmatprep.subr.bf16.mxu1 %v10701_v55  ;;  %v10735_v55 = vld [vmem:[%s14961_s3 + $0xad0] ss:$12 sps:$4 sm:$0xff]  }
 0x40a   : > { %6402 = vmatpush1.bf16.msra.mxu0 %v10702_v45 }
 0x40b   : > { %6403 = vmatprep.subr.bf16.mxu0 %v10703_v22  ;;  %6371 = vmatpush2.bf16.msra.mxu1 %v10704_v38  ;;  %v10736_v22 = vld [vmem:[%s14961_s3 + $0x768] ss:$12 sps:$4 sm:$0xff]  }
 0x40c   : > { %6372 = vmatprep.subr.bf16.mxu1 %v10705_v50  ;;  %v10737_v50 = vld [vmem:[%s14961_s3 + $0x754] ss:$12 sps:$4 sm:$0xff]  }
 0x40e   : > { %6404 = vmatpush1.bf16.msra.mxu0 %v10706_v16  ;;  %v10738_v16 = vld [vmem:[%s14961_s3 + $0xab8] ss:$12 sps:$4 sm:$0xff]  }
 0x40f   : > { %9019 = vmatprep.subr.bf16.mxu0 %v10707_v10  ;;  %6373 = vmatpush2.bf16.msra.mxu1 %v10708_v63  ;;  %v10739_v10 = vld [vmem:[%s14961_s3 + $0x750] ss:$12 sps:$4 sm:$0xff]  }
 0x410   : > { %6374 = vmatprep.subr.bf16.mxu1 %v10709_v52  ;;  %v10741_v52 = vld [vmem:[%s14961_s3 + $0xaa0] ss:$12 sps:$4 sm:$0xff]  }
 0x411   : > { %v6000_v12 = vpop.f32.mrf.mxu0  ;;  %6422 = vmatmul.mubr.bf16.vlgmr.msra.gmra.mxu0 %v12195_v15 }
 0x412   : > { %v13896_v40 = vadd.f32 %v8944_v49, %v6000_v12  ;;  %9020 = vmatpush3.bf16.msra.mxu0 %v10710_v31  ;;  %6462 = vmatprep.mubr.bf16.mxu0 %v12053_v54  ;;  %v10714_v54 = vld [vmem:[%s14961_s3 + $0x998] ss:$12 sps:$4 sm:$0xff]   ;;  %v10740_v12 = vld [vmem:[%s14961_s3 + $0x73c] ss:$12 sps:$4 sm:$0xff]  }
 0x413   : > { %v9490_v25 = vpop.f32.mrf.mxu0  ;;  %9021 = vmatprep.subr.bf16.mxu0 %v10711_v23  ;;  %6375 = vmatpush2.bf16.msra.mxu1 %v10712_v51  ;;  %v10725_v49 = vld [vmem:[%s14961_s3 + $0x9f8] ss:$12 sps:$4 sm:$0xff]   ;;  %v10744_v23 = vld [vmem:[%s14961_s3 + $0xa88] ss:$12 sps:$4 sm:$0xff]  }
 0x414   : > { %6376 = vmatprep.subr.bf16.mxu1 %v10713_v19  ;;  %v10742_v31 = vld [vmem:[%s14961_s3 + $0x738] ss:$12 sps:$4 sm:$0xff]  }
 0x415   : > { %v6003_v9 = vpop.f32.mrf.mxu0  ;;  %v10743_v25 = vld [vmem:[%s14961_s3 + $0x724] ss:$12 sps:$4 sm:$0xff]   ;;  %v10745_v51 = vld [vmem:[%s14961_s3 + $0x8ec] ss:$12 sps:$4 sm:$0xff]  }
 0x416   : > { %9022 = vmatpush3.bf16.msra.mxu0 %v10714_v54  ;;  %v10746_v9 = vld [vmem:[%s14961_s3 + $0x720] ss:$12 sps:$4 sm:$0xff]  }
 0x417   : > { %v9491_v7 = vpop.f32.mrf.mxu0  ;;  %9023 = vmatprep.subr.bf16.mxu0 %v10715_v0  ;;  %6377 = vmatpush2.bf16.msra.mxu1 %v10716_v58  ;;  %v10747_v54 = vld [vmem:[%s14961_s3 + $0x70c] ss:$12 sps:$4 sm:$0xff]   ;;  %v10748_v0 = vld [vmem:[%s14961_s3 + $0x8e8] ss:$12 sps:$4 sm:$0xff]  }
 0x418   : > { %6378 = vmatprep.subr.bf16.mxu1 %v10717_v46  ;;  %v10749_v46 = vld [vmem:[%s14961_s3 + $0x8d4] ss:$12 sps:$4 sm:$0xff]  }
 0x41a   : > { %9024 = vmatpush3.bf16.msra.mxu0 %v10718_v61 }
 0x41b   : > { %9025 = vmatprep.subr.bf16.mxu0 %v10719_v44  ;;  %6379 = vmatpush2.bf16.msra.mxu1 %v10720_v57  ;;  %v10751_v57 = vld [vmem:[%s14961_s3 + $0x6f4] ss:$12 sps:$4 sm:$0xff]  }
 0x41c   : > { %9532 = vmatprep.subr.bf16.mxu1 %v10944_v2 }
 0x41e   : > { %9026 = vmatpush3.bf16.msra.mxu0 %v10721_v5  ;;  %6381 = vmatmul.mubr.bf16.vlgmr.msra.gmra.mxu1 %v12254_v26 }
 0x41f   : > { %9027 = vmatprep.subr.bf16.mxu0 %v10722_v11  ;;  %9533 = vmatpush3.bf16.msra.mxu1 %v10723_v39  ;;  %v10752_v11 = vld [vmem:[%s14961_s3 + $0x8d0] ss:$12 sps:$4 sm:$0xff]  }
 0x420   : > { %9548 = vmatprep.mubr.msk.bf16.mxu1 %vm10946_vm1, %v10944_v2  ;;  %9534 = vmatprep.subr.bf16.mxu1 %v10944_v2 }
 0x422   : > { %9028 = vmatpush3.bf16.msra.mxu0 %v10724_v3  ;;  %v10754_v3 = vld [vmem:[%s14961_s3 + $0x6f0] ss:$12 sps:$4 sm:$0xff]  }
 0x423   : > { %9029 = vmatprep.subr.bf16.mxu0 %v10725_v49  ;;  %9535 = vmatpush3.bf16.msra.mxu1 %v10726_v34  ;;  %v10755_v49 = vld [vmem:[%s14961_s3 + $0x6dc] ss:$12 sps:$4 sm:$0xff]   ;;  %v10756_v34 = vld [vmem:[%s14961_s3 + $0x8b8] ss:$12 sps:$4 sm:$0xff]  }
 0x424   : > { %9536 = vmatprep.subr.bf16.mxu1 %v10944_v2 }
 0x426   : > { %9030 = vmatpush3.bf16.msra.mxu0 %v10727_v41  ;;  %v10757_v41 = vld [vmem:[%s14961_s3 + $0x8a4] ss:$12 sps:$4 sm:$0xff]  }
 0x427   : > { %9031 = vmatprep.subr.bf16.mxu0 %v10728_v13  ;;  %9537 = vmatpush3.bf16.msra.mxu1 %v10729_v4  ;;  %v10758_v13 = vld [vmem:[%s14961_s3 + $0x6d8] ss:$12 sps:$4 sm:$0xff]  }
 0x428   : > { %9538 = vmatprep.subr.bf16.mxu1 %v10944_v2  ;;  %v10759_v4 = vld [vmem:[%s14961_s3 + $0x6c4] ss:$12 sps:$4 sm:$0xff]  }
 0x42a   : > { %9032 = vmatpush3.bf16.msra.mxu0 %v10730_v62  ;;  %v10760_v62 = vld [vmem:[%s14961_s3 + $0x8a0] ss:$12 sps:$4 sm:$0xff]  }
 0x42b   : > { %9033 = vmatprep.subr.bf16.mxu0 %v10731_v47  ;;  %9539 = vmatpush3.bf16.msra.mxu1 %v10732_v42  ;;  %v10761_v47 = vld [vmem:[%s14961_s3 + $0x88c] ss:$12 sps:$4 sm:$0xff]  }
 0x42c   : > { %9540 = vmatprep.subr.bf16.mxu1 %v10944_v2  ;;  %v10762_v42 = vld [vmem:[%s14961_s3 + $0x6c0] ss:$12 sps:$4 sm:$0xff]  }
 0x42e   : > { %9034 = vmatpush3.bf16.msra.mxu0 %v10733_v24  ;;  %v10763_v24 = vld [vmem:[%s14961_s3 + $0x82c] ss:$12 sps:$4 sm:$0xff]  }
 0x42f   : > { %6510 = vmatprep.subr.bf16.mxu0 %v10734_v17  ;;  %9541 = vmatpush3.bf16.msra.mxu1 %v10735_v55  ;;  %v10764_v17 = vld [vmem:[%s14961_s3 + $0x888] ss:$12 sps:$4 sm:$0xff]  }
 0x430   : > { %9542 = vmatprep.subr.bf16.mxu1 %v10944_v2 }
 0x431   : > { %v6081_v45 = vpop.f32.mrf.mxu0  ;;  %6463 = vmatmul.mubr.bf16.vlgmr.msra.gmra.mxu0 %v12254_v26 }
 0x432   : > { %6511 = vmatpush1.bf16.msra.mxu0 %v10736_v22  ;;  %6542 = vmatprep.mubr.bf16.mxu0 %v11751_v27  ;;  %v10766_v22 = vld [vmem:[%s14961_s3 + $0x828] ss:$12 sps:$4 sm:$0xff]  }
 0x433   : > { %v6083_v38 = vpop.f32.mrf.mxu0  ;;  %6512 = vmatprep.subr.bf16.mxu0 %v10737_v50  ;;  %9543 = vmatpush3.bf16.msra.mxu1 %v10738_v16  ;;  %v10767_v50 = vld [vmem:[%s14961_s3 + $0x814] ss:$12 sps:$4 sm:$0xff]  }
 0x434   : > { %9544 = vmatprep.subr.bf16.mxu1 %v10944_v2 }
 0x435   : > { %v6085_v26 = vpop.f32.mrf.mxu0 }
 0x436   : > { %6513 = vmatpush1.bf16.msra.mxu0 %v10739_v10  ;;  %v10768_v26 = vld [vmem:[%s14961_s3 + $0x870] ss:$12 sps:$4 sm:$0xff]  }
 0x437   : > { %v6086_v63 = vpop.f32.mrf.mxu0  ;;  %6514 = vmatprep.subr.bf16.mxu0 %v10740_v12  ;;  %9545 = vmatpush3.bf16.msra.mxu1 %v10741_v52  ;;  %v10770_v12 = vld [vmem:[%s14961_s3 + $0x810] ss:$12 sps:$4 sm:$0xff]  }
 0x438   : > { %9546 = vmatprep.subr.bf16.mxu1 %v10944_v2  ;;  %v10769_v63 = vld [vmem:[%s14961_s3 + $0x85c] ss:$12 sps:$4 sm:$0xff]  }
 0x43a   : > { %6515 = vmatpush1.bf16.msra.mxu0 %v10742_v31 }
 0x43b   : > { %6516 = vmatprep.subr.bf16.mxu0 %v10743_v25  ;;  %9547 = vmatpush3.bf16.msra.mxu1 %v10744_v23  ;;  %v10771_v25 = vld [vmem:[%s14961_s3 + $0x7fc] ss:$12 sps:$4 sm:$0xff]   ;;  %v10772_v23 = vld [vmem:[%s14961_s3 + $0x858] ss:$12 sps:$4 sm:$0xff]  }
 0x43c   : > { %6551 = vmatprep.subr.bf16.mxu1 %v10745_v51  ;;  %v10773_v51 = vld [vmem:[%s14961_s3 + $0x844] ss:$12 sps:$4 sm:$0xff]  }
 0x43e   : > { %6517 = vmatpush1.bf16.msra.mxu0 %v10746_v9  ;;  %v6040_v19 = vpop.f32.mrf.mxu1  ;;  %9549 = vmatmul.mubr.bf16.vlgmr.msra.gmra.mxu1 %v12195_v15  ;;  %v10775_v9 = vld [vmem:[%s14961_s3 + $0x7e4] ss:$12 sps:$4 sm:$0xff]  }
 0x43f   : > { %6518 = vmatprep.subr.bf16.mxu0 %v10747_v54  ;;  %v6041_v7 = vadd.f32 %v6040_v19, %v13794_v48  ;;  %6552 = vmatpush1.bf16.msra.mxu1 %v10748_v0  ;;  %v10750_v48 = vld [vmem:[%s14961_s3 + $0x708] ss:$12 sps:$4 sm:$0xff]   ;;  %v10776_v19 = vld [vmem:[%s14961_s3 + $0x840] ss:$12 sps:$4 sm:$0xff]   ;;  %v10777_v54 = vld [vmem:[%s14961_s3 + $0x830] ss:$12 sps:$4 sm:$0xff]  }
 0x440   : > { %6583 = vmatprep.mubr.bf16.mxu1 %v10945_v6  ;;  %v6042_v58 = vpop.f32.mrf.mxu1  ;;  %6553 = vmatprep.subr.bf16.mxu1 %v10749_v46 }
 0x441   : > { %v14035_v15 = vadd.f32 %v6081_v45, %v6041_v7  ;;  %v6043_v61 = vadd.f32 %v6042_v58, %v13803_v30  ;;  %v10753_v30 = vld [vmem:[%s14961_s3 + $0x8bc] ss:$12 sps:$4 sm:$0xff]   ;;  %v10765_v45 = vld [vmem:[%s14961_s3 + $0x874] ss:$12 sps:$4 sm:$0xff]   ;;  %v10779_v58 = vld [vmem:[%s14961_s3 + $0x7cc] ss:$12 sps:$4 sm:$0xff]  }
 0x442   : > { %6519 = vmatpush1.bf16.msra.mxu0 %v10750_v48  ;;  %v6044_v44 = vpop.f32.mrf.mxu1  ;;  %v10778_v7 = vld [vmem:[%s14961_s3 + $0x7e0] ss:$12 sps:$4 sm:$0xff]  }
 0x443   : > { %6520 = vmatprep.subr.bf16.mxu0 %v10751_v57  ;;  %v14044_v5 = vadd.f32 %v6083_v38, %v6043_v61  ;;  %6554 = vmatpush1.bf16.msra.mxu1 %v10752_v11  ;;  %v10780_v61 = vld [vmem:[%s14961_s3 + $0x770] ss:$12 sps:$4 sm:$0xff]   ;;  %v10781_v44 = vld [vmem:[%s14961_s3 + $0x818] ss:$12 sps:$4 sm:$0xff]   ;;  %v10782_v57 = vld [vmem:[%s14961_s3 + $0x7c8] ss:$12 sps:$4 sm:$0xff]  }
 0x444   : > { %v6045_v39 = vpop.f32.mrf.mxu1  ;;  %6555 = vmatprep.subr.bf16.mxu1 %v10753_v30 }
 0x445   : > { %v10783_v39 = vld [vmem:[%s14961_s3 + $0x7b4] ss:$12 sps:$4 sm:$0xff]  }
 0x446   : > { %6521 = vmatpush1.bf16.msra.mxu0 %v10754_v3  ;;  %v10785_v3 = vld [vmem:[%s14961_s3 + $0x800] ss:$12 sps:$4 sm:$0xff]  }
 0x447   : > { %6522 = vmatprep.subr.bf16.mxu0 %v10755_v49  ;;  %6556 = vmatpush1.bf16.msra.mxu1 %v10756_v34  ;;  %v10786_v49 = vld [vmem:[%s14961_s3 + $0x7b0] ss:$12 sps:$4 sm:$0xff]  }
 0x448   : > { %6557 = vmatprep.subr.bf16.mxu1 %v10757_v41  ;;  %v10787_v34 = vld [vmem:[%s14961_s3 + $0x79c] ss:$12 sps:$4 sm:$0xff]   ;;  %v10788_v41 = vld [vmem:[%s14961_s3 + $0x740] ss:$12 sps:$4 sm:$0xff]  }
 0x44a   : > { %6523 = vmatpush1.bf16.msra.mxu0 %v10758_v13  ;;  %v10789_v13 = vld [vmem:[%s14961_s3 + $0x7e8] ss:$12 sps:$4 sm:$0xff]  }
 0x44b   : > { %6524 = vmatprep.subr.bf16.mxu0 %v10759_v4  ;;  %6558 = vmatpush1.bf16.msra.mxu1 %v10760_v62  ;;  %v10790_v4 = vld [vmem:[%s14961_s3 + $0x798] ss:$12 sps:$4 sm:$0xff]  }
 0x44c   : > { %6559 = vmatprep.subr.bf16.mxu1 %v10761_v47  ;;  %v10791_v62 = vld [vmem:[%s14961_s3 + $0x784] ss:$12 sps:$4 sm:$0xff]   ;;  %v10792_v47 = vld [vmem:[%s14961_s3 + $0x728] ss:$12 sps:$4 sm:$0xff]  }
 0x44e   : > { %6525 = vmatpush1.bf16.msra.mxu0 %v10762_v42  ;;  %v10793_v42 = vld [vmem:[%s14961_s3 + $0x7d0] ss:$12 sps:$4 sm:$0xff]  }
 0x44f   : > { %6526 = vmatprep.subr.bf16.mxu0 %v10763_v24  ;;  %6560 = vmatpush1.bf16.msra.mxu1 %v10764_v17  ;;  %v10794_v24 = vld [vmem:[%s14961_s3 + $0x780] ss:$12 sps:$4 sm:$0xff]   ;;  %v10795_v17 = vld [vmem:[%s14961_s3 + $0x710] ss:$12 sps:$4 sm:$0xff]  }
 0x450   : > { %6561 = vmatprep.subr.bf16.mxu1 %v10765_v45  ;;  %v10797_v45 = vld [vmem:[%s14961_s3 + $0x8f0] ss:$12 sps:$4 sm:$0xff]  }
 0x451   : > { %v8973_v55 = vpop.f32.mrf.mxu0 }
 0x452   : > { %6527 = vmatpush2.bf16.msra.mxu0 %v10766_v22  ;;  %v10798_v22 = vld [vmem:[%s14961_s3 + $0x6f8] ss:$12 sps:$4 sm:$0xff]  }
 0x453   : > { %v8974_v38 = vpop.f32.mrf.mxu0  ;;  %6528 = vmatprep.subr.bf16.mxu0 %v10767_v50  ;;  %6562 = vmatpush1.bf16.msra.mxu1 %v10768_v26  ;;  %v10800_v50 = vld [vmem:[%s14961_s3 + $0x8d8] ss:$12 sps:$4 sm:$0xff]   ;;  %v10802_v26 = vld [vmem:[%s14961_s3 + $0x788] ss:$12 sps:$4 sm:$0xff]  }
 0x454   : > { %v8975_v16 = vadd.f32 %v8974_v38, %v8973_v55  ;;  %6563 = vmatprep.subr.bf16.mxu1 %v10769_v63  ;;  %v10796_v55 = vld [vmem:[%s14961_s3 + $0x7b8] ss:$12 sps:$4 sm:$0xff]   ;;  %v10799_v38 = vld [vmem:[%s14961_s3 + $0x7a0] ss:$12 sps:$4 sm:$0xff]   ;;  %v10804_v63 = vld [vmem:[%s14961_s3 + $0x6c8] ss:$12 sps:$4 sm:$0xff]  }
 0x455   : > { %v8976_v10 = vpop.f32.mrf.mxu0 }
 0x456   : > { %6529 = vmatpush2.bf16.msra.mxu0 %v10770_v12  ;;  %v6123_v52 = vadd.f32 %v8975_v16, %v13896_v40  ;;  %v10774_v40 = vld [vmem:[%s14961_s3 + $0x7f8] ss:$12 sps:$4 sm:$0xff]   ;;  %v10801_v16 = vld [vmem:[%s14961_s3 + $0x6e0] ss:$12 sps:$4 sm:$0xff]  }
 0x457   : > { %v8977_v31 = vpop.f32.mrf.mxu0  ;;  %6530 = vmatprep.subr.bf16.mxu0 %v10771_v25  ;;  %6564 = vmatpush1.bf16.msra.mxu1 %v10772_v23  ;;  %v10803_v10 = vld [vmem:[%s14961_s3 + $0x8c0] ss:$12 sps:$4 sm:$0xff]   ;;  %v10807_v25 = vld [vmem:[%s14961_s3 + $0xbe8] ss:$12 sps:$4 sm:$0xff]  }
 0x458   : > { %6565 = vmatprep.subr.bf16.mxu1 %v10773_v51  ;;  %v10805_v12 = vld [vmem:[%s14961_s3 + $0xbec] ss:$12 sps:$4 sm:$0xff]   ;;  %v10808_v51 = vld [vmem:[%s14961_s3 + $0xbd4] ss:$12 sps:$4 sm:$0xff]  }
 0x45a   : > { %6531 = vmatpush2.bf16.msra.mxu0 %v10774_v40  ;;  %v10809_v40 = vld [vmem:[%s14961_s3 + $0x890] ss:$12 sps:$4 sm:$0xff]  }
 0x45b   : > { %6532 = vmatprep.subr.bf16.mxu0 %v10775_v9  ;;  %6566 = vmatpush1.bf16.msra.mxu1 %v10776_v19  ;;  %v10810_v9 = vld [vmem:[%s14961_s3 + $0xbd0] ss:$12 sps:$4 sm:$0xff]  }
 0x45c   : > { %9050 = vmatprep.subr.bf16.mxu1 %v10777_v54  ;;  %v10811_v54 = vld [vmem:[%s14961_s3 + $0xbbc] ss:$12 sps:$4 sm:$0xff]  }
 0x45e   : > { %6533 = vmatpush2.bf16.msra.mxu0 %v10778_v7  ;;  %v6162_v0 = vpop.f32.mrf.mxu1  ;;  %6584 = vmatmul.mubr.bf16.vlgmr.msra.gmra.mxu1 %v11697_v14  ;;  %v10812_v7 = vld [vmem:[%s14961_s3 + $0x878] ss:$12 sps:$4 sm:$0xff]  }
 0x45f   : > { %6534 = vmatprep.subr.bf16.mxu0 %v10779_v58  ;;  %v14132_v46 = vadd.f32 %v6162_v0, %v6123_v52  ;;  %9051 = vmatpush3.bf16.msra.mxu1 %v10780_v61  ;;  %v10806_v52 = vld [vmem:[%s14961_s3 + $0x8a8] ss:$12 sps:$4 sm:$0xff]   ;;  %v10813_v0 = vld [vmem:[%s14961_s3 + $0xbb8] ss:$12 sps:$4 sm:$0xff]   ;;  %v10815_v61 = vld [vmem:[%s14961_s3 + $0x860] ss:$12 sps:$4 sm:$0xff]  }
 0x460   : > { %6624 = vmatprep.mubr.bf16.mxu1 %v11751_v27  ;;  %v9510_v48 = vpop.f32.mrf.mxu1  ;;  %9052 = vmatprep.subr.bf16.mxu1 %v10781_v44  ;;  %v10784_v27 = vld [vmem:[%s14961_s3 + $0x758] ss:$12 sps:$4 sm:$0xff]  }
 0x461   : > { %v10814_v58 = vld [vmem:[%s14961_s3 + $0xba4] ss:$12 sps:$4 sm:$0xff]   ;;  %v10816_v48 = vld [vmem:[%s14961_s3 + $0xba0] ss:$12 sps:$4 sm:$0xff]  }
 0x462   : > { %6535 = vmatpush2.bf16.msra.mxu0 %v10782_v57  ;;  %v6165_v11 = vpop.f32.mrf.mxu1  ;;  %v10817_v44 = vld [vmem:[%s14961_s3 + $0xb8c] ss:$12 sps:$4 sm:$0xff]   ;;  %v10818_v57 = vld [vmem:[%s14961_s3 + $0x848] ss:$12 sps:$4 sm:$0xff]  }
 0x463   : > { %6536 = vmatprep.subr.bf16.mxu0 %v10783_v39  ;;  %9053 = vmatpush3.bf16.msra.mxu1 %v10784_v27  ;;  %v10819_v11 = vld [vmem:[%s14961_s3 + $0xd6c] ss:$12 sps:$4 sm:$0xff]   ;;  %v10820_v39 = vld [vmem:[%s14961_s3 + $0xb88] ss:$12 sps:$4 sm:$0xff]  }
 0x464   : > { %v9511_v30 = vpop.f32.mrf.mxu1  ;;  %9054 = vmatprep.subr.bf16.mxu1 %v10785_v3 }
 0x465   : > { %v10821_v30 = vld [vmem:[%s14961_s3 + $0xb74] ss:$12 sps:$4 sm:$0xff]  }
 0x466   : > { %6537 = vmatpush2.bf16.msra.mxu0 %v10786_v49  ;;  %v10822_v49 = vld [vmem:[%s14961_s3 + $0xd68] ss:$12 sps:$4 sm:$0xff]  }
 0x467   : > { %6538 = vmatprep.subr.bf16.mxu0 %v10787_v34  ;;  %9055 = vmatpush3.bf16.msra.mxu1 %v10788_v41  ;;  %v10823_v41 = vld [vmem:[%s14961_s3 + $0xd54] ss:$12 sps:$4 sm:$0xff]  }
 0x468   : > { %9056 = vmatprep.subr.bf16.mxu1 %v10789_v13 }
 0x46a   : > { %6539 = vmatpush2.bf16.msra.mxu0 %v10790_v4  ;;  %v10824_v4 = vld [vmem:[%s14961_s3 + $0xb70] ss:$12 sps:$4 sm:$0xff]  }
 0x46b   : > { %6540 = vmatprep.subr.bf16.mxu0 %v10791_v62  ;;  %9057 = vmatpush3.bf16.msra.mxu1 %v10792_v47  ;;  %v10825_v47 = vld [vmem:[%s14961_s3 + $0xb5c] ss:$12 sps:$4 sm:$0xff]  }
 0x46c   : > { %9058 = vmatprep.subr.bf16.mxu1 %v10793_v42 }
 0x46e   : > { %6541 = vmatpush2.bf16.msra.mxu0 %v10794_v24 }
 0x46f   : > { %9552 = vmatprep.subr.bf16.mxu0 %v10944_v2  ;;  %9059 = vmatpush3.bf16.msra.mxu1 %v10795_v17  ;;  %v10827_v17 = vld [vmem:[%s14961_s3 + $0xd3c] ss:$12 sps:$4 sm:$0xff]  }
 0x470   : > { %9060 = vmatprep.subr.bf16.mxu1 %v10796_v55 }
 0x471   : > { %6543 = vmatmul.mubr.bf16.vlgmr.msra.gmra.mxu0 %v11754_v35 }
 0x472   : > { %9553 = vmatpush3.bf16.msra.mxu0 %v10797_v45  ;;  %9568 = vmatprep.mubr.msk.bf16.mxu0 %vm10946_vm1, %v10944_v2 }
 0x473   : > { %9554 = vmatprep.subr.bf16.mxu0 %v10944_v2  ;;  %9061 = vmatpush3.bf16.msra.mxu1 %v10798_v22  ;;  %v10835_v22 = vld [vmem:[%s14961_s3 + $0xd0c] ss:$12 sps:$4 sm:$0xff]  }
 0x474   : > { %9062 = vmatprep.subr.bf16.mxu1 %v10799_v38  ;;  %v10836_v38 = vld [vmem:[%s14961_s3 + $0xca8] ss:$12 sps:$4 sm:$0xff]  }
 0x476   : > { %9555 = vmatpush3.bf16.msra.mxu0 %v10800_v50 }
 0x477   : > { %9556 = vmatprep.subr.bf16.mxu0 %v10944_v2  ;;  %9063 = vmatpush3.bf16.msra.mxu1 %v10801_v16  ;;  %v10837_v16 = vld [vmem:[%s14961_s3 + $0xc94] ss:$12 sps:$4 sm:$0xff]  }
 0x478   : > { %9064 = vmatprep.subr.bf16.mxu1 %v10802_v26 }
 0x47a   : > { %9557 = vmatpush3.bf16.msra.mxu0 %v10803_v10  ;;  %v10838_v10 = vld [vmem:[%s14961_s3 + $0xd08] ss:$12 sps:$4 sm:$0xff]  }
 0x47b   : > { %9558 = vmatprep.subr.bf16.mxu0 %v10944_v2  ;;  %9065 = vmatpush3.bf16.msra.mxu1 %v10804_v63 }
 0x47c   : > { %6672 = vmatprep.subr.bf16.mxu1 %v10805_v12  ;;  %v10839_v12 = vld [vmem:[%s14961_s3 + $0xcf4] ss:$12 sps:$4 sm:$0xff]  }
 0x47e   : > { %9559 = vmatpush3.bf16.msra.mxu0 %v10806_v52  ;;  %v6255_v31 = vpop.f32.mrf.mxu1  ;;  %6625 = vmatmul.mubr.bf16.vlgmr.msra.gmra.mxu1 %v11754_v35  ;;  %v10840_v52 = vld [vmem:[%s14961_s3 + $0xc90] ss:$12 sps:$4 sm:$0xff]  }
 0x47f   : > { %9560 = vmatprep.subr.bf16.mxu0 %v10944_v2  ;;  %6673 = vmatpush1.bf16.msra.mxu1 %v10807_v25  ;;  %v10841_v25 = vld [vmem:[%s14961_s3 + $0xc7c] ss:$12 sps:$4 sm:$0xff]  }
 0x480   : > { %6704 = vmatprep.mubr.bf16.mxu1 %v11784_v18  ;;  %v6257_v23 = vpop.f32.mrf.mxu1  ;;  %6674 = vmatprep.subr.bf16.mxu1 %v10808_v51  ;;  %v10843_v51 = vld [vmem:[%s14961_s3 + $0xcdc] ss:$12 sps:$4 sm:$0xff]  }
 0x482   : > { %9561 = vmatpush3.bf16.msra.mxu0 %v10809_v40  ;;  %v6259_v35 = vpop.f32.mrf.mxu1  ;;  %v10844_v40 = vld [vmem:[%s14961_s3 + $0xc78] ss:$12 sps:$4 sm:$0xff]  }
 0x483   : > { %9562 = vmatprep.subr.bf16.mxu0 %v10944_v2  ;;  %6675 = vmatpush1.bf16.msra.mxu1 %v10810_v9  ;;  %v10845_v35 = vld [vmem:[%s14961_s3 + $0xc64] ss:$12 sps:$4 sm:$0xff]  }
 0x484   : > { %v6260_v19 = vpop.f32.mrf.mxu1  ;;  %6676 = vmatprep.subr.bf16.mxu1 %v10811_v54  ;;  %v10846_v9 = vld [vmem:[%s14961_s3 + $0xcd8] ss:$12 sps:$4 sm:$0xff]   ;;  %v10848_v54 = vld [vmem:[%s14961_s3 + $0xc60] ss:$12 sps:$4 sm:$0xff]  }
 0x485   : > { %v10847_v19 = vld [vmem:[%s14961_s3 + $0xcc4] ss:$12 sps:$4 sm:$0xff]  }
 0x486   : > { %9563 = vmatpush3.bf16.msra.mxu0 %v10812_v7  ;;  %v10849_v7 = vld [vmem:[%s14961_s3 + $0xc4c] ss:$12 sps:$4 sm:$0xff]  }
 0x487   : > { %9564 = vmatprep.subr.bf16.mxu0 %v10944_v2  ;;  %6677 = vmatpush1.bf16.msra.mxu1 %v10813_v0  ;;  %v10850_v0 = vld [vmem:[%s14961_s3 + $0xcc0] ss:$12 sps:$4 sm:$0xff]  }
 0x488   : > { %6678 = vmatprep.subr.bf16.mxu1 %v10814_v58  ;;  %v10851_v58 = vld [vmem:[%s14961_s3 + $0xcb0] ss:$12 sps:$4 sm:$0xff]  }
 0x48a   : > { %9565 = vmatpush3.bf16.msra.mxu0 %v10815_v61  ;;  %v10852_v61 = vld [vmem:[%s14961_s3 + $0xc48] ss:$12 sps:$4 sm:$0xff]  }
 0x48b   : > { %9566 = vmatprep.subr.bf16.mxu0 %v10944_v2  ;;  %6679 = vmatpush1.bf16.msra.mxu1 %v10816_v48 }
 0x48c   : > { %6680 = vmatprep.subr.bf16.mxu1 %v10817_v44  ;;  %v10853_v44 = vld [vmem:[%s14961_s3 + $0xc34] ss:$12 sps:$4 sm:$0xff]  }
 0x48e   : > { %9567 = vmatpush3.bf16.msra.mxu0 %v10818_v57 }
 0x48f   : > { %6713 = vmatprep.subr.bf16.mxu0 %v10819_v11  ;;  %6681 = vmatpush1.bf16.msra.mxu1 %v10820_v39  ;;  %v10854_v11 = vld [vmem:[%s14961_s3 + $0xbf0] ss:$12 sps:$4 sm:$0xff]  }
 0x490   : > { %6682 = vmatprep.subr.bf16.mxu1 %v10821_v30 }
 0x491   : > { %v6214_v27 = vpop.f32.mrf.mxu0  ;;  %9569 = vmatmul.mubr.bf16.vlgmr.msra.gmra.mxu0 %v11697_v14 }
 0x492   : > { %v6256_v3 = vadd.f32 %v6255_v31, %v6214_v27  ;;  %6714 = vmatpush1.bf16.msra.mxu0 %v10822_v49  ;;  %6745 = vmatprep.mubr.bf16.mxu0 %v10945_v6  ;;  %v10855_v27 = vld [vmem:[%s14961_s3 + $0xc98] ss:$12 sps:$4 sm:$0xff]  }
 0x493   : > { %v6216_v34 = vpop.f32.mrf.mxu0  ;;  %6715 = vmatprep.subr.bf16.mxu0 %v10823_v41  ;;  %6683 = vmatpush1.bf16.msra.mxu1 %v10824_v4  ;;  %v10864_v4 = vld [vmem:[%s14961_s3 + $0xc00] ss:$12 sps:$4 sm:$0xff]  }
 0x494   : > { %v6342_v14 = vadd.f32 %v6256_v3, %v14035_v15  ;;  %v6258_v13 = vadd.f32 %v6257_v23, %v6216_v34  ;;  %6684 = vmatprep.subr.bf16.mxu1 %v10825_v47  ;;  %v10826_v15 = vld [vmem:[%s14961_s3 + $0xd50] ss:$12 sps:$4 sm:$0xff]  }
 0x495   : > { %v6218_v62 = vpop.f32.mrf.mxu0  ;;  %v10842_v23 = vld [vmem:[%s14961_s3 + $0xcf0] ss:$12 sps:$4 sm:$0xff]  }
 0x496   : > { %v14292_v6 = vmax.f32 %v5841_v32, %v6342_v14  ;;  %v6343_v42 = vadd.f32 %v6258_v13, %v14044_v5  ;;  %6716 = vmatpush1.bf16.msra.mxu0 %v10826_v15  ;;  %v10830_v32 = vld [vmem:[%s14961_s3 + $0xd38] ss:$12 sps:$4 sm:$0xff]   ;;  %v10834_v5 = vld [vmem:[%s14961_s3 + $0xd20] ss:$12 sps:$4 sm:$0xff]   ;;  %v10856_v3 = vld [vmem:[%s14961_s3 + $0xc30] ss:$12 sps:$4 sm:$0xff]  }
 0x497   : > { %v6219_v24 = vpop.f32.mrf.mxu0  ;;  %6717 = vmatprep.subr.bf16.mxu0 %v10827_v17  ;;  %6685 = vmatpush1.bf16.msra.mxu1 %v10828_v33  ;;  %v10857_v34 = vld [vmem:[%s14961_s3 + $0xc1c] ss:$12 sps:$4 sm:$0xff]   ;;  %v10859_v14 = vld [vmem:[%s14961_s3 + $0xc80] ss:$12 sps:$4 sm:$0xff]   ;;  %v10860_v13 = vld [vmem:[%s14961_s3 + $0xc18] ss:$12 sps:$4 sm:$0xff]  }
 0x498   : > { %v14304_v55 = vmax.f32 %v5842_v36, %v6343_v42  ;;  %6686 = vmatprep.subr.bf16.mxu1 %v10829_v21  ;;  %v10833_v36 = vld [vmem:[%s14961_s3 + $0xcac] ss:$12 sps:$4 sm:$0xff]   ;;  %v10865_v62 = vld [vmem:[%s14961_s3 + $0xba8] ss:$12 sps:$4 sm:$0xff]   ;;  %v10866_v47 = vld [vmem:[%s14961_s3 + $0xc50] ss:$12 sps:$4 sm:$0xff]  }
 0x499   : > { %v10867_v42 = vld [vmem:[%s14961_s3 + $0xd70] ss:$12 sps:$4 sm:$0xff]   ;;  %v10869_v24 = vld [vmem:[%s14961_s3 + $0xc38] ss:$12 sps:$4 sm:$0xff]   ;;  %v10872_v21 = vld [vmem:[%s14961_s3 + $0xc20] ss:$12 sps:$4 sm:$0xff]  }
 0x49a   : > { %6718 = vmatpush1.bf16.msra.mxu0 %v10830_v32  ;;  %v10868_v15 = vld [vmem:[%s14961_s3 + $0xb90] ss:$12 sps:$4 sm:$0xff]   ;;  %v10870_v17 = vld [vmem:[%s14961_s3 + $0xd58] ss:$12 sps:$4 sm:$0xff]   ;;  %v10873_v32 = vld [vmem:[%s14961_s3 + $0xd40] ss:$12 sps:$4 sm:$0xff]  }
 0x49b   : > { %6719 = vmatprep.subr.bf16.mxu0 %v10831_v60  ;;  %6687 = vmatpush1.bf16.msra.mxu1 %v10832_v1  ;;  %v10871_v33 = vld [vmem:[%s14961_s3 + $0xb78] ss:$12 sps:$4 sm:$0xff]   ;;  %v10874_v60 = vld [vmem:[%s14961_s3 + $0xb60] ss:$12 sps:$4 sm:$0xff]   ;;  %v10875_v1 = vld [vmem:[%s14961_s3 + $0xc08] ss:$12 sps:$4 sm:$0xff]  }
 0x49c   : > { %6688 = vmatprep.subr.bf16.mxu1 %v10833_v36  ;;  %v10876_v36 = vld [vmem:[%s14961_s3 + $0xd28] ss:$12 sps:$4 sm:$0xff]  }
 0x49e   : > { %6720 = vmatpush1.bf16.msra.mxu0 %v10834_v5  ;;  %v9004_v45 = vpop.f32.mrf.mxu1  ;;  %v10877_v5 = vld [vmem:[%s14961_s3 + $0xb48] ss:$12 sps:$4 sm:$0xff]  }
 0x49f   : > { %6721 = vmatprep.subr.bf16.mxu0 %v10835_v22  ;;  %6689 = vmatpush2.bf16.msra.mxu1 %v10836_v38 }
 0x4a0   : > { %v9005_v50 = vpop.f32.mrf.mxu1  ;;  %6690 = vmatprep.subr.bf16.mxu1 %v10837_v16 }
 0x4a1   : > { %v9006_v26 = vadd.f32 %v9005_v50, %v9004_v45  ;;  %v10878_v45 = vld [vmem:[%s14961_s3 + $0xd10] ss:$12 sps:$4 sm:$0xff]   ;;  %v10879_v50 = vld [vmem:[%s14961_s3 + $0xcf8] ss:$12 sps:$4 sm:$0xff]  }
 0x4a2   : > { %6722 = vmatpush1.bf16.msra.mxu0 %v10838_v10  ;;  %v9007_v63 = vpop.f32.mrf.mxu1  ;;  %v10342_v10 = vld [vmem:[%s14963_s5 + $0x78] sm:$0xff]  }
 0x4a3   : > { %6723 = vmatprep.subr.bf16.mxu0 %v10839_v12  ;;  %6691 = vmatpush2.bf16.msra.mxu1 %v10840_v52  ;;  %v10880_v63 = vld [vmem:[%s14961_s3 + $0xce0] ss:$12 sps:$4 sm:$0xff]   ;;  %v10881_v12 = vld [vmem:[%s14961_s3 + $0xcc8] ss:$12 sps:$4 sm:$0xff]  }
 0x4a4   : > { %v9008_v31 = vpop.f32.mrf.mxu1  ;;  %6692 = vmatprep.subr.bf16.mxu1 %v10841_v25 }
 0x4a6   : > { %6724 = vmatpush1.bf16.msra.mxu0 %v10842_v23 }
 0x4a7   : > { %6725 = vmatprep.subr.bf16.mxu0 %v10843_v51  ;;  %6693 = vmatpush2.bf16.msra.mxu1 %v10844_v40 }
 0x4a8   : > { %6694 = vmatprep.subr.bf16.mxu1 %v10845_v35 }
 0x4aa   : > { %6726 = vmatpush1.bf16.msra.mxu0 %v10846_v9  ;;  %v10344_v9 = vld [vmem:[%s14963_s5 + $0x70] sm:$0xff]  }
 0x4ab   : > { %6727 = vmatprep.subr.bf16.mxu0 %v10847_v19  ;;  %6695 = vmatpush2.bf16.msra.mxu1 %v10848_v54  ;;  %v10345_v19 = vld [vmem:[%s14963_s5 + $0x30] sm:$0xff]  }
 0x4ac   : > { %6696 = vmatprep.subr.bf16.mxu1 %v10849_v7 }
 0x4ae   : > { %6728 = vmatpush1.bf16.msra.mxu0 %v10850_v0  ;;  %v10346_v0 = vld [vmem:[%s14963_s5 + $0x68] sm:$0xff]  }
 0x4af   : > { %9081 = vmatprep.subr.bf16.mxu0 %v10851_v58  ;;  %6697 = vmatpush2.bf16.msra.mxu1 %v10852_v61  ;;  %v10347_v58 = vld [vmem:[%s14963_s5 + $0x28] sm:$0xff]  }
 0x4b0   : > { %6698 = vmatprep.subr.bf16.mxu1 %v10853_v44  ;;  %v10349_v44 = vld [vmem:[%s14963_s5 + $0x20] sm:$0xff]  }
 0x4b1   : > { %v6336_v48 = vpop.f32.mrf.mxu0  ;;  %6746 = vmatmul.mubr.bf16.vlgmr.msra.gmra.mxu0 %v11722_v37 }
 0x4b2   : > { %v6337_v57 = vadd.f32 %v9006_v26, %v6336_v48  ;;  %9082 = vmatpush3.bf16.msra.mxu0 %v10854_v11  ;;  %6786 = vmatprep.mubr.bf16.mxu0 %v11784_v18  ;;  %v10348_v48 = vld [vmem:[%s14963_s5 + $0x60] sm:$0xff]   ;;  %v10351_v11 = vld [vmem:[%s14963_s5 + $0x18] sm:$0xff]  }
 0x4b3   : > { %v9530_v39 = vpop.f32.mrf.mxu0  ;;  %9083 = vmatprep.subr.bf16.mxu0 %v10855_v27  ;;  %6699 = vmatpush2.bf16.msra.mxu1 %v10856_v3  ;;  %v10352_v3 = vld [vmem:[%s14963_s5 + $0x50] sm:$0xff]  }
 0x4b4   : > { %v6344_v30 = vadd.f32 %v6337_v57, %v14132_v46  ;;  %6700 = vmatprep.subr.bf16.mxu1 %v10857_v34  ;;  %v10858_v46 = vld [vmem:[%s14961_s3 + $0xbd8] ss:$12 sps:$4 sm:$0xff]  }
 0x4b5   : > { %v6339_v49 = vpop.f32.mrf.mxu0  ;;  %v10350_v57 = vld [vmem:[%s14963_s5 + $0x58] sm:$0xff]  }
 0x4b6   : > { %v14402_v18 = vmax.f32 %v5843_v29, %v6344_v30  ;;  %9084 = vmatpush3.bf16.msra.mxu0 %v10858_v46  ;;  %v10863_v29 = vld [vmem:[%s14961_s3 + $0xc68] ss:$12 sps:$4 sm:$0xff]  }
 0x4b7   : > { %v9531_v41 = vpop.f32.mrf.mxu0  ;;  %9085 = vmatprep.subr.bf16.mxu0 %v10859_v14  ;;  %6701 = vmatpush2.bf16.msra.mxu1 %v10860_v13  ;;  %v10353_v49 = vld [vmem:[%s14963_s5 + $0x10] sm:$0xff]   ;;  %v10355_v14 = vld [vmem:[%s14963_s5 + $0x8] sm:$0xff]   ;;  %v10356_v13 = vld [vmem:[%s14963_s5 + $0x40] sm:$0xff]  }
 0x4b8   : > { %6702 = vmatprep.subr.bf16.mxu1 %v10861_v28  ;;  %v10354_v41 = vld [vmem:[%s14963_s5 + $0x48] sm:$0xff]   ;;  %v10357_v28 = vld [vmem:[%s14963_s5] sm:$0xff]  }
 0x4ba   : > { %9086 = vmatpush3.bf16.msra.mxu0 %v10862_v53  ;;  %v10358_v53 = vld [vmem:[%s14963_s5 + $0x98] sm:$0xff]  }
 0x4bb   : > { %9087 = vmatprep.subr.bf16.mxu0 %v10863_v29  ;;  %6703 = vmatpush2.bf16.msra.mxu1 %v10864_v4  ;;  %v10360_v29 = vld [vmem:[%s14963_s5 + $0x90] sm:$0xff]  }
 0x4bc   : > { %9572 = vmatprep.subr.bf16.mxu1 %v10944_v2 }
 0x4be   : > { %9088 = vmatpush3.bf16.msra.mxu0 %v10865_v62  ;;  %6705 = vmatmul.mubr.bf16.vlgmr.msra.gmra.mxu1 %v11776_v56 }
 0x4bf   : > { %9089 = vmatprep.subr.bf16.mxu0 %v10866_v47  ;;  %9573 = vmatpush3.bf16.msra.mxu1 %v10867_v42  ;;  %v10362_v47 = vld [vmem:[%s14963_s5 + $0x88] sm:$0xff]  }
 0x4c0   : > { %9588 = vmatprep.mubr.msk.bf16.mxu1 %vm10946_vm1, %v10944_v2  ;;  %9574 = vmatprep.subr.bf16.mxu1 %v10944_v2 }
 0x4c2   : > { %9090 = vmatpush3.bf16.msra.mxu0 %v10868_v15 }
 0x4c3   : > { %9091 = vmatprep.subr.bf16.mxu0 %v10869_v24  ;;  %9575 = vmatpush3.bf16.msra.mxu1 %v10870_v17  ;;  %v10364_v24 = vld [vmem:[%s14963_s5 + $0x80] sm:$0xff]   ;;  %v10366_v17 = vld [vmem:[%s14963_s5 + $0x118] sm:$0xff]  }
 0x4c4   : > { %9576 = vmatprep.subr.bf16.mxu1 %v10944_v2 }
 0x4c6   : > { %9092 = vmatpush3.bf16.msra.mxu0 %v10871_v33 }
 0x4c7   : > { %9093 = vmatprep.subr.bf16.mxu0 %v10872_v21  ;;  %9577 = vmatpush3.bf16.msra.mxu1 %v10873_v32 }
 0x4c8   : > { %9578 = vmatprep.subr.bf16.mxu1 %v10944_v2 }
 0x4ca   : > { %9094 = vmatpush3.bf16.msra.mxu0 %v10874_v60 }
 0x4cb   : > { %9095 = vmatprep.subr.bf16.mxu0 %v10875_v1  ;;  %9579 = vmatpush3.bf16.msra.mxu1 %v10876_v36 }
 0x4cc   : > { %9580 = vmatprep.subr.bf16.mxu1 %v10944_v2 }
 0x4ce   : > { %9096 = vmatpush3.bf16.msra.mxu0 %v10877_v5 }
 0x4cf   : > { %9581 = vmatpush3.bf16.msra.mxu1 %v10878_v45  ;;  %9112 = vmatprep.subr.bf16.mxu0 %v10342_v10 }
 0x4d0   : > { %9582 = vmatprep.subr.bf16.mxu1 %v10944_v2 }
 0x4d1   : > { %v6423_v22 = vpop.f32.mrf.mxu0  ;;  %6787 = vmatmul.mubr.bf16.vlgmr.msra.gmra.mxu0 %v11776_v56  ;;  %v10343_v56 = vld [vmem:[%s14963_s5 + $0x38] sm:$0xff]  }
 0x4d2   : > { %9113 = vmatpush3.bf16.msra.mxu0 %v10343_v56 }
 0x4d3   : > { %v6425_v38 = vpop.f32.mrf.mxu0  ;;  %9583 = vmatpush3.bf16.msra.mxu1 %v10879_v50  ;;  %9114 = vmatprep.subr.bf16.mxu0 %v10344_v9 }
 0x4d4   : > { %9584 = vmatprep.subr.bf16.mxu1 %v10944_v2 }
 0x4d5   : > { %v6427_v16 = vpop.f32.mrf.mxu0 }
 0x4d6   : > { %9115 = vmatpush3.bf16.msra.mxu0 %v10345_v19 }
 0x4d7   : > { %v6428_v26 = vpop.f32.mrf.mxu0  ;;  %9585 = vmatpush3.bf16.msra.mxu1 %v10880_v63  ;;  %9116 = vmatprep.subr.bf16.mxu0 %v10346_v0 }
 0x4d8   : > { %9586 = vmatprep.subr.bf16.mxu1 %v10944_v2 }
 0x4da   : > { %9117 = vmatpush3.bf16.msra.mxu0 %v10347_v58 }
 0x4db   : > { %9587 = vmatpush3.bf16.msra.mxu1 %v10881_v12  ;;  %9118 = vmatprep.subr.bf16.mxu0 %v10348_v48 }
 0x4dc   : > { %9592 = vmatprep.subr.bf16.mxu1 %v10944_v2 }
 0x4de   : > { %v6382_v52 = vpop.f32.mrf.mxu1  ;;  %9589 = vmatmul.mubr.bf16.vlgmr.msra.gmra.mxu1 %v11722_v37  ;;  %9119 = vmatpush3.bf16.msra.mxu0 %v10349_v44 }
 0x4df   : > { %v14496_v31 = vadd.f32 %v6423_v22, %v6382_v52  ;;  %9600 = vmatprep.mubr.msk.bf16.mxu1 %vm10946_vm1, %v10944_v2  ;;  %9120 = vmatprep.subr.bf16.mxu0 %v10350_v57 }
 0x4e0   : > { %v6384_v25 = vpop.f32.mrf.mxu1  ;;  %9593 = vmatpush3.bf16.msra.mxu1 %v10358_v53 }
 0x4e1   : > { %v14500_v23 = vadd.f32 %v6425_v38, %v6384_v25  ;;  %9594 = vmatprep.subr.bf16.mxu1 %v10944_v2 }
 0x4e2   : > { %v6386_v51 = vpop.f32.mrf.mxu1  ;;  %9121 = vmatpush3.bf16.msra.mxu0 %v10351_v11 }
 0x4e3   : > { %9122 = vmatprep.subr.bf16.mxu0 %v10352_v3 }
 0x4e4   : > { %v6387_v40 = vpop.f32.mrf.mxu1  ;;  %9595 = vmatpush3.bf16.msra.mxu1 %v10360_v29 }
 0x4e5   : > { %9596 = vmatprep.subr.bf16.mxu1 %v10944_v2 }
 0x4e6   : > { %9123 = vmatpush3.bf16.msra.mxu0 %v10353_v49 }
 0x4e7   : > { %9124 = vmatprep.subr.bf16.mxu0 %v10354_v41 }
 0x4e8   : > { %9597 = vmatpush3.bf16.msra.mxu1 %v10362_v47 }
 0x4e9   : > { %9598 = vmatprep.subr.bf16.mxu1 %v10944_v2 }
 0x4ea   : > { %9125 = vmatpush3.bf16.msra.mxu0 %v10355_v14 }
 0x4eb   : > { %9126 = vmatprep.subr.bf16.mxu0 %v10356_v13  ;;  %v10365_v13 = vld [vmem:[%s14963_s5 + $0x120] sm:$0xff]  }
 0x4ec   : > { %9599 = vmatpush3.bf16.msra.mxu1 %v10364_v24 }
 0x4ed   : > { %9139 = vmatprep.subr.bf16.mxu1 %v10366_v17 }
 0x4ee   : > { %9127 = vmatpush3.bf16.msra.mxu0 %v10357_v28  ;;  %v10368_v28 = vld [vmem:[%s14963_s5 + $0x1b8] sm:$0xff]  }
 0x4ef   : > { %9604 = vmatprep.subr.bf16.mxu0 %v10944_v2 }
 0x4f1   : > { %v9035_v35 = vpop.f32.mrf.mxu0 }
 0x4f3   : > { %v9036_v37 = vpop.f32.mrf.mxu0 }
 0x4f4   : > { %v9037_v54 = vadd.f32 %v9036_v37, %v9035_v35 }
 0x4f5   : > { %v9038_v7 = vpop.f32.mrf.mxu0 }
 0x4f7   : > { %v9039_v61 = vpop.f32.mrf.mxu0 }
 0x4fe   : > { %v6504_v39 = vpop.f32.mrf.mxu1 }
 0x4ff   : > { %v6505_v27 = vadd.f32 %v9037_v54, %v6504_v39 }
 0x500   : > { %v9550_v30 = vpop.f32.mrf.mxu1 }
 0x502   : > { %v6507_v34 = vpop.f32.mrf.mxu1 }
 0x504   : > { %v9551_v46 = vpop.f32.mrf.mxu1 }
 0x505   : > { %v10363_v46 = vld [vmem:[%s14963_s5 + $0x128] sm:$0xff]  }
 0x51e   : > { %v6585_v4 = vpop.f32.mrf.mxu1 }
 0x520   : > { %v6587_v62 = vpop.f32.mrf.mxu1 }
 0x522   : > { %v6589_v42 = vpop.f32.mrf.mxu1 }
 0x524   : > { %v6590_v15 = vpop.f32.mrf.mxu1 }
 0x531   : > { %v6544_v33 = vpop.f32.mrf.mxu0 }
 0x532   : > { %v6545_v21 = vadd.f32 %v6544_v33, %v14496_v31 }
 0x533   : > { %v6546_v32 = vpop.f32.mrf.mxu0 }
 0x534   : > { %v6586_v60 = vadd.f32 %v6585_v4, %v6545_v21  ;;  %v6547_v1 = vadd.f32 %v6546_v32, %v14500_v23  ;;  %v1172_v23 = vld [vmem:[%s14962_s4] sm:$0x7]  ;;  %v10367_v32 = vld [vmem:[%s14963_s5 + $0xd8] sm:$0xff]  }
 0x535   : > { %v6548_v36 = vpop.f32.mrf.mxu0  ;;  %v6844_v7 = vrot.slane %v1172_v23, %v2498_v59  ;;  %v6848_v44 = vrot.slane %v1172_v23, %v2502_v8  ;;  %v10359_v59 = vld [vmem:[%s14963_s5 + $0x138] sm:$0xff]   ;;  %v10361_v8 = vld [vmem:[%s14963_s5 + $0x130] sm:$0xff]   ;;  %v6852_v42 = vrot.slane %v1172_v23, %v2506_v43 }
 0x536   : > { %v6588_v5 = vadd.f32 %v6587_v62, %v6547_v1  ;;  %v10370_v1 = vld [vmem:[%s14963_s5 + $0x110] sm:$0xff]   ;;  %v10369_v43 = vld [vmem:[%s14963_s5 + $0x178] sm:$0xff]  }
 0x537   : > { %v6549_v45 = vpop.f32.mrf.mxu0  ;;  %v10372_v36 = vld [vmem:[%s14963_s5 + $0x1b0] sm:$0xff]  }
 0x538   : > { %v10371_v45 = vld [vmem:[%s14963_s5 + $0xd0] sm:$0xff]  }
 0x539   : > { %v10387_v23 = vld [vmem:[%s14963_s5 + $0xb0] sm:$0xff]  }
 0x53e   : > { %v9066_v22 = vpop.f32.mrf.mxu1 }
 0x540   : > { %v9067_v38 = vpop.f32.mrf.mxu1 }
 0x541   : > { %v9068_v50 = vadd.f32 %v9067_v38, %v9066_v22  ;;  %v10374_v22 = vld [vmem:[%s14963_s5 + $0x108] sm:$0xff]   ;;  %v10373_v38 = vld [vmem:[%s14963_s5 + $0x170] sm:$0xff]  }
 0x542   : > { %v9069_v16 = vpop.f32.mrf.mxu1 }
 0x543   : > { %v6627_v26 = vadd.f32 %v9068_v50, %v6505_v27  ;;  %v10376_v50 = vld [vmem:[%s14963_s5 + $0x1a8] sm:$0xff]  }
 0x544   : > { %v9070_v10 = vpop.f32.mrf.mxu1  ;;  %v10375_v16 = vld [vmem:[%s14963_s5 + $0xc8] sm:$0xff]  }
 0x545   : > { %v10377_v10 = vld [vmem:[%s14963_s5 + $0x168] sm:$0xff]  }
 0x551   : > { %v6666_v56 = vpop.f32.mrf.mxu0 }
 0x552   : > { %v6667_v63 = vadd.f32 %v6666_v56, %v6627_v26  ;;  %v10378_v26 = vld [vmem:[%s14963_s5 + $0x100] sm:$0xff]  }
 0x553   : > { %v9570_v12 = vpop.f32.mrf.mxu0  ;;  %v10380_v56 = vld [vmem:[%s14963_s5 + $0x1a0] sm:$0xff]  }
 0x554   : > { %v10382_v12 = vld [vmem:[%s14963_s5 + $0xf8] sm:$0xff]  }
 0x555   : > { %v6669_v52 = vpop.f32.mrf.mxu0 }
 0x556   : > { %v10381_v52 = vld [vmem:[%s14963_s5 + $0x160] sm:$0xff]  }
 0x557   : > { %v9571_v25 = vpop.f32.mrf.mxu0 }
 0x558   : > { %v10384_v25 = vld [vmem:[%s14963_s5 + $0x198] sm:$0xff]  }
 0x571   : > { %v6747_v51 = vpop.f32.mrf.mxu0 }
 0x573   : > { %v6749_v31 = vpop.f32.mrf.mxu0 }
 0x575   : > { %v6751_v40 = vpop.f32.mrf.mxu0 }
 0x576   : > { %v10385_v40 = vld [vmem:[%s14963_s5 + $0x158] sm:$0xff]  }
 0x577   : > { %v6752_v35 = vpop.f32.mrf.mxu0 }
 0x578   : > { %v10388_v35 = vld [vmem:[%s14963_s5 + $0x190] sm:$0xff]  }
 0x57e   : > { %v6706_v9 = vpop.f32.mrf.mxu1 }
 0x57f   : > { %v6748_v19 = vadd.f32 %v6747_v51, %v6706_v9  ;;  %v10383_v51 = vld [vmem:[%s14963_s5 + $0xb8] sm:$0xff]   ;;  %v10390_v9 = vld [vmem:[%s14963_s5 + $0xe8] sm:$0xff]  }
 0x580   : > { %v6708_v37 = vpop.f32.mrf.mxu1 }
 0x581   : > { %v6834_v54 = vadd.f32 %v6748_v19, %v6586_v60  ;;  %v6750_v0 = vadd.f32 %v6749_v31, %v6708_v37  ;;  %v10386_v31 = vld [vmem:[%s14963_s5 + $0xf0] sm:$0xff]   ;;  %v10392_v37 = vld [vmem:[%s14963_s5 + $0x188] sm:$0xff]  }
 0x582   : > { %v6710_v58 = vpop.f32.mrf.mxu1  ;;  %v10389_v19 = vld [vmem:[%s14963_s5 + $0x150] sm:$0xff]  }
 0x583   : > { %v6837_v61 = vmax.f32 %v14292_v6, %v6834_v54  ;;  %v6835_v48 = vadd.f32 %v6750_v0, %v6588_v5  ;;  %v10391_v54 = vld [vmem:[%s14963_s5 + $0xa8] sm:$0xff]   ;;  %v10396_v58 = vld [vmem:[%s14963_s5 + $0x180] sm:$0xff]  }
 0x584   : > { %v6711_v57 = vpop.f32.mrf.mxu1  ;;  %v10393_v0 = vld [vmem:[%s14963_s5 + $0x148] sm:$0xff]  }
 0x585   : > { %v6856_v11 = vadd.f32 %v6844_v7, %v6837_v61  ;;  %v6838_v39 = vmax.f32 %v14304_v55, %v6835_v48  ;;  %v10394_v7 = vld [vmem:[%s14963_s5 + $0xe0] sm:$0xff]  }
 0x586   : > { %v10395_v61 = vld [vmem:[%s14963_s5 + $0xa0] sm:$0xff]  }
 0x587   : > { %v6857_v27 = vadd.f32 %v6848_v44, %v6838_v39  ;;  %v6859_v30 = vmax.f32 %v6856_v11, 0.0  ;;  %v10397_v48 = vld [vmem:[%s14963_s5 + $0x140] sm:$0xff]   ;;  %v10398_v44 = vld [vmem:[%s14963_s5 + $0x1d8] sm:$0xff]  }
 0x588   : > { %v10399_v11 = vld [vmem:[%s14963_s5 + $0x278] sm:$0xff]  }
 0x589   : > { %v6860_v3 = vmax.f32 %v6857_v27, 0.0  ;;  %v14579_v34 = vpack.c.bf16 %v6859_v30, %v6859_v30  ;;  %v10400_v27 = vld [vmem:[%s14963_s5 + $0x1d0] sm:$0xff]  }
 0x58a   : > { %v10401_v30 = vld [vmem:[%s14963_s5 + $0x270] sm:$0xff]  }
 0x58b   : > { %v14574_v49 = vpack.c.bf16 %v6860_v3, %v6860_v3  ;;  %v7071_v57 = vshrl.u32 %v14579_v34, 16  ;;  %v7287_v39 = vrot.slane %v14579_v34, 1  ;;  %v10402_v3 = vld [vmem:[%s14963_s5 + $0x1c8] sm:$0xff]  }
 0x58d   : > { %7021 = vmatprep.mubr.bf16.mxu0 %v14574_v49  ;;  %v7074_v20 = vshrl.u32 %v14574_v49, 16  ;;  %v7288_v5 = vrot.slane %v14574_v49, 1 }
 0x58e   : > { %7022 = vmatmul.mubr.bf16.vlgmr.msra.gmra.mxu0 %v14579_v34 }
 0x58f   : > { %9605 = vmatpush3.bf16.msra.mxu0 %v10359_v59  ;;  %9612 = vmatprep.mubr.msk.bf16.mxu0 %vm10946_vm1, %v10944_v2  ;;  %v10403_v59 = vld [vmem:[%s14963_s5 + $0x268] sm:$0xff]  }
 0x590   : > { %9606 = vmatprep.subr.bf16.mxu0 %v10944_v2 }
 0x591   : > { %v9097_v6 = vpop.f32.mrf.mxu0 }
 0x593   : > { %v9098_v55 = vpop.f32.mrf.mxu0  ;;  %9607 = vmatpush3.bf16.msra.mxu0 %v10361_v8  ;;  %v10404_v8 = vld [vmem:[%s14963_s5 + $0x1c0] sm:$0xff]  }
 0x594   : > { %9608 = vmatprep.subr.bf16.mxu0 %v10944_v2  ;;  %v9099_v53 = vadd.f32 %v9098_v55, %v9097_v6  ;;  %v10406_v6 = vld [vmem:[%s14963_s5 + $0x258] sm:$0xff]   ;;  %v10405_v55 = vld [vmem:[%s14963_s5 + $0x260] sm:$0xff]  }
 0x595   : > { %v9100_v41 = vpop.f32.mrf.mxu0 }
 0x596   : > { %v10407_v41 = vld [vmem:[%s14963_s5 + $0x218] sm:$0xff]  }
 0x597   : > { %v9101_v14 = vpop.f32.mrf.mxu0  ;;  %9609 = vmatpush3.bf16.msra.mxu0 %v10363_v46  ;;  %v10408_v46 = vld [vmem:[%s14963_s5 + $0x2f8] sm:$0xff]  }
 0x598   : > { %9610 = vmatprep.subr.bf16.mxu0 %v10944_v2 }
 0x59b   : > { %9611 = vmatpush3.bf16.msra.mxu0 %v10365_v13  ;;  %v10410_v13 = vld [vmem:[%s14963_s5 + $0x250] sm:$0xff]  }
 0x59c   : > { %9166 = vmatprep.subr.bf16.mxu0 %v10368_v28  ;;  %v7497_v28 = vrot.slane %v7074_v20, 1 }
 0x59e   : > { %v6828_v29 = vpop.f32.mrf.mxu1 }
 0x59f   : > { %v6829_v4 = vadd.f32 %v9099_v53, %v6828_v29  ;;  %v10409_v53 = vld [vmem:[%s14963_s5 + $0x2b8] sm:$0xff]  }
 0x5a0   : > { %v9590_v62 = vpop.f32.mrf.mxu1 }
 0x5a1   : > { %v6836_v47 = vadd.f32 %v6829_v4, %v6667_v63  ;;  %v10379_v63 = vld [vmem:[%s14963_s5 + $0xc0] sm:$0xff]   ;;  %v10412_v4 = vld [vmem:[%s14963_s5 + $0x2f0] sm:$0xff]   ;;  %v7706_v62 = vrot.slane %v14574_v49, 2  ;;  %v10416_v49 = vld [vmem:[%s14963_s5 + $0x2e8] sm:$0xff]  }
 0x5a2   : > { %v6831_v15 = vpop.f32.mrf.mxu1 }
 0x5a3   : > { %v6839_v24 = vmax.f32 %v14402_v18, %v6836_v47  ;;  %v10411_v47 = vld [vmem:[%s14963_s5 + $0x210] sm:$0xff]  }
 0x5a4   : > { %v9591_v17 = vpop.f32.mrf.mxu1  ;;  %v10413_v15 = vld [vmem:[%s14963_s5 + $0x2b0] sm:$0xff]  }
 0x5a5   : > { %v6858_v33 = vadd.f32 %v6852_v42, %v6839_v24  ;;  %v10414_v42 = vld [vmem:[%s14963_s5 + $0x248] sm:$0xff]   ;;  %v10418_v17 = vld [vmem:[%s14963_s5 + $0x240] sm:$0xff]  }
 0x5a6   : > { %v10415_v24 = vld [vmem:[%s14963_s5 + $0x208] sm:$0xff]  }
 0x5a7   : > { %v6861_v21 = vmax.f32 %v6858_v33, 0.0  ;;  %v10417_v33 = vld [vmem:[%s14963_s5 + $0x2a8] sm:$0xff]  }
 0x5a9   : > { %v14606_v60 = vpack.c.bf16 %v6861_v21, %v6861_v21  ;;  %v10420_v21 = vld [vmem:[%s14963_s5 + $0x2e0] sm:$0xff]  }
 0x5ab   : > { %v7076_v18 = vshrl.u32 %v14606_v60, 16  ;;  %9601 = vmatmul.mubr.msk.bf16.vlgmr.msra.gmra.mxu1 %vm6985_vm3, %v14606_v60  ;;  %v7289_v14 = vrot.slane %v14606_v60, 1 }
 0x5ac   : > { %9140 = vmatpush3.bf16.msra.mxu1 %v10367_v32  ;;  %7235 = vmatprep.mubr.bf16.mxu1 %v7074_v20  ;;  %v10419_v32 = vld [vmem:[%s14963_s5 + $0x200] sm:$0xff]  }
 0x5ad   : > { %9613 = vmatmul.mubr.msk.bf16.vlgmr.msra.gmra.mxu0 %vm6985_vm3, %v7076_v18  ;;  %9141 = vmatprep.subr.bf16.mxu1 %v10370_v1  ;;  %v7498_v29 = vrot.slane %v7076_v18, 1  ;;  %v10422_v1 = vld [vmem:[%s14963_s5 + $0x238] sm:$0xff]   ;;  %v10421_v20 = vld [vmem:[%s14963_s5 + $0x2a0] sm:$0xff]  }
 0x5ae   : > { %9167 = vmatpush3.bf16.msra.mxu0 %v10369_v43  ;;  %7447 = vmatprep.mubr.bf16.mxu0 %v7288_v5  ;;  %v10424_v43 = vld [vmem:[%s14963_s5 + $0x2d8] sm:$0xff]  }
 0x5af   : > { %9168 = vmatprep.subr.bf16.mxu0 %v10372_v36  ;;  %v10423_v18 = vld [vmem:[%s14963_s5 + $0x1f8] sm:$0xff]   ;;  %v10426_v36 = vld [vmem:[%s14963_s5 + $0x230] sm:$0xff]  }
 0x5b0   : > { %9142 = vmatpush3.bf16.msra.mxu1 %v10371_v45  ;;  %v10425_v5 = vld [vmem:[%s14963_s5 + $0x298] sm:$0xff]   ;;  %v10428_v45 = vld [vmem:[%s14963_s5 + $0x2d0] sm:$0xff]  }
 0x5b1   : > { %9143 = vmatprep.subr.bf16.mxu1 %v10374_v22  ;;  %v10427_v22 = vld [vmem:[%s14963_s5 + $0x1f0] sm:$0xff]  }
 0x5b2   : > { %9169 = vmatpush3.bf16.msra.mxu0 %v10373_v38  ;;  %v10430_v38 = vld [vmem:[%s14963_s5 + $0x228] sm:$0xff]  }
 0x5b3   : > { %9170 = vmatprep.subr.bf16.mxu0 %v10376_v50  ;;  %v10429_v50 = vld [vmem:[%s14963_s5 + $0x290] sm:$0xff]  }
 0x5b4   : > { %9144 = vmatpush3.bf16.msra.mxu1 %v10375_v16  ;;  %v10432_v16 = vld [vmem:[%s14963_s5 + $0x2c8] sm:$0xff]  }
 0x5b5   : > { %9145 = vmatprep.subr.bf16.mxu1 %v10378_v26  ;;  %v10431_v26 = vld [vmem:[%s14963_s5 + $0x1e8] sm:$0xff]  }
 0x5b6   : > { %9171 = vmatpush3.bf16.msra.mxu0 %v10377_v10  ;;  %v10434_v10 = vld [vmem:[%s14963_s5 + $0x220] sm:$0xff]  }
 0x5b7   : > { %9172 = vmatprep.subr.bf16.mxu0 %v10380_v56  ;;  %v10433_v56 = vld [vmem:[%s14963_s5 + $0x288] sm:$0xff]  }
 0x5b8   : > { %9146 = vmatpush3.bf16.msra.mxu1 %v10379_v63  ;;  %v10436_v63 = vld [vmem:[%s14963_s5 + $0x2c0] sm:$0xff]  }
 0x5b9   : > { %9147 = vmatprep.subr.bf16.mxu1 %v10382_v12  ;;  %v10435_v12 = vld [vmem:[%s14963_s5 + $0x1e0] sm:$0xff]  }
 0x5ba   : > { %9173 = vmatpush3.bf16.msra.mxu0 %v10381_v52  ;;  %v10437_v52 = vld [vmem:[%s14963_s5 + $0x280] sm:$0xff]  }
 0x5bb   : > { %9174 = vmatprep.subr.bf16.mxu0 %v10384_v25  ;;  %v10438_v25 = vld [vmem:[%s14963_s5 + $0x318] sm:$0xff]  }
 0x5bc   : > { %9148 = vmatpush3.bf16.msra.mxu1 %v10383_v51  ;;  %v7496_v51 = vrot.slane %v7071_v57, 1 }
 0x5bd   : > { %9149 = vmatprep.subr.bf16.mxu1 %v10386_v31  ;;  %v7705_v31 = vrot.slane %v14579_v34, 2  ;;  %v10441_v34 = vld [vmem:[%s14963_s5 + $0x300] sm:$0xff]  }
 0x5be   : > { %9175 = vmatpush3.bf16.msra.mxu0 %v10385_v40  ;;  %v10439_v40 = vld [vmem:[%s14963_s5 + $0x310] sm:$0xff]  }
 0x5bf   : > { %9176 = vmatprep.subr.bf16.mxu0 %v10388_v35  ;;  %v10440_v35 = vld [vmem:[%s14963_s5 + $0x308] sm:$0xff]  }
 0x5c0   : > { %9150 = vmatpush3.bf16.msra.mxu1 %v10387_v23  ;;  %v7707_v23 = vrot.slane %v14606_v60, 2  ;;  %v10444_v60 = vld [vmem:[%s14965_s7 + $0x28] sm:$0xff]  }
 0x5c1   : > { %9151 = vmatprep.subr.bf16.mxu1 %v10390_v9  ;;  %v10442_v9 = vld [vmem:[%s14965_s7 + $0x38] sm:$0xff]  }
 0x5c2   : > { %9177 = vmatpush3.bf16.msra.mxu0 %v10389_v19  ;;  %v10443_v19 = vld [vmem:[%s14965_s7 + $0x30] sm:$0xff]  }
 0x5c3   : > { %9178 = vmatprep.subr.bf16.mxu0 %v10392_v37  ;;  %v10445_v37 = vld [vmem:[%s14965_s7 + $0x20] sm:$0xff]  }
 0x5c4   : > { %9152 = vmatpush3.bf16.msra.mxu1 %v10391_v54  ;;  %v10446_v54 = vld [vmem:[%s14965_s7 + $0x18] sm:$0xff]  }
 0x5c5   : > { %9153 = vmatprep.subr.bf16.mxu1 %v10394_v7  ;;  %v10447_v7 = vld [vmem:[%s14965_s7 + $0x10] sm:$0xff]  }
 0x5c6   : > { %9179 = vmatpush3.bf16.msra.mxu0 %v10393_v0  ;;  %v10448_v0 = vld [vmem:[%s14965_s7 + $0x8] sm:$0xff]  }
 0x5c7   : > { %9180 = vmatprep.subr.bf16.mxu0 %v10396_v58 }
 0x5c8   : > { %9154 = vmatpush3.bf16.msra.mxu1 %v10395_v61  ;;  %v10449_v61 = vld [vmem:[%s14965_s7] sm:$0xff]  }
 0x5c9   : > { %9616 = vmatprep.subr.bf16.mxu1 %v10944_v2 }
 0x5ca   : > { %9181 = vmatpush3.bf16.msra.mxu0 %v10397_v48 }
 0x5cb   : > { %7236 = vmatmul.mubr.bf16.vlgmr.msra.gmra.mxu1 %v7071_v57  ;;  %9628 = vmatprep.subr.bf16.mxu0 %v10944_v2 }
 0x5cc   : > { %9617 = vmatpush3.bf16.msra.mxu1 %v10398_v44  ;;  %9624 = vmatprep.mubr.msk.bf16.mxu1 %vm10946_vm1, %v10944_v2 }
 0x5cd   : > { %7448 = vmatmul.mubr.bf16.vlgmr.msra.gmra.mxu0 %v7287_v39  ;;  %9618 = vmatprep.subr.bf16.mxu1 %v10944_v2 }
 0x5ce   : > { %9629 = vmatpush3.bf16.msra.mxu0 %v10399_v11  ;;  %9636 = vmatprep.mubr.msk.bf16.mxu0 %vm10946_vm1, %v10944_v2 }
 0x5cf   : > { %9630 = vmatprep.subr.bf16.mxu0 %v10944_v2 }
 0x5d0   : > { %9619 = vmatpush3.bf16.msra.mxu1 %v10400_v27 }
 0x5d1   : > { %9620 = vmatprep.subr.bf16.mxu1 %v10944_v2 }
 0x5d2   : > { %9631 = vmatpush3.bf16.msra.mxu0 %v10401_v30 }
 0x5d3   : > { %9632 = vmatprep.subr.bf16.mxu0 %v10944_v2 }
 0x5d4   : > { %9621 = vmatpush3.bf16.msra.mxu1 %v10402_v3 }
 0x5d5   : > { %9622 = vmatprep.subr.bf16.mxu1 %v10944_v2 }
 0x5d6   : > { %9633 = vmatpush3.bf16.msra.mxu0 %v10403_v59 }
 0x5d7   : > { %9634 = vmatprep.subr.bf16.mxu0 %v10944_v2 }
 0x5d8   : > { %9623 = vmatpush3.bf16.msra.mxu1 %v10404_v8 }
 0x5d9   : > { %9193 = vmatprep.subr.bf16.mxu1 %v10406_v6 }
 0x5da   : > { %9635 = vmatpush3.bf16.msra.mxu0 %v10405_v55 }
 0x5db   : > { %9625 = vmatmul.mubr.msk.bf16.vlgmr.msra.gmra.mxu1 %vm6985_vm3, %v7289_v14  ;;  %9220 = vmatprep.subr.bf16.mxu0 %v10408_v46 }
 0x5dc   : > { %9194 = vmatpush3.bf16.msra.mxu1 %v10407_v41  ;;  %7656 = vmatprep.mubr.bf16.mxu1 %v7497_v28 }
 0x5dd   : > { %9637 = vmatmul.mubr.msk.bf16.vlgmr.msra.gmra.mxu0 %vm6985_vm3, %v7498_v29  ;;  %9195 = vmatprep.subr.bf16.mxu1 %v10410_v13 }
 0x5de   : > { %9221 = vmatpush3.bf16.msra.mxu0 %v10409_v53  ;;  %7865 = vmatprep.mubr.bf16.mxu0 %v7706_v62 }
 0x5df   : > { %9222 = vmatprep.subr.bf16.mxu0 %v10412_v4 }
 0x5e0   : > { %9196 = vmatpush3.bf16.msra.mxu1 %v10411_v47 }
 0x5e1   : > { %9197 = vmatprep.subr.bf16.mxu1 %v10414_v42 }
 0x5e2   : > { %9223 = vmatpush3.bf16.msra.mxu0 %v10413_v15 }
 0x5e3   : > { %9224 = vmatprep.subr.bf16.mxu0 %v10416_v49 }
 0x5e4   : > { %9198 = vmatpush3.bf16.msra.mxu1 %v10415_v24 }
 0x5e5   : > { %9199 = vmatprep.subr.bf16.mxu1 %v10418_v17 }
 0x5e6   : > { %9225 = vmatpush3.bf16.msra.mxu0 %v10417_v33 }
 0x5e7   : > { %9226 = vmatprep.subr.bf16.mxu0 %v10420_v21 }
 0x5e8   : > { %9200 = vmatpush3.bf16.msra.mxu1 %v10419_v32 }
 0x5e9   : > { %9201 = vmatprep.subr.bf16.mxu1 %v10422_v1 }
 0x5ea   : > { %9227 = vmatpush3.bf16.msra.mxu0 %v10421_v20 }
 0x5eb   : > { %9228 = vmatprep.subr.bf16.mxu0 %v10424_v43 }
 0x5ec   : > { %9202 = vmatpush3.bf16.msra.mxu1 %v10423_v18 }
 0x5ed   : > { %9203 = vmatprep.subr.bf16.mxu1 %v10426_v36 }
 0x5ee   : > { %9229 = vmatpush3.bf16.msra.mxu0 %v10425_v5 }
 0x5ef   : > { %9230 = vmatprep.subr.bf16.mxu0 %v10428_v45 }
 0x5f0   : > { %9204 = vmatpush3.bf16.msra.mxu1 %v10427_v22 }
 0x5f1   : > { %9205 = vmatprep.subr.bf16.mxu1 %v10430_v38 }
 0x5f2   : > { %9231 = vmatpush3.bf16.msra.mxu0 %v10429_v50 }
 0x5f3   : > { %9232 = vmatprep.subr.bf16.mxu0 %v10432_v16 }
 0x5f4   : > { %9206 = vmatpush3.bf16.msra.mxu1 %v10431_v26 }
 0x5f5   : > { %9207 = vmatprep.subr.bf16.mxu1 %v10434_v10 }
 0x5f6   : > { %9233 = vmatpush3.bf16.msra.mxu0 %v10433_v56 }
 0x5f7   : > { %9234 = vmatprep.subr.bf16.mxu0 %v10436_v63 }
 0x5f8   : > { %9208 = vmatpush3.bf16.msra.mxu1 %v10435_v12 }
 0x5f9   : > { %9640 = vmatprep.subr.bf16.mxu1 %v10944_v2 }
 0x5fa   : > { %9235 = vmatpush3.bf16.msra.mxu0 %v10437_v52 }
 0x5fb   : > { %7657 = vmatmul.mubr.bf16.vlgmr.msra.gmra.mxu1 %v7496_v51 }
 0x5fc   : > { %9641 = vmatpush3.bf16.msra.mxu1 %v10438_v25  ;;  %9648 = vmatprep.mubr.msk.bf16.mxu1 %vm10946_vm1, %v10944_v2 }
 0x5fd   : > { %7866 = vmatmul.mubr.bf16.vlgmr.msra.gmra.mxu0 %v7705_v31  ;;  %9642 = vmatprep.subr.bf16.mxu1 %v10944_v2 }
 0x600   : > { %9643 = vmatpush3.bf16.msra.mxu1 %v10439_v40 }
 0x601   : > { %9644 = vmatprep.subr.bf16.mxu1 %v10944_v2 }
 0x604   : > { %9645 = vmatpush3.bf16.msra.mxu1 %v10440_v35 }
 0x605   : > { %9646 = vmatprep.subr.bf16.mxu1 %v10944_v2 }
 0x608   : > { %9647 = vmatpush3.bf16.msra.mxu1 %v10441_v34 }
 0x609   : > { %9652 = vmatprep.subr.bf16.mxu1 %v10944_v2 }
 0x60b   : > { %9649 = vmatmul.mubr.msk.bf16.vlgmr.msra.gmra.mxu1 %vm6985_vm3, %v7707_v23 }
 0x60c   : > { %9668 = vmatprep.mubr.msk.bf16.mxu1 %vm10946_vm1, %v10944_v2  ;;  %9653 = vmatpush3.bf16.msra.mxu1 %v10442_v9 }
 0x60d   : > { %9654 = vmatprep.subr.bf16.mxu1 %v10944_v2 }
 0x610   : > { %9655 = vmatpush3.bf16.msra.mxu1 %v10443_v19 }
 0x611   : > { %9656 = vmatprep.subr.bf16.mxu1 %v10944_v2 }
 0x614   : > { %9657 = vmatpush3.bf16.msra.mxu1 %v10444_v60  ;;  %v1174_v60 = vld [vmem:[%s14966_s8] sm:$0x1] }
 0x615   : > { %9658 = vmatprep.subr.bf16.mxu1 %v10944_v2 }
 0x618   : > { %9659 = vmatpush3.bf16.msra.mxu1 %v10445_v37 }
 0x619   : > { %9660 = vmatprep.subr.bf16.mxu1 %v10944_v2 }
 0x61c   : > { %9661 = vmatpush3.bf16.msra.mxu1 %v10446_v54 }
 0x61d   : > { %9662 = vmatprep.subr.bf16.mxu1 %v10944_v2 }
 0x620   : > { %9663 = vmatpush3.bf16.msra.mxu1 %v10447_v7 }
 0x621   : > { %9664 = vmatprep.subr.bf16.mxu1 %v10944_v2 }
 0x624   : > { %9665 = vmatpush3.bf16.msra.mxu1 %v10448_v0 }
 0x625   : > { %9666 = vmatprep.subr.bf16.mxu1 %v10944_v2  ;;  %v1173_v2 = vld [vmem:[%s14964_s6] sm:$0x1] }
 0x628   : > { %9667 = vmatpush3.bf16.msra.mxu1 %v10449_v61 }
 0x64e   : > { %v9128_v58 = vpop.f32.mrf.mxu0 }
 0x650   : > { %v9129_v48 = vpop.f32.mrf.mxu0 }
 0x651   : > { %v9130_v44 = vadd.f32 %v9129_v48, %v9128_v58 }
 0x652   : > { %v9131_v57 = vpop.f32.mrf.mxu0 }
 0x654   : > { %v9132_v11 = vpop.f32.mrf.mxu0 }
 0x66b   : > { %v7063_v39 = vpop.f32.mrf.mxu1 }
 0x66c   : > { %v7064_v27 = vadd.f32 %v9130_v44, %v7063_v39 }
 0x66d   : > { %v9602_v30 = vpop.f32.mrf.mxu1  ;;  %v7277_v3 = vpop.f32.mrf.mxu0 }
 0x66e   : > { %v7069_v4 = vadd.f32 %v7064_v27, %v1173_v2 }
 0x66f   : > { %v7066_v59 = vpop.f32.mrf.mxu1  ;;  %v9614_v8 = vpop.f32.mrf.mxu0 }
 0x671   : > { %v9603_v6 = vpop.f32.mrf.mxu1  ;;  %v7280_v55 = vpop.f32.mrf.mxu0 }
 0x673   : > { %v9615_v46 = vpop.f32.mrf.mxu0 }
 0x68b   : > { %v9155_v41 = vpop.f32.mrf.mxu1 }
 0x68d   : > { %v9156_v14 = vpop.f32.mrf.mxu1  ;;  %v9182_v13 = vpop.f32.mrf.mxu0 }
 0x68e   : > { %v9157_v28 = vadd.f32 %v9156_v14, %v9155_v41 }
 0x68f   : > { %v9158_v53 = vpop.f32.mrf.mxu1  ;;  %v9183_v29 = vpop.f32.mrf.mxu0 }
 0x690   : > { %v7278_v62 = vadd.f32 %v9157_v28, %v7277_v3  ;;  %v9184_v26 = vadd.f32 %v9183_v29, %v9182_v13 }
 0x691   : > { %v9159_v47 = vpop.f32.mrf.mxu1  ;;  %v9185_v42 = vpop.f32.mrf.mxu0 }
 0x692   : > { %v7283_v15 = vadd.f32 %v7278_v62, %v7069_v4 }
 0x693   : > { %v9186_v49 = vpop.f32.mrf.mxu0 }
 0x69b   : > { %v7489_v24 = vpop.f32.mrf.mxu1 }
 0x69c   : > { %v7490_v56 = vadd.f32 %v9184_v26, %v7489_v24 }
 0x69d   : > { %v9626_v17 = vpop.f32.mrf.mxu1  ;;  %v7698_v33 = vpop.f32.mrf.mxu0 }
 0x69e   : > { %v7495_v12 = vadd.f32 %v7490_v56, %v7283_v15 }
 0x69f   : > { %v7492_v21 = vpop.f32.mrf.mxu1  ;;  %v9638_v32 = vpop.f32.mrf.mxu0 }
 0x6a1   : > { %v9627_v1 = vpop.f32.mrf.mxu1  ;;  %v7701_v20 = vpop.f32.mrf.mxu0 }
 0x6a3   : > { %v9639_v43 = vpop.f32.mrf.mxu0 }
 0x6bb   : > { %v9209_v18 = vpop.f32.mrf.mxu1 }
 0x6bd   : > { %v9210_v36 = vpop.f32.mrf.mxu1  ;;  %v9236_v5 = vpop.f32.mrf.mxu0 }
 0x6be   : > { %v9211_v10 = vadd.f32 %v9210_v36, %v9209_v18 }
 0x6bf   : > { %v9212_v45 = vpop.f32.mrf.mxu1  ;;  %v9237_v22 = vpop.f32.mrf.mxu0 }
 0x6c0   : > { %v7699_v63 = vadd.f32 %v9211_v10, %v7698_v33  ;;  %v9238_v52 = vadd.f32 %v9237_v22, %v9236_v5 }
 0x6c1   : > { %v9213_v38 = vpop.f32.mrf.mxu1  ;;  %v9239_v50 = vpop.f32.mrf.mxu0 }
 0x6c2   : > { %v7704_v51 = vadd.f32 %v7699_v63, %v7495_v12 }
 0x6c3   : > { %v9240_v16 = vpop.f32.mrf.mxu0 }
 0x6cb   : > { %v7907_v25 = vpop.f32.mrf.mxu1 }
 0x6cc   : > { %v7908_v31 = vadd.f32 %v9238_v52, %v7907_v25 }
 0x6cd   : > { %v9650_v40 = vpop.f32.mrf.mxu1 }
 0x6ce   : > { %v7913_v35 = vadd.f32 %v7908_v31, %v7704_v51 }
 0x6cf   : > { %v7910_v34 = vpop.f32.mrf.mxu1 }
 0x6d0   : > { %v7914_v23 = vmax.f32 %v7913_v35, 0.0 }
 0x6d1   : > { %v9651_v9 = vpop.f32.mrf.mxu1 }
 0x6d2   : > { %v7915_v19 = vpack.c.bf16 %v7914_v23, %v7914_v23 }
 0x6d4   : > { %9669 = vmatmul.mubr.bf16.vlgmr.msra.gmra.mxu1 %v7915_v19 }
 0x794   : > { %v7998_v37 = vpop.f32.mrf.mxu1 }
 0x795   : > { %v7999_v54 = vadd.f32 %v7998_v37, %v1174_v60 }
 0x796   : > { %v9670_v7 = vpop.f32.mrf.mxu1 }
 0x797   : > { %8004 = vst [vmem:[%s324_s28] sm:$0x1] %v7999_v54 }
 0x798   : > { %v8001_v0 = vpop.f32.mrf.mxu1 }
 0x799   : > { %10895 = shalt.err (!%p10892_p3)
}
 0x79a   : > { %s10896_s26 = scalar_lea.hbm %s14917_s17, 16  ;;  %s10900_s28 = scalar_lea.hbm %s14967_s9, 32 }
 0x79b   : > { %p10897_p4 = scmp.ne.s32.totalorder %s14917_s17, %s10896_s26  ;;  %p10901_p9 = scmp.lt.s32.totalorder %s14917_s17, %s14967_s9 }
 0x79c   : > { %p10902_p10 = scmp.lt.s32.totalorder %s10900_s28, %s10896_s26 }
 0x79d   : > { %p10898_p7 = pnand %p10897_p4, %p11036_p5 }
 0x79e   : > { %p10903_p11 = por %p10902_p10, %p10901_p9 }
 0x79f   : > { %p10899_p8 = pneg %p10898_p7 }
 0x7a1   : > { %p10904_p12 = pnand %p10903_p11, %p10899_p8 }
 0x7a3   : > { %10907 = shalt.err (!%p10904_p12)
}
 0x7a4   : > { %9672 = dma.vmem_to_hbm [thread:$0]  (%p11036_p5), %s14919_s14, 16, %s14917_s17, %s8006_s21   ;;  %v9671_v58 = vpop.f32.mrf.mxu1 }
 0x7a5 PF: > { %p9678_p13 = scmp.ge.s32.totalorder %s10942_s12, 2  ;;  %s8030_s22 = sand.u32 1, %s10930_s30  }
 0x7a6   : > { %s8031_s13 = scalar_lea.sflag [#allocation3], %s8030_s22 }
 0x7a7   : > { %p9675_p0 = pnand %p9678_p13, %p11040_p6 }
 0x7a9   : > { %p9676_p1 = pneg %p9675_p0 }
 0x7ab   : > { %10925 = dma.done.wait (%p9676_p1), %s8031_s13, 16  }
 0x7ac   : > { %10927 = vsyncadd (%p9676_p1), %s8031_s13, 4294967280  ;;  %p19_p2 = scmp.ge.s32.totalorder %s11023_s15, 4   ;;  %s14970_s30 = smov %s10934_s10 }
 0x7ad   : > { %s14971_s10 = smov %s10938_s11  ;;  %s14972_s11 = smov %s11034_s18 }
 0x7ae   : > { %s14973_s12 = smov %s11023_s15  ;;  %21 = sbr.rel (!%p19_p2) target bundleno = 3 (0x3), region = 91 }
 0x7b3   :  { %8035 = vsyncpa [#allocation3], 1 }
 0x7b4   :  { %8037 = vsyncpa [#allocation3 + $0x1], 1 }

</bundles_post_ra>
